<compile_context>
chip_gen: v7x
topology: tpu7x:2x2x1
jax: 0.10.0
libtpu: 0.0.40
codegen_flags: <defaults>
</compile_context>

<pallas_src>
import functools

import jax
import jax.numpy as jnp
from jax.experimental import pallas as pl
from jax.experimental.pallas import tpu as pltpu

F32 = jnp.float32


# ----------------------------------------------------------------------------
# Kernels
# ----------------------------------------------------------------------------

def _sefa_fused_kernel(x1_ref, x2_ref, w1a_ref, w1b_ref, b1_ref,
                       w2a_ref, w2b_ref, b2a_ref, b2b_ref, o_ref,
                       *, inv_s, nb):
    """One grid step = `nb` batch elements, blocks are (nb, C, S) in NCHW order."""
    # --- squeeze: per-(batch, channel) spatial means (lane reduction) --------
    m1 = jnp.sum(x1_ref[...].astype(F32), axis=-1) * inv_s          # (nb, C)
    m2 = jnp.sum(x2_ref[...].astype(F32), axis=-1) * inv_s

    # --- excitation: fc1 -> relu -> fc2 (tiny, f32 on the otherwise-idle MXU)
    hid = (jnp.dot(m1, w1a_ref[...], preferred_element_type=F32)
           + jnp.dot(m2, w1b_ref[...], preferred_element_type=F32)
           + b1_ref[...])
    hid = jnp.maximum(hid, 0.0)                                      # (nb, Hd)
    l0 = jnp.dot(hid, w2a_ref[...], preferred_element_type=F32) + b2a_ref[...]
    l1 = jnp.dot(hid, w2b_ref[...], preferred_element_type=F32) + b2b_ref[...]

    # --- per-channel 2-way softmax gate (EUP exp + approx reciprocal) --------
    mx = jnp.maximum(l0, l1)
    e0 = jnp.exp(l0 - mx)
    e1 = jnp.exp(l1 - mx)
    inv = pl.reciprocal(e0 + e1, approx=True)
    # Turn the lane-oriented (nb, C) gates into sublane-oriented (C, nb) so the
    # gating multiply is a plain broadcast-along-lanes of a (C, 1) column.
    g1t = jnp.transpose(e0 * inv)                                    # (C, nb)
    g2t = jnp.transpose(e1 * inv)

    # --- aggregation: out = g1*x1 + g2*x2 ------------------------------------
    for n in range(nb):                      # nb is small and static (<=16)
        xa = x1_ref[n].astype(F32)                                   # (C, S)
        xb = x2_ref[n].astype(F32)
        o_ref[n] = (xa * g1t[:, n:n + 1] + xb * g2t[:, n:n + 1]).astype(o_ref.dtype)


def _sefa_apply_kernel(x1_ref, x2_ref, g1_ref, g2_ref, o_ref):
    """Fallback pass 2: spatially tiled gating apply. Blocks (1, C, Ts)."""
    g1 = g1_ref[0]                            # (C, 1) f32, lane-broadcast ready
    g2 = g2_ref[0]
    xa = x1_ref[0].astype(F32)                # (C, Ts)
    xb = x2_ref[0].astype(F32)
    o_ref[0] = (xa * g1 + xb * g2).astype(o_ref.dtype)


# ----------------------------------------------------------------------------
# Parameters (deterministic nn.Linear-style init); split / de-interleaved ONCE
# ----------------------------------------------------------------------------

def make_sefa_params(inplanes, r=4, seed=0):
    C = inplanes
    Hd = int(2 * inplanes / r)
    k1, k2, k3, k4 = jax.random.split(jax.random.PRNGKey(seed), 4)
    lim1 = 1.0 / float(2 * C) ** 0.5
    w1 = jax.random.uniform(k1, (2 * C, Hd), F32, -lim1, lim1)   # (in, out)
    b1 = jax.random.uniform(k2, (Hd,), F32, -lim1, lim1)
    lim2 = 1.0 / float(Hd) ** 0.5
    w2 = jax.random.uniform(k3, (Hd, 2 * C), F32, -lim2, lim2)   # (in, out)
    b2 = jax.random.uniform(k4, (2 * C,), F32, -lim2, lim2)
    # fc1 rows split by source (x1 means / x2 means); fc2 columns de-interleaved
    # to match torch's view(-1, C, 2) pairing (even cols gate x1, odd gate x2).
    return {
        "C": C, "Hd": Hd,
        "w1": w1, "b1": b1, "w2": w2, "b2": b2,                   # raw (reference)
        "w1a": w1[:C], "w1b": w1[C:], "b1r": b1.reshape(1, Hd),
        "w2a": w2[:, 0::2], "w2b": w2[:, 1::2],
        "b2a": b2[0::2].reshape(1, C), "b2b": b2[1::2].reshape(1, C),
    }


# ----------------------------------------------------------------------------
# Forward (NCHW in / NCHW out)
# ----------------------------------------------------------------------------

def _vmem_capacity_bytes():
    try:
        return int(pltpu.get_tpu_info().vmem_capacity_bytes)
    except Exception:
        return 64 << 20          # conservative: v7x per-TensorCore VMEM


def _sefa_forward_tiled(x1r, x2r, params, spatial_tile, budget):
    """Fallback for feature maps whose (C, S) slab does not fit the VMEM budget.

    Pass 1 (tiny): global channel means + fc1/relu/fc2/softmax in plain JAX —
    the means need one full HBM read of x1/x2 no matter what, and XLA's
    reduction is already at the HBM roofline, so a Pallas reduction kernel
    would buy nothing here.  Pass 2: Pallas gating kernel tiled over S.
    """
    N, C, S = x1r.shape
    m1 = jnp.mean(x1r.astype(F32), axis=-1)
    m2 = jnp.mean(x2r.astype(F32), axis=-1)
    hid = jnp.maximum(m1 @ params["w1a"] + m2 @ params["w1b"] + params["b1r"], 0.0)
    l0 = hid @ params["w2a"] + params["b2a"]
    l1 = hid @ params["w2b"] + params["b2b"]
    mx = jnp.maximum(l0, l1)
    e0 = jnp.exp(l0 - mx)
    e1 = jnp.exp(l1 - mx)
    z = e0 + e1
    g1 = (e0 / z).reshape(N, C, 1)          # (N, C, 1): lane-broadcast ready
    g2 = (e1 / z).reshape(N, C, 1)

    eb = x1r.dtype.itemsize
    if spatial_tile is None:
        max_ts = (budget // 2) // (3 * 2 * C * eb)   # x1, x2, out double-buffered
        ts = max(128, (max_ts // 128) * 128)
    else:
        ts = min(int(spatial_tile), S)
    if ts >= S:
        ts = S                                        # full extent: always legal
    assert ts == S or ts % 128 == 0, "spatial tile must be a multiple of 128"
    nst = pl.cdiv(S, ts)
    vmem_limit = int(max(16 << 20, min(budget, 3 * 2 * C * ts * eb + (8 << 20))))

    out = pl.pallas_call(
        _sefa_apply_kernel,
        out_shape=jax.ShapeDtypeStruct((N, C, S), x1r.dtype),
        grid_spec=pltpu.PrefetchScalarGridSpec(
            num_scalar_prefetch=0,
            grid=(N, nst),
            in_specs=[
                pl.BlockSpec((1, C, ts), lambda n, s: (n, 0, s)),
                pl.BlockSpec((1, C, ts), lambda n, s: (n, 0, s)),
                pl.BlockSpec((1, C, 1), lambda n, s: (n, 0, 0)),
                pl.BlockSpec((1, C, 1), lambda n, s: (n, 0, 0)),
            ],
            out_specs=pl.BlockSpec((1, C, ts), lambda n, s: (n, 0, s)),
        ),
        compiler_params=pltpu.CompilerParams(
            dimension_semantics=("parallel", "parallel"),
            vmem_limit_bytes=vmem_limit,
        ),
    )(x1r, x2r, g1, g2)
    return out


def sefa_forward(x1, x2, params, *, force_tiled=False, spatial_tile=None):
    N, C, H, W = x1.shape
    assert x2.shape == x1.shape and x2.dtype == x1.dtype and C == params["C"]
    S = H * W
    Hd = params["Hd"]
    # NCHW row-major == (N, C, S): free reshapes, no layout passes over HBM.
    x1r = x1.reshape(N, C, S)
    x2r = x2.reshape(N, C, S)

    eb = x1.dtype.itemsize
    cap = _vmem_capacity_bytes()
    budget = (cap * 3) // 4
    weight_bytes = 4 * sum(int(params[k].size) for k in
                           ("w1a", "w1b", "b1r", "w2a", "w2b", "b2a", "b2b"))
    fixed = 2 * weight_bytes + (2 << 20)     # resident (double-buffered) weights
    per_n = 3 * 2 * C * S * eb               # x1, x2, out, double-buffered

    nb = 0
    if not force_tiled and fixed + per_n <= budget:
        # ~0.5-1 MiB per activation block hits the HBM roofline sweet spot;
        # cap the static per-batch unroll at 16.
        nb_target = max(1, min(16, (512 << 10) // (C * S * eb)))
        nb = int(min(N, (budget - fixed) // per_n, nb_target))
        nb = max(nb, 1)
        while N % nb:
            nb -= 1

    if nb == 0:
        out = _sefa_forward_tiled(x1r, x2r, params, spatial_tile, budget)
        return out.reshape(N, C, H, W)

    vmem_limit = int(max(16 << 20, min(budget, fixed + nb * per_n + (4 << 20))))
    kern = functools.partial(_sefa_fused_kernel, inv_s=1.0 / float(S), nb=nb)
    out = pl.pallas_call(
        kern,
        out_shape=jax.ShapeDtypeStruct((N, C, S), x1.dtype),
        grid_spec=pltpu.PrefetchScalarGridSpec(
            num_scalar_prefetch=0,
            grid=(N // nb,),
            in_specs=[
                pl.BlockSpec((nb, C, S), lambda i: (i, 0, 0)),    # x1
                pl.BlockSpec((nb, C, S), lambda i: (i, 0, 0)),    # x2
                pl.BlockSpec((C, Hd), lambda i: (0, 0)),          # fc1 W (x1 rows)
                pl.BlockSpec((C, Hd), lambda i: (0, 0)),          # fc1 W (x2 rows)
                pl.BlockSpec((1, Hd), lambda i: (0, 0)),          # fc1 b
                pl.BlockSpec((Hd, C), lambda i: (0, 0)),          # fc2 W (x1 gate)
                pl.BlockSpec((Hd, C), lambda i: (0, 0)),          # fc2 W (x2 gate)
                pl.BlockSpec((1, C), lambda i: (0, 0)),           # fc2 b (x1 gate)
                pl.BlockSpec((1, C), lambda i: (0, 0)),           # fc2 b (x2 gate)
            ],
            out_specs=pl.BlockSpec((nb, C, S), lambda i: (i, 0, 0)),
        ),
        compiler_params=pltpu.CompilerParams(
            dimension_semantics=("parallel",),
            vmem_limit_bytes=vmem_limit,
        ),
    )(x1r, x2r, params["w1a"], params["w1b"], params["b1r"],
      params["w2a"], params["w2b"], params["b2a"], params["b2b"])
    return out.reshape(N, C, H, W)


# ----------------------------------------------------------------------------
# Pure-JAX reference (exact torch semantics)
# ----------------------------------------------------------------------------

def sefa_reference(x1, x2, params):
    N, C, H, W = x1.shape
    x1f, x2f = x1.astype(F32), x2.astype(F32)
    v = jnp.concatenate([x1f, x2f], axis=1).mean(axis=(-1, -2))      # (N, 2C)
    hid = jnp.maximum(v @ params["w1"] + params["b1"], 0.0)
    l = (hid @ params["w2"] + params["b2"]).reshape(N, C, 2)
    g = jax.nn.softmax(l, axis=2)
    return x1f * g[:, :, 0][:, :, None, None] + x2f * g[:, :, 1][:, :, None, None]


if __name__ == "__main__":
    C, r = 256, 4            # 2C = 512 inputs, hidden = 128
    N, H, W = 2, 8, 8
    params = make_sefa_params(C, r=r, seed=0)
    k1, k2, k3, k4 = jax.random.split(jax.random.PRNGKey(0), 4)
    x1 = jax.random.normal(k1, (N, C, H, W), F32)
    x2 = jax.random.normal(k2, (N, C, H, W), F32)
    ref = sefa_reference(x1, x2, params)

    # 1) fused single-pass kernel, f32 (tolerance covers only the EUP
    #    approximate reciprocal in the softmax; weights/means/logits are f32).
    out = sefa_forward(x1, x2, params)
    jax.block_until_ready(out)
    assert out.shape == (N, C, H, W) and bool(jnp.all(jnp.isfinite(out)))
    err = float(jnp.max(jnp.abs(out - ref)))
    assert err < 5e-2, f"fused f32 path: max abs err {err}"

    # 2) spatially tiled fallback (the path oversized feature maps take when the
    #    per-step slab exceeds the v7x 64 MiB VMEM budget), forced here at a
    #    small shape so it is exercised and checked too.
    xb1 = jax.random.normal(k3, (N, C, 16, 16), F32)
    xb2 = jax.random.normal(k4, (N, C, 16, 16), F32)
    out_t = sefa_forward(xb1, xb2, params, force_tiled=True, spatial_tile=128)
    jax.block_until_ready(out_t)
    err_t = float(jnp.max(jnp.abs(out_t - sefa_reference(xb1, xb2, params))))
    assert err_t < 1e-3, f"tiled fallback path: max abs err {err_t}"

    # 3) bf16 activations through the fused kernel (halves HBM traffic;
    #    arithmetic stays f32 in-kernel).
    out_bf = sefa_forward(x1.astype(jnp.bfloat16), x2.astype(jnp.bfloat16), params)
    jax.block_until_ready(out_bf)
    assert out_bf.dtype == jnp.bfloat16
    err_bf = float(jnp.max(jnp.abs(out_bf.astype(F32) - ref)))
    assert err_bf < 1e-1, f"fused bf16 path: max abs err {err_bf}"

    # 4) channel count that is NOT a multiple of 128: handled with no padding,
    #    no wasted write bandwidth and no host-side slicing.
    p160 = make_sefa_params(160, r=4, seed=1)
    y1 = jax.random.normal(jax.random.PRNGKey(5), (2, 160, 8, 8), F32)
    y2 = jax.random.normal(jax.random.PRNGKey(6), (2, 160, 8, 8), F32)
    out_u = sefa_forward(y1, y2, p160)
    jax.block_until_ready(out_u)
    err_u = float(jnp.max(jnp.abs(out_u - sefa_reference(y1, y2, p160))))
    assert err_u < 5e-2, f"unaligned-C path: max abs err {err_u}"

    print("KERNEL_OK")
</pallas_src>

<mosaic_0001>
module attributes {stable_mosaic.version = 11 : i64} {
  func.func @_sefa_fused_kernel(%arg0: i32, %arg1: memref<2x256x64xf32, #tpu.memory_space<vmem>>, %arg2: memref<2x256x64xf32, #tpu.memory_space<vmem>>, %arg3: memref<256x128xf32, #tpu.memory_space<vmem>>, %arg4: memref<256x128xf32, #tpu.memory_space<vmem>>, %arg5: memref<1x128xf32, #tpu.memory_space<vmem>>, %arg6: memref<128x256xf32, #tpu.memory_space<vmem>>, %arg7: memref<128x256xf32, #tpu.memory_space<vmem>>, %arg8: memref<1x256xf32, #tpu.memory_space<vmem>>, %arg9: memref<1x256xf32, #tpu.memory_space<vmem>>, %arg10: memref<2x256x64xf32, #tpu.memory_space<vmem>>) attributes {dimension_semantics = [#tpu.dimension_semantics<parallel>], iteration_bounds = array<i64: 1>, scalar_prefetch = 0 : i64, scratch_operands = 0 : i64, tpu.core_type = #tpu.core_type<tc>, window_params = [{transform_indices = @transform_0, window_bounds = array<i64: 2, 256, 64>}, {transform_indices = @transform_1, window_bounds = array<i64: 2, 256, 64>}, {pipeline_mode = #tpu.pipeline_mode<synchronous>, transform_indices = @transform_2, window_bounds = array<i64: 256, 128>}, {pipeline_mode = #tpu.pipeline_mode<synchronous>, transform_indices = @transform_3, window_bounds = array<i64: 256, 128>}, {pipeline_mode = #tpu.pipeline_mode<synchronous>, transform_indices = @transform_4, window_bounds = array<i64: 1, 128>}, {pipeline_mode = #tpu.pipeline_mode<synchronous>, transform_indices = @transform_5, window_bounds = array<i64: 128, 256>}, {pipeline_mode = #tpu.pipeline_mode<synchronous>, transform_indices = @transform_6, window_bounds = array<i64: 128, 256>}, {pipeline_mode = #tpu.pipeline_mode<synchronous>, transform_indices = @transform_7, window_bounds = array<i64: 1, 256>}, {pipeline_mode = #tpu.pipeline_mode<synchronous>, transform_indices = @transform_8, window_bounds = array<i64: 1, 256>}, {transform_indices = @transform_9, window_bounds = array<i64: 2, 256, 64>}]} {
    %c0 = arith.constant 0 : index
    %c0_0 = arith.constant 0 : index
    %c0_1 = arith.constant 0 : index
    %0 = vector.load %arg1[%c0, %c0_0, %c0_1] : memref<2x256x64xf32, #tpu.memory_space<vmem>>, vector<2x256x64xf32>
    %cst = arith.constant dense<0.000000e+00> : vector<2x256xf32>
    %1 = vector.multi_reduction <add>, %0, %cst [2] : vector<2x256x64xf32> to vector<2x256xf32>
    %cst_2 = arith.constant 1.562500e-02 : f32
    %2 = vector.broadcast %cst_2 : f32 to vector<2x256xf32>
    %3 = arith.mulf %1, %2 : vector<2x256xf32>
    %c0_3 = arith.constant 0 : index
    %c0_4 = arith.constant 0 : index
    %c0_5 = arith.constant 0 : index
    %4 = vector.load %arg2[%c0_3, %c0_4, %c0_5] : memref<2x256x64xf32, #tpu.memory_space<vmem>>, vector<2x256x64xf32>
    %cst_6 = arith.constant dense<0.000000e+00> : vector<2x256xf32>
    %5 = vector.multi_reduction <add>, %4, %cst_6 [2] : vector<2x256x64xf32> to vector<2x256xf32>
    %cst_7 = arith.constant 1.562500e-02 : f32
    %6 = vector.broadcast %cst_7 : f32 to vector<2x256xf32>
    %7 = arith.mulf %5, %6 : vector<2x256xf32>
    %c0_8 = arith.constant 0 : index
    %c0_9 = arith.constant 0 : index
    %8 = vector.load %arg3[%c0_8, %c0_9] : memref<256x128xf32, #tpu.memory_space<vmem>>, vector<256x128xf32>
    %cst_10 = arith.constant dense<0.000000e+00> : vector<2x128xf32>
    %9 = tpu.matmul %3, %8, %cst_10 {dimension_numbers = #tpu.dot_dimension_numbers<[1], [0], [0], [1], [0, 0, 1, 1], [], []>} : vector<2x256xf32>, vector<256x128xf32>, vector<2x128xf32> -> vector<2x128xf32>
    %c0_11 = arith.constant 0 : index
    %c0_12 = arith.constant 0 : index
    %10 = vector.load %arg4[%c0_11, %c0_12] : memref<256x128xf32, #tpu.memory_space<vmem>>, vector<256x128xf32>
    %cst_13 = arith.constant dense<0.000000e+00> : vector<2x128xf32>
    %11 = tpu.matmul %7, %10, %cst_13 {dimension_numbers = #tpu.dot_dimension_numbers<[1], [0], [0], [1], [0, 0, 1, 1], [], []>} : vector<2x256xf32>, vector<256x128xf32>, vector<2x128xf32> -> vector<2x128xf32>
    %12 = arith.addf %9, %11 : vector<2x128xf32>
    %c0_14 = arith.constant 0 : index
    %c0_15 = arith.constant 0 : index
    %13 = vector.load %arg5[%c0_14, %c0_15] : memref<1x128xf32, #tpu.memory_space<vmem>>, vector<1x128xf32>
    %14 = vector.broadcast %13 : vector<1x128xf32> to vector<2x128xf32>
    %15 = arith.addf %12, %14 : vector<2x128xf32>
    %cst_16 = arith.constant 0.000000e+00 : f32
    %16 = vector.broadcast %cst_16 : f32 to vector<2x128xf32>
    %17 = arith.maximumf %15, %16 : vector<2x128xf32>
    %c0_17 = arith.constant 0 : index
    %c0_18 = arith.constant 0 : index
    %18 = vector.load %arg6[%c0_17, %c0_18] : memref<128x256xf32, #tpu.memory_space<vmem>>, vector<128x256xf32>
    %cst_19 = arith.constant dense<0.000000e+00> : vector<2x256xf32>
    %19 = tpu.matmul %17, %18, %cst_19 {dimension_numbers = #tpu.dot_dimension_numbers<[1], [0], [0], [1], [0, 0, 1, 1], [], []>} : vector<2x128xf32>, vector<128x256xf32>, vector<2x256xf32> -> vector<2x256xf32>
    %c0_20 = arith.constant 0 : index
    %c0_21 = arith.constant 0 : index
    %20 = vector.load %arg8[%c0_20, %c0_21] : memref<1x256xf32, #tpu.memory_space<vmem>>, vector<1x256xf32>
    %21 = vector.broadcast %20 : vector<1x256xf32> to vector<2x256xf32>
    %22 = arith.addf %19, %21 : vector<2x256xf32>
    %c0_22 = arith.constant 0 : index
    %c0_23 = arith.constant 0 : index
    %23 = vector.load %arg7[%c0_22, %c0_23] : memref<128x256xf32, #tpu.memory_space<vmem>>, vector<128x256xf32>
    %cst_24 = arith.constant dense<0.000000e+00> : vector<2x256xf32>
    %24 = tpu.matmul %17, %23, %cst_24 {dimension_numbers = #tpu.dot_dimension_numbers<[1], [0], [0], [1], [0, 0, 1, 1], [], []>} : vector<2x128xf32>, vector<128x256xf32>, vector<2x256xf32> -> vector<2x256xf32>
    %c0_25 = arith.constant 0 : index
    %c0_26 = arith.constant 0 : index
    %25 = vector.load %arg9[%c0_25, %c0_26] : memref<1x256xf32, #tpu.memory_space<vmem>>, vector<1x256xf32>
    %26 = vector.broadcast %25 : vector<1x256xf32> to vector<2x256xf32>
    %27 = arith.addf %24, %26 : vector<2x256xf32>
    %28 = arith.maximumf %22, %27 : vector<2x256xf32>
    %29 = arith.subf %22, %28 : vector<2x256xf32>
    %30 = math.exp %29 : vector<2x256xf32>
    %31 = arith.subf %27, %28 : vector<2x256xf32>
    %32 = math.exp %31 : vector<2x256xf32>
    %33 = arith.addf %30, %32 : vector<2x256xf32>
    %34 = tpu.reciprocal %33 {approx = true} : vector<2x256xf32> -> vector<2x256xf32>
    %35 = arith.mulf %30, %34 : vector<2x256xf32>
    %36 = tpu.transpose %35, [1, 0] : vector<2x256xf32> -> vector<256x2xf32>
    %37 = arith.mulf %32, %34 : vector<2x256xf32>
    %38 = tpu.transpose %37, [1, 0] : vector<2x256xf32> -> vector<256x2xf32>
    %c0_27 = arith.constant 0 : index
    %c0_28 = arith.constant 0 : index
    %c0_29 = arith.constant 0 : index
    %39 = vector.load %arg1[%c0_27, %c0_28, %c0_29] : memref<2x256x64xf32, #tpu.memory_space<vmem>>, vector<1x256x64xf32>
    %40 = vector.shape_cast %39 : vector<1x256x64xf32> to vector<256x64xf32>
    %c0_30 = arith.constant 0 : index
    %c0_31 = arith.constant 0 : index
    %c0_32 = arith.constant 0 : index
    %41 = vector.load %arg2[%c0_30, %c0_31, %c0_32] : memref<2x256x64xf32, #tpu.memory_space<vmem>>, vector<1x256x64xf32>
    %42 = vector.shape_cast %41 : vector<1x256x64xf32> to vector<256x64xf32>
    %43 = vector.extract_strided_slice %36 {offsets = [0, 0], sizes = [256, 1], strides = [1, 1]} : vector<256x2xf32> to vector<256x1xf32>
    %44 = vector.broadcast %43 : vector<256x1xf32> to vector<256x64xf32>
    %45 = arith.mulf %40, %44 : vector<256x64xf32>
    %46 = vector.extract_strided_slice %38 {offsets = [0, 0], sizes = [256, 1], strides = [1, 1]} : vector<256x2xf32> to vector<256x1xf32>
    %47 = vector.broadcast %46 : vector<256x1xf32> to vector<256x64xf32>
    %48 = arith.mulf %42, %47 : vector<256x64xf32>
    %49 = arith.addf %45, %48 : vector<256x64xf32>
    %c0_33 = arith.constant 0 : index
    %c0_34 = arith.constant 0 : index
    %c0_35 = arith.constant 0 : index
    %50 = vector.load %arg10[%c0_33, %c0_34, %c0_35] : memref<2x256x64xf32, #tpu.memory_space<vmem>>, vector<1x256x64xf32>
    %51 = vector.shape_cast %50 : vector<1x256x64xf32> to vector<256x64xf32>
    %52 = vector.shape_cast %49 : vector<256x64xf32> to vector<1x256x64xf32>
    tpu.vector_store %arg10[%c0_33, %c0_34, %c0_35], %52 {strides = array<i32>} : memref<2x256x64xf32, #tpu.memory_space<vmem>>, vector<1x256x64xf32>,
    %c1 = arith.constant 1 : index
    %c0_36 = arith.constant 0 : index
    %c0_37 = arith.constant 0 : index
    %53 = vector.load %arg1[%c1, %c0_36, %c0_37] : memref<2x256x64xf32, #tpu.memory_space<vmem>>, vector<1x256x64xf32>
    %54 = vector.shape_cast %53 : vector<1x256x64xf32> to vector<256x64xf32>
    %c1_38 = arith.constant 1 : index
    %c0_39 = arith.constant 0 : index
    %c0_40 = arith.constant 0 : index
    %55 = vector.load %arg2[%c1_38, %c0_39, %c0_40] : memref<2x256x64xf32, #tpu.memory_space<vmem>>, vector<1x256x64xf32>
    %56 = vector.shape_cast %55 : vector<1x256x64xf32> to vector<256x64xf32>
    %57 = vector.extract_strided_slice %36 {offsets = [0, 1], sizes = [256, 1], strides = [1, 1]} : vector<256x2xf32> to vector<256x1xf32>
    %58 = vector.broadcast %57 : vector<256x1xf32> to vector<256x64xf32>
    %59 = arith.mulf %54, %58 : vector<256x64xf32>
    %60 = vector.extract_strided_slice %38 {offsets = [0, 1], sizes = [256, 1], strides = [1, 1]} : vector<256x2xf32> to vector<256x1xf32>
    %61 = vector.broadcast %60 : vector<256x1xf32> to vector<256x64xf32>
    %62 = arith.mulf %56, %61 : vector<256x64xf32>
    %63 = arith.addf %59, %62 : vector<256x64xf32>
    %c1_41 = arith.constant 1 : index
    %c0_42 = arith.constant 0 : index
    %c0_43 = arith.constant 0 : index
    %64 = vector.load %arg10[%c1_41, %c0_42, %c0_43] : memref<2x256x64xf32, #tpu.memory_space<vmem>>, vector<1x256x64xf32>
    %65 = vector.shape_cast %64 : vector<1x256x64xf32> to vector<256x64xf32>
    %66 = vector.shape_cast %63 : vector<256x64xf32> to vector<1x256x64xf32>
    tpu.vector_store %arg10[%c1_41, %c0_42, %c0_43], %66 {strides = array<i32>} : memref<2x256x64xf32, #tpu.memory_space<vmem>>, vector<1x256x64xf32>,
    return
  }
  func.func @transform_0(%arg0: i32) -> (i32, i32, i32) {
    %c0_i32 = arith.constant 0 : i32
    %c0_i32_0 = arith.constant 0 : i32
    %c0_i32_1 = arith.constant 0 : i32
    return %arg0, %c0_i32, %c0_i32_0 : i32, i32, i32
  }
  func.func @transform_1(%arg0: i32) -> (i32, i32, i32) {
    %c0_i32 = arith.constant 0 : i32
    %c0_i32_0 = arith.constant 0 : i32
    %c0_i32_1 = arith.constant 0 : i32
    return %arg0, %c0_i32, %c0_i32_0 : i32, i32, i32
  }
  func.func @transform_2(%arg0: i32) -> (i32, i32) {
    %c0_i32 = arith.constant 0 : i32
    %c0_i32_0 = arith.constant 0 : i32
    %c0_i32_1 = arith.constant 0 : i32
    return %c0_i32, %c0_i32_0 : i32, i32
  }
  func.func @transform_3(%arg0: i32) -> (i32, i32) {
    %c0_i32 = arith.constant 0 : i32
    %c0_i32_0 = arith.constant 0 : i32
    %c0_i32_1 = arith.constant 0 : i32
    return %c0_i32, %c0_i32_0 : i32, i32
  }
  func.func @transform_4(%arg0: i32) -> (i32, i32) {
    %c0_i32 = arith.constant 0 : i32
    %c0_i32_0 = arith.constant 0 : i32
    %c0_i32_1 = arith.constant 0 : i32
    return %c0_i32, %c0_i32_0 : i32, i32
  }
  func.func @transform_5(%arg0: i32) -> (i32, i32) {
    %c0_i32 = arith.constant 0 : i32
    %c0_i32_0 = arith.constant 0 : i32
    %c0_i32_1 = arith.constant 0 : i32
    return %c0_i32, %c0_i32_0 : i32, i32
  }
  func.func @transform_6(%arg0: i32) -> (i32, i32) {
    %c0_i32 = arith.constant 0 : i32
    %c0_i32_0 = arith.constant 0 : i32
    %c0_i32_1 = arith.constant 0 : i32
    return %c0_i32, %c0_i32_0 : i32, i32
  }
  func.func @transform_7(%arg0: i32) -> (i32, i32) {
    %c0_i32 = arith.constant 0 : i32
    %c0_i32_0 = arith.constant 0 : i32
    %c0_i32_1 = arith.constant 0 : i32
    return %c0_i32, %c0_i32_0 : i32, i32
  }
  func.func @transform_8(%arg0: i32) -> (i32, i32) {
    %c0_i32 = arith.constant 0 : i32
    %c0_i32_0 = arith.constant 0 : i32
    %c0_i32_1 = arith.constant 0 : i32
    return %c0_i32, %c0_i32_0 : i32, i32
  }
  func.func @transform_9(%arg0: i32) -> (i32, i32, i32) {
    %c0_i32 = arith.constant 0 : i32
    %c0_i32_0 = arith.constant 0 : i32
    %c0_i32_1 = arith.constant 0 : i32
    return %arg0, %c0_i32, %c0_i32_0 : i32, i32, i32
  }
}

</mosaic_0001>

<bundles_post_ra>
// kernel: tpu_custom_call.1
= control target key start
LH: loop header
LB: loop body
LE: loop exit
PB: predicated region body
PF: predicated region fallthrough
CT: control target
= control target key end

     0   :  { %vm5602_vm0 = vcmask 523264   ;;  %vm812_vm1 = vcmask 130112   ;;  %vm819_vm2 = vcmask 195712   ;;  %vm826_vm3 = vcmask 261312   ;;  %s5592_s0 = inlined_call_operand.vmem [shape: f32[2,256,64], index: 0, kind: input, shape index: {}]   ;;  %s5593_s2 = inlined_call_operand.vmem [shape: f32[256,128], index: 2, kind: input, shape index: {}]   ;;  %s5594_s1 = inlined_call_operand.vmem [shape: f32[2,256,64], index: 1, kind: input, shape index: {}]   ;;  %s5595_s3 = inlined_call_operand.vmem [shape: f32[256,128], index: 3, kind: input, shape index: {}]   ;;  %s5596_s5 = inlined_call_operand.vmem [shape: f32[128,256], index: 5, kind: input, shape index: {}]   ;;  %s5597_s6 = inlined_call_operand.vmem [shape: f32[128,256], index: 6, kind: input, shape index: {}]   ;;  %s5598_s4 = inlined_call_operand.vmem [shape: f32[1,128], index: 4, kind: input, shape index: {}]   ;;  %s5599_s7 = inlined_call_operand.vmem [shape: f32[1,256], index: 7, kind: input, shape index: {}]   ;;  %s5600_s8 = inlined_call_operand.vmem [shape: f32[1,256], index: 8, kind: input, shape index: {}]   ;;  %s5601_s9 = inlined_call_operand.vmem [shape: f32[2,256,64], index: 9, kind: output, shape index: {}]  }
   0x1   :  { %v34_v0 = vld [vmem:[%s5592_s0 + $0x10] sm:$0xff]  ;;  %v32_v1 = vld [vmem:[%s5592_s0] sm:$0xff]  ;;  %v35_v2 = vld [vmem:[%s5592_s0 + $0x18] sm:$0xff]  ;;  %vm833_vm4 = vcmask 326912   ;;  %vm840_vm5 = vcmask 392512   ;;  %vm847_vm6 = vcmask 458112  }
   0x2   :  { %v103_v3 = vsel %vm5602_vm0, %v34_v0, 0.0  ;;  %v97_v4 = vsel %vm5602_vm0, %v32_v1, 0.0  ;;  %v33_v5 = vld [vmem:[%s5592_s0 + $0x8] sm:$0xff]  ;;  %v106_v6 = vsel %vm5602_vm0, %v35_v2, 0.0  ;;  %v36_v9 = vld [vmem:[%s5592_s0 + $0x20] sm:$0xff]  ;;  %v39_v12 = vld [vmem:[%s5592_s0 + $0x38] sm:$0xff] }
   0x3   :  { %104 = vadd.xlane.f32.xlu1 %v103_v3  ;;  %98 = vadd.xlane.f32.xlu0 %v97_v4  ;;  %v100_v7 = vsel %vm5602_vm0, %v33_v5, 0.0  ;;  %v37_v8 = vld [vmem:[%s5592_s0 + $0x28] sm:$0xff]  ;;  %v109_v11 = vsel %vm5602_vm0, %v36_v9, 0.0  ;;  %v38_v13 = vld [vmem:[%s5592_s0 + $0x30] sm:$0xff]  ;;  %v118_v14 = vsel %vm5602_vm0, %v39_v12, 0.0  ;;  %v40_v17 = vld [vmem:[%s5592_s0 + $0x40] sm:$0xff] }
   0x4   :  { %v112_v10 = vsel %vm5602_vm0, %v37_v8, 0.0  ;;  %v115_v15 = vsel %vm5602_vm0, %v38_v13, 0.0  ;;  %v41_v16 = vld [vmem:[%s5592_s0 + $0x48] sm:$0xff]  ;;  %v121_v19 = vsel %vm5602_vm0, %v40_v17, 0.0  ;;  %v43_v20 = vld [vmem:[%s5592_s0 + $0x58] sm:$0xff]  ;;  %v42_v21 = vld [vmem:[%s5592_s0 + $0x50] sm:$0xff] }
   0x5   :  { %v124_v18 = vsel %vm5602_vm0, %v41_v16, 0.0  ;;  %v130_v22 = vsel %vm5602_vm0, %v43_v20, 0.0  ;;  %v127_v23 = vsel %vm5602_vm0, %v42_v21, 0.0  ;;  %v45_v24 = vld [vmem:[%s5592_s0 + $0x68] sm:$0xff]  ;;  %v44_v25 = vld [vmem:[%s5592_s0 + $0x60] sm:$0xff]  ;;  %v47_v28 = vld [vmem:[%s5592_s0 + $0x78] sm:$0xff] }
   0x6   :  { %v136_v26 = vsel %vm5602_vm0, %v45_v24, 0.0  ;;  %v133_v27 = vsel %vm5602_vm0, %v44_v25, 0.0  ;;  %v46_v29 = vld [vmem:[%s5592_s0 + $0x70] sm:$0xff]  ;;  %v142_v30 = vsel %vm5602_vm0, %v47_v28, 0.0  ;;  %v49_v32 = vld [vmem:[%s5592_s0 + $0x88] sm:$0xff]  ;;  %v48_v33 = vld [vmem:[%s5592_s0 + $0x80] sm:$0xff] }
   0x7   :  { %107 = vadd.xlane.f32.xlu1 %v106_v6  ;;  %101 = vadd.xlane.f32.xlu0 %v100_v7  ;;  %v139_v31 = vsel %vm5602_vm0, %v46_v29, 0.0  ;;  %v148_v34 = vsel %vm5602_vm0, %v49_v32, 0.0  ;;  %v145_v35 = vsel %vm5602_vm0, %v48_v33, 0.0  ;;  %v51_v36 = vld [vmem:[%s5592_s0 + $0x98] sm:$0xff]  ;;  %v50_v37 = vld [vmem:[%s5592_s0 + $0x90] sm:$0xff]  ;;  %v53_v40 = vld [vmem:[%s5592_s0 + $0xa8] sm:$0xff] }
   0x8   :  { %v154_v38 = vsel %vm5602_vm0, %v51_v36, 0.0  ;;  %v151_v39 = vsel %vm5602_vm0, %v50_v37, 0.0  ;;  %v52_v41 = vld [vmem:[%s5592_s0 + $0xa0] sm:$0xff]  ;;  %v160_v42 = vsel %vm5602_vm0, %v53_v40, 0.0  ;;  %v55_v44 = vld [vmem:[%s5592_s0 + $0xb8] sm:$0xff]  ;;  %v54_v45 = vld [vmem:[%s5592_s0 + $0xb0] sm:$0xff] }
   0x9   :  { %v157_v43 = vsel %vm5602_vm0, %v52_v41, 0.0  ;;  %v166_v46 = vsel %vm5602_vm0, %v55_v44, 0.0  ;;  %v163_v47 = vsel %vm5602_vm0, %v54_v45, 0.0  ;;  %v57_v48 = vld [vmem:[%s5592_s0 + $0xc8] sm:$0xff]  ;;  %v56_v49 = vld [vmem:[%s5592_s0 + $0xc0] sm:$0xff]  ;;  %v59_v52 = vld [vmem:[%s5592_s0 + $0xd8] sm:$0xff] }
   0xa   :  { %v172_v50 = vsel %vm5602_vm0, %v57_v48, 0.0  ;;  %v169_v51 = vsel %vm5602_vm0, %v56_v49, 0.0  ;;  %v58_v53 = vld [vmem:[%s5592_s0 + $0xd0] sm:$0xff]  ;;  %v178_v54 = vsel %vm5602_vm0, %v59_v52, 0.0  ;;  %v61_v56 = vld [vmem:[%s5592_s0 + $0xe8] sm:$0xff]  ;;  %v60_v57 = vld [vmem:[%s5592_s0 + $0xe0] sm:$0xff] }
   0xb   :  { %113 = vadd.xlane.f32.xlu1 %v112_v10  ;;  %110 = vadd.xlane.f32.xlu0 %v109_v11  ;;  %v175_v55 = vsel %vm5602_vm0, %v58_v53, 0.0  ;;  %v184_v58 = vsel %vm5602_vm0, %v61_v56, 0.0  ;;  %v181_v59 = vsel %vm5602_vm0, %v60_v57, 0.0  ;;  %v63_v60 = vld [vmem:[%s5592_s0 + $0xf8] sm:$0xff]  ;;  %v62_v61 = vld [vmem:[%s5592_s0 + $0xf0] sm:$0xff]  ;;  %v65_v0 = vld [vmem:[%s5592_s0 + $0x108] sm:$0xff] }
   0xc   :  { %v190_v62 = vsel %vm5602_vm0, %v63_v60, 0.0  ;;  %v187_v63 = vsel %vm5602_vm0, %v62_v61, 0.0  ;;  %v64_v1 = vld [vmem:[%s5592_s0 + $0x100] sm:$0xff]  ;;  %v196_v2 = vsel %vm5602_vm0, %v65_v0, 0.0  ;;  %v67_v4 = vld [vmem:[%s5592_s0 + $0x118] sm:$0xff]  ;;  %v66_v5 = vld [vmem:[%s5592_s0 + $0x110] sm:$0xff] }
   0xd   :  { %v193_v3 = vsel %vm5602_vm0, %v64_v1, 0.0  ;;  %v202_v6 = vsel %vm5602_vm0, %v67_v4, 0.0  ;;  %v199_v7 = vsel %vm5602_vm0, %v66_v5, 0.0  ;;  %v69_v8 = vld [vmem:[%s5592_s0 + $0x128] sm:$0xff]  ;;  %v68_v9 = vld [vmem:[%s5592_s0 + $0x120] sm:$0xff]  ;;  %v71_v12 = vld [vmem:[%s5592_s0 + $0x138] sm:$0xff] }
   0xe   :  { %v208_v10 = vsel %vm5602_vm0, %v69_v8, 0.0  ;;  %v205_v11 = vsel %vm5602_vm0, %v68_v9, 0.0  ;;  %v70_v13 = vld [vmem:[%s5592_s0 + $0x130] sm:$0xff]  ;;  %v73_v16 = vld [vmem:[%s5592_s0 + $0x148] sm:$0xff]  ;;  %v72_v17 = vld [vmem:[%s5592_s0 + $0x140] sm:$0xff]  ;;  %vm854_vm7 = vcmask 523712  }
   0xf   :  { %119 = vadd.xlane.f32.xlu1 %v118_v14  ;;  %116 = vadd.xlane.f32.xlu0 %v115_v15  ;;  %v214_v14 = vsel %vm5602_vm0, %v71_v12, 0.0  ;;  %v211_v15 = vsel %vm5602_vm0, %v70_v13, 0.0  ;;  %v75_v20 = vld [vmem:[%s5592_s0 + $0x158] sm:$0xff]  ;;  %v74_v21 = vld [vmem:[%s5592_s0 + $0x150] sm:$0xff]  ;;  %v77_v24 = vld [vmem:[%s5592_s0 + $0x168] sm:$0xff]  ;;  %vm861_vm8 = vcmask 589312  }
  0x10   :  { %v76_v25 = vld [vmem:[%s5592_s0 + $0x160] sm:$0xff]  ;;  %v79_v28 = vld [vmem:[%s5592_s0 + $0x178] sm:$0xff]  ;;  %v78_v29 = vld [vmem:[%s5592_s0 + $0x170] sm:$0xff]  ;;  %vm868_vm9 = vcmask 654912   ;;  %vm875_vm10 = vcmask 720512   ;;  %vm882_vm11 = vcmask 786112  }
  0x11   :  { %v81_v32 = vld [vmem:[%s5592_s0 + $0x188] sm:$0xff]  ;;  %v80_v33 = vld [vmem:[%s5592_s0 + $0x180] sm:$0xff]  ;;  %v83_v36 = vld [vmem:[%s5592_s0 + $0x198] sm:$0xff]  ;;  %vm889_vm12 = vcmask 851712   ;;  %vm896_vm13 = vcmask 917312   ;;  %vm903_vm14 = vcmask 982912  }
  0x12   :  { %v82_v37 = vld [vmem:[%s5592_s0 + $0x190] sm:$0xff]  ;;  %v85_v40 = vld [vmem:[%s5592_s0 + $0x1a8] sm:$0xff]  ;;  %v84_v41 = vld [vmem:[%s5592_s0 + $0x1a0] sm:$0xff]  ;;  %vm910_vm15 = vcmask 1048512  }
  0x13   :  { %125 = vadd.xlane.f32.xlu1 %v124_v18  ;;  %122 = vadd.xlane.f32.xlu0 %v121_v19  ;;  %v220_v18 = vsel %vm5602_vm0, %v73_v16, 0.0  ;;  %v217_v19 = vsel %vm5602_vm0, %v72_v17, 0.0  ;;  %v87_v44 = vld [vmem:[%s5592_s0 + $0x1b8] sm:$0xff]  ;;  %v86_v45 = vld [vmem:[%s5592_s0 + $0x1b0] sm:$0xff]  ;;  %v89_v48 = vld [vmem:[%s5592_s0 + $0x1c8] sm:$0xff] }
  0x14   :  { %v88_v49 = vld [vmem:[%s5592_s0 + $0x1c0] sm:$0xff]  ;;  %v91_v52 = vld [vmem:[%s5592_s0 + $0x1d8] sm:$0xff]  ;;  %v90_v53 = vld [vmem:[%s5592_s0 + $0x1d0] sm:$0xff] }
  0x15   :  { %v673_v57 = vld [vmem:[%s5593_s2] sm:$0xff]  ;;  %v271_v60 = vsel %vm5602_vm0, %v90_v53, 0.0  ;;  %v691_v0 = vld [vmem:[%s5593_s2 + $0x90] sm:$0xff]  ;;  %v692_v1 = vld [vmem:[%s5593_s2 + $0x98] sm:$0xff] }
  0x16   :  { %v676_v4 = vld [vmem:[%s5593_s2 + $0x18] sm:$0xff]  ;;  %v94_v9 = vld [vmem:[%s5592_s0 + $0x1f0] sm:$0xff]  ;;  %v677_v13 = vld [vmem:[%s5593_s2 + $0x20] sm:$0xff] }
  0x17   :  { %131 = vadd.xlane.f32.xlu1 %v130_v22  ;;  %128 = vadd.xlane.f32.xlu0 %v127_v23  ;;  %v226_v22 = vsel %vm5602_vm0, %v75_v20, 0.0  ;;  %v223_v23 = vsel %vm5602_vm0, %v74_v21, 0.0  ;;  %v95_v8 = vld [vmem:[%s5592_s0 + $0x1f8] sm:$0xff]  ;;  %v283_v16 = vsel %vm5602_vm0, %v94_v9, 0.0  ;;  %v695_v20 = vld [vmem:[%s5593_s2 + $0xb0] sm:$0xff] }
  0x18   :  { %v696_v21 = vld [vmem:[%s5593_s2 + $0xb8] sm:$0xff] }
  0x1b   :  { %137 = vadd.xlane.f32.xlu1 %v136_v26  ;;  %134 = vadd.xlane.f32.xlu0 %v133_v27  ;;  %v232_v26 = vsel %vm5602_vm0, %v77_v24, 0.0  ;;  %v229_v27 = vsel %vm5602_vm0, %v76_v25, 0.0  ;;  %v680_v24 = vld [vmem:[%s5593_s2 + $0x38] sm:$0xff] }
  0x1f   :  { %143 = vadd.xlane.f32.xlu1 %v142_v30  ;;  %140 = vadd.xlane.f32.xlu0 %v139_v31  ;;  %v238_v30 = vsel %vm5602_vm0, %v79_v28, 0.0  ;;  %v235_v31 = vsel %vm5602_vm0, %v78_v29, 0.0  ;;  %v356_v28 = vld [vmem:[%s5594_s1 + $0x18] sm:$0xff]  ;;  %v355_v29 = vld [vmem:[%s5594_s1 + $0x10] sm:$0xff] }
  0x23   :  { %149 = vadd.xlane.f32.xlu1 %v148_v34  ;;  %146 = vadd.xlane.f32.xlu0 %v145_v35  ;;  %v244_v34 = vsel %vm5602_vm0, %v81_v32, 0.0  ;;  %v241_v35 = vsel %vm5602_vm0, %v80_v33, 0.0  ;;  %v681_v33 = vld [vmem:[%s5593_s2 + $0x40] sm:$0xff] }
  0x27   :  { %155 = vadd.xlane.f32.xlu1 %v154_v38  ;;  %152 = vadd.xlane.f32.xlu0 %v151_v39  ;;  %v250_v38 = vsel %vm5602_vm0, %v83_v36, 0.0  ;;  %v247_v39 = vsel %vm5602_vm0, %v82_v37, 0.0  ;;  %v423_v36 = vsel %vm5602_vm0, %v355_v29, 0.0  ;;  %v365_v29 = vld [vmem:[%s5594_s1 + $0x60] sm:$0xff] }
  0x2b   :  { %161 = vadd.xlane.f32.xlu1 %v160_v42  ;;  %158 = vadd.xlane.f32.xlu0 %v157_v43  ;;  %v256_v42 = vsel %vm5602_vm0, %v85_v40, 0.0  ;;  %v253_v43 = vsel %vm5602_vm0, %v84_v41, 0.0  ;;  %v699_v40 = vld [vmem:[%s5593_s2 + $0xd0] sm:$0xff]  ;;  %v700_v41 = vld [vmem:[%s5593_s2 + $0xd8] sm:$0xff] }
  0x2f   :  { %167 = vadd.xlane.f32.xlu1 %v166_v46  ;;  %164 = vadd.xlane.f32.xlu0 %v163_v47  ;;  %v262_v46 = vsel %vm5602_vm0, %v87_v44, 0.0  ;;  %v259_v47 = vsel %vm5602_vm0, %v86_v45, 0.0  ;;  %v684_v44 = vld [vmem:[%s5593_s2 + $0x58] sm:$0xff] }
  0x33   :  { %173 = vadd.xlane.f32.xlu1 %v172_v50  ;;  %170 = vadd.xlane.f32.xlu0 %v169_v51  ;;  %v268_v50 = vsel %vm5602_vm0, %v89_v48, 0.0  ;;  %v265_v51 = vsel %vm5602_vm0, %v88_v49, 0.0  ;;  %v360_v49 = vld [vmem:[%s5594_s1 + $0x38] sm:$0xff] }
  0x37   :  { %179 = vadd.xlane.f32.xlu1 %v178_v54  ;;  %176 = vadd.xlane.f32.xlu0 %v175_v55  ;;  %v689_v54 = vld [vmem:[%s5593_s2 + $0x80] sm:$0xff]  ;;  %v690_v55 = vld [vmem:[%s5593_s2 + $0x88] sm:$0xff] }
  0x38   :  { %v3233_v56 = vpack.c.bf16 %v690_v55, %v689_v54  ;;  %v685_v54 = vld [vmem:[%s5593_s2 + $0x60] sm:$0xff]  ;;  %v686_v55 = vld [vmem:[%s5593_s2 + $0x68] sm:$0xff] }
  0x3a   :  { %3234 = vmatprep.subr.bf16.mxu1 %v3233_v56  ;;  %v438_v56 = vsel %vm5602_vm0, %v360_v49, 0.0 }
  0x3b   :  { %185 = vadd.xlane.f32.xlu1 %v184_v58  ;;  %182 = vadd.xlane.f32.xlu0 %v181_v59  ;;  %v674_v58 = vld [vmem:[%s5593_s2 + $0x8] sm:$0xff]  ;;  %v274_v59 = vsel %vm5602_vm0, %v91_v52, 0.0 }
  0x3c   :  { %v3235_v61 = vpack.c.bf16 %v674_v58, %v673_v57  ;;  %v702_v52 = vld [vmem:[%s5593_s2 + $0xe8] sm:$0xff] }
  0x3e   :  { %3236 = vmatpush3.bf16.msra.mxu1 %v3235_v61  ;;  %v361_v61 = vld [vmem:[%s5594_s1 + $0x40] sm:$0xff] }
  0x3f   :  { %191 = vadd.xlane.f32.xlu1 %v190_v62  ;;  %188 = vadd.xlane.f32.xlu0 %v187_v63  ;;  %v93_v62 = vld [vmem:[%s5592_s0 + $0x1e8] sm:$0xff]  ;;  %v92_v63 = vld [vmem:[%s5592_s0 + $0x1e0] sm:$0xff] }
  0x40   :  { %v280_v5 = vsel %vm5602_vm0, %v93_v62, 0.0  ;;  %v703_v62 = vld [vmem:[%s5593_s2 + $0xf0] sm:$0xff] }
  0x43   :  { %197 = vadd.xlane.f32.xlu1 %v196_v2  ;;  %194 = vadd.xlane.f32.xlu0 %v193_v3  ;;  %v3237_v2 = vpack.c.bf16 %v692_v1, %v691_v0  ;;  %v675_v3 = vld [vmem:[%s5593_s2 + $0x10] sm:$0xff] }
  0x45   :  { %3238 = vmatprep.subr.bf16.mxu1 %v3237_v2 }
  0x47   :  { %203 = vadd.xlane.f32.xlu1 %v202_v6  ;;  %200 = vadd.xlane.f32.xlu0 %v199_v7  ;;  %v277_v6 = vsel %vm5602_vm0, %v92_v63, 0.0  ;;  %v3239_v7 = vpack.c.bf16 %v676_v4, %v675_v3  ;;  %v704_v63 = vld [vmem:[%s5593_s2 + $0xf8] sm:$0xff]  ;;  %v687_v4 = vld [vmem:[%s5593_s2 + $0x70] sm:$0xff] }
  0x48   :  { %v3261_v3 = vpack.c.bf16 %v704_v63, %v703_v62  ;;  %v370_v63 = vld [vmem:[%s5594_s1 + $0x88] sm:$0xff] }
  0x49   :  { %3240 = vmatpush3.bf16.msra.mxu1 %v3239_v7 }
  0x4b   :  { %209 = vadd.xlane.f32.xlu1 %v208_v10  ;;  %206 = vadd.xlane.f32.xlu0 %v205_v11  ;;  %v693_v10 = vld [vmem:[%s5593_s2 + $0xa0] sm:$0xff]  ;;  %v694_v11 = vld [vmem:[%s5593_s2 + $0xa8] sm:$0xff] }
  0x4c   :  { %v3241_v12 = vpack.c.bf16 %v694_v11, %v693_v10  ;;  %v441_v10 = vsel %vm5602_vm0, %v361_v61, 0.0 }
  0x4e   :  { %3242 = vmatprep.subr.bf16.mxu1 %v3241_v12  ;;  %v364_v12 = vld [vmem:[%s5594_s1 + $0x58] sm:$0xff] }
  0x4f   :  { %215 = vadd.xlane.f32.xlu1 %v214_v14  ;;  %212 = vadd.xlane.f32.xlu0 %v211_v15  ;;  %v678_v14 = vld [vmem:[%s5593_s2 + $0x28] sm:$0xff]  ;;  %v286_v15 = vsel %vm5602_vm0, %v95_v8, 0.0 }
  0x50   :  { %v3243_v17 = vpack.c.bf16 %v678_v14, %v677_v13  ;;  %v363_v13 = vld [vmem:[%s5594_s1 + $0x50] sm:$0xff] }
  0x52   :  { %3244 = vmatpush3.bf16.msra.mxu1 %v3243_v17 }
  0x53   :  { %221 = vadd.xlane.f32.xlu1 %v220_v18  ;;  %218 = vadd.xlane.f32.xlu0 %v217_v19  ;;  %v354_v18 = vld [vmem:[%s5594_s1 + $0x8] sm:$0xff]  ;;  %v353_v19 = vld [vmem:[%s5594_s1] sm:$0xff] }
  0x54   :  { %v420_v25 = vsel %vm5602_vm0, %v354_v18, 0.0 }
  0x57   :  { %227 = vadd.xlane.f32.xlu1 %v226_v22  ;;  %224 = vadd.xlane.f32.xlu0 %v223_v23  ;;  %v3245_v22 = vpack.c.bf16 %v696_v21, %v695_v20  ;;  %v679_v23 = vld [vmem:[%s5593_s2 + $0x30] sm:$0xff] }
  0x59   :  { %3246 = vmatprep.subr.bf16.mxu1 %v3245_v22 }
  0x5b   :  { %233 = vadd.xlane.f32.xlu1 %v232_v26  ;;  %230 = vadd.xlane.f32.xlu0 %v229_v27  ;;  %v417_v26 = vsel %vm5602_vm0, %v353_v19, 0.0  ;;  %v3247_v27 = vpack.c.bf16 %v680_v24, %v679_v23  ;;  %v450_v24 = vsel %vm5602_vm0, %v364_v12, 0.0 }
  0x5d   :  { %3248 = vmatpush3.bf16.msra.mxu1 %v3247_v27 }
  0x5f   :  { %239 = vadd.xlane.f32.xlu1 %v238_v30  ;;  %236 = vadd.xlane.f32.xlu0 %v235_v31  ;;  %v697_v30 = vld [vmem:[%s5593_s2 + $0xc0] sm:$0xff]  ;;  %v698_v31 = vld [vmem:[%s5593_s2 + $0xc8] sm:$0xff] }
  0x60   :  { %v3249_v32 = vpack.c.bf16 %v698_v31, %v697_v30 }
  0x62   :  { %3250 = vmatprep.subr.bf16.mxu1 %v3249_v32 }
  0x63   :  { %245 = vadd.xlane.f32.xlu1 %v244_v34  ;;  %242 = vadd.xlane.f32.xlu0 %v241_v35  ;;  %v682_v34 = vld [vmem:[%s5593_s2 + $0x48] sm:$0xff]  ;;  %v426_v35 = vsel %vm5602_vm0, %v356_v28, 0.0 }
  0x64   :  { %v3251_v37 = vpack.c.bf16 %v682_v34, %v681_v33  ;;  %v366_v28 = vld [vmem:[%s5594_s1 + $0x68] sm:$0xff] }
  0x66   :  { %3252 = vmatpush3.bf16.msra.mxu1 %v3251_v37 }
  0x67   :  { %251 = vadd.xlane.f32.xlu1 %v250_v38  ;;  %248 = vadd.xlane.f32.xlu0 %v247_v39  ;;  %v358_v38 = vld [vmem:[%s5594_s1 + $0x28] sm:$0xff]  ;;  %v357_v39 = vld [vmem:[%s5594_s1 + $0x20] sm:$0xff] }
  0x68   :  { %v432_v45 = vsel %vm5602_vm0, %v358_v38, 0.0 }
  0x6b   :  { %257 = vadd.xlane.f32.xlu1 %v256_v42  ;;  %254 = vadd.xlane.f32.xlu0 %v253_v43  ;;  %v3253_v42 = vpack.c.bf16 %v700_v41, %v699_v40  ;;  %v683_v43 = vld [vmem:[%s5593_s2 + $0x50] sm:$0xff]  ;;  %v456_v40 = vsel %vm5602_vm0, %v366_v28, 0.0  ;;  %v453_v41 = vsel %vm5602_vm0, %v365_v29, 0.0 }
  0x6c   :  { %v3255_v48 = vpack.c.bf16 %v684_v44, %v683_v43 }
  0x6d   :  { %3254 = vmatprep.subr.bf16.mxu1 %v3253_v42 }
  0x6e   :  { %3256 = vmatpush3.bf16.msra.mxu1 %v3255_v48 }
  0x6f   :  { %263 = vadd.xlane.f32.xlu1 %v262_v46  ;;  %260 = vadd.xlane.f32.xlu0 %v259_v47  ;;  %v429_v46 = vsel %vm5602_vm0, %v357_v39, 0.0  ;;  %v801_v47 = vlaneseq }
  0x71   :  { %v3806_v58 = vand.u32 127, %v801_v47  ;;  %v3820_v0 = vshrl.u32 %v801_v47, 7 }
  0x73   :  { %269 = vadd.xlane.f32.xlu1 %v268_v50  ;;  %266 = vadd.xlane.f32.xlu0 %v265_v51  ;;  %v359_v50 = vld [vmem:[%s5594_s1 + $0x30] sm:$0xff]  ;;  %v701_v51 = vld [vmem:[%s5593_s2 + $0xe0] sm:$0xff]  ;;  %v821_v1 = vadd.s32 4294967272, %v3806_v58  ;;  %v807_v2 = vadd.s32 4294967288, %v3806_v58  ;;  %v835_v14 = vadd.s32 4294967256, %v3806_v58  ;;  %v849_v32 = vadd.s32 4294967240, %v3806_v58 }
  0x74   :  { %v3257_v53 = vpack.c.bf16 %v702_v52, %v701_v51  ;;  %v435_v57 = vsel %vm5602_vm0, %v359_v50, 0.0  ;;  %v842_v33 = vadd.s32 4294967248, %v3806_v58  ;;  %v863_v50 = vadd.s32 4294967224, %v3806_v58 }
  0x75   :  { %v3846_v18 = vsub.s32 %v821_v1, %v3820_v0  ;;  %v3849_v19 = vsub.s32 %v807_v2, %v3820_v0  ;;  %v3863_v30 = vsub.s32 %v835_v14, %v3820_v0  ;;  %v3885_v48 = vsub.s32 %v849_v32, %v3820_v0  ;;  %v369_v1 = vld [vmem:[%s5594_s1 + $0x80] sm:$0xff] }
  0x76   :  { %3258 = vmatprep.subr.bf16.mxu1 %v3257_v53  ;;  %v3888_v49 = vsub.s32 %v842_v33, %v3820_v0  ;;  %v465_v12 = vsel %vm5602_vm0, %v369_v1, 0.0  ;;  %v891_v28 = vadd.s32 4294967192, %v3806_v58 }
  0x77   :  { %275 = vadd.xlane.f32.xlu1 %v274_v59  ;;  %272 = vadd.xlane.f32.xlu0 %v271_v60  ;;  %v3259_v59 = vpack.c.bf16 %v686_v55, %v685_v54  ;;  %v362_v60 = vld [vmem:[%s5594_s1 + $0x48] sm:$0xff]  ;;  %v856_v54 = vadd.s32 4294967232, %v3806_v58 }
  0x78   :  { %v444_v9 = vsel %vm5602_vm0, %v362_v60, 0.0 }
  0x79   :  { %3260 = vmatpush3.bf16.msra.mxu1 %v3259_v59 }
  0x7a   :  { %3262 = vmatprep.subr.bf16.mxu1 %v3261_v3  ;;  %v3906_v3 = vsub.s32 %v863_v50, %v3820_v0 }
  0x7b   :  { %281 = vadd.xlane.f32.xlu1 %v280_v5  ;;  %278 = vadd.xlane.f32.xlu0 %v277_v6  ;;  %v688_v5 = vld [vmem:[%s5593_s2 + $0x78] sm:$0xff]  ;;  %v814_v6 = vadd.s32 4294967280, %v3806_v58 }
  0x7c   :  { %v3263_v11 = vpack.c.bf16 %v688_v5, %v687_v4  ;;  %v870_v4 = vadd.s32 4294967216, %v3806_v58 }
  0x7d   :  { %v3852_v20 = vsub.s32 %v814_v6, %v3820_v0 }
  0x7e   :  { %3264 = vmatpush3.bf16.msra.mxu1 %v3263_v11  ;;  %v468_v11 = vsel %vm5602_vm0, %v370_v63, 0.0 }
  0x7f   :  { %287 = vadd.xlane.f32.xlu1 %v286_v15  ;;  %284 = vadd.xlane.f32.xlu0 %v283_v16  ;;  %v828_v15 = vadd.s32 4294967264, %v3806_v58  ;;  %v3843_v16 = vsub.s32 %v3806_v58, %v3820_v0 }
  0x81   :  { %v3866_v31 = vsub.s32 %v828_v15, %v3820_v0 }
  0x83   :  { %421 = vadd.xlane.f32.xlu1 %v420_v25  ;;  %418 = vadd.xlane.f32.xlu0 %v417_v26  ;;  %v447_v25 = vsel %vm5602_vm0, %v363_v13, 0.0 }
  0x87   :  { %427 = vadd.xlane.f32.xlu1 %v426_v35  ;;  %424 = vadd.xlane.f32.xlu0 %v423_v36 }
  0x8b   :  { %433 = vadd.xlane.f32.xlu1 %v432_v45  ;;  %430 = vadd.xlane.f32.xlu0 %v429_v46  ;;  %v368_v45 = vld [vmem:[%s5594_s1 + $0x78] sm:$0xff]  ;;  %v367_v46 = vld [vmem:[%s5594_s1 + $0x70] sm:$0xff] }
  0x8c   :  { %v459_v59 = vsel %vm5602_vm0, %v367_v46, 0.0  ;;  %v905_v46 = vadd.s32 4294967176, %v3806_v58 }
  0x8f   :  { %439 = vadd.xlane.f32.xlu1 %v438_v56  ;;  %436 = vadd.xlane.f32.xlu0 %v435_v57  ;;  %v462_v57 = vsel %vm5602_vm0, %v368_v45, 0.0  ;;  %v3952_v45 = vsub.s32 %v891_v28, %v3820_v0 }
  0x90   :  { %v105_v7 = vpop.xlane.xlu1 %104  ;;  %v99_v8 = vpop.xlane.xlu0 %98 }
  0x91   :  { %v289_v17 = vmul.f32 0.015625, %v99_v8  ;;  %v291_v21 = vmul.f32 0.015625, %v105_v7  ;;  %v3912_v7 = vsub.s32 %v856_v54, %v3820_v0  ;;  %v877_v8 = vadd.s32 4294967208, %v3806_v58 }
  0x93   :  { %445 = vadd.xlane.f32.xlu1 %v444_v9  ;;  %442 = vadd.xlane.f32.xlu0 %v441_v10  ;;  %v1291_v34 = vrot.slane %v289_v17, %v3843_v16  ;;  %v1300_v37 = vrot.slane %v291_v21, %v3852_v20  ;;  %v372_v17 = vld [vmem:[%s5594_s1 + $0x98] sm:$0xff]  ;;  %v371_v21 = vld [vmem:[%s5594_s1 + $0x90] sm:$0xff] }
  0x94   :  { %v108_v22 = vpop.xlane.xlu1 %107  ;;  %v102_v23 = vpop.xlane.xlu0 %101  ;;  %v474_v33 = vsel %vm5602_vm0, %v372_v17, 0.0 }
  0x95   :  { %v292_v26 = vmul.f32 0.015625, %v108_v22  ;;  %v290_v27 = vmul.f32 0.015625, %v102_v23  ;;  %v3926_v23 = vsub.s32 %v870_v4, %v3820_v0 }
  0x97   :  { %v1305_v35 = vrot.slane %v292_v26, %v3846_v18  ;;  %v1295_v36 = vrot.slane %v290_v27, %v3849_v19  ;;  %451 = vadd.xlane.f32.xlu1 %v450_v24  ;;  %448 = vadd.xlane.f32.xlu0 %v447_v25  ;;  %v884_v24 = vadd.s32 4294967200, %v3806_v58  ;;  %v3932_v27 = vsub.s32 %v877_v8, %v3820_v0 }
  0x98   :  { %v114_v38 = vpop.xlane.xlu1 %113  ;;  %v111_v39 = vpop.xlane.xlu0 %110 }
  0x99   :  { %v1296_v42 = vsel %vm812_vm1, %v1295_v36, %v1291_v34  ;;  %v294_v43 = vmul.f32 0.015625, %v114_v38  ;;  %v293_v44 = vmul.f32 0.015625, %v111_v39  ;;  %v471_v34 = vsel %vm5602_vm0, %v371_v21, 0.0  ;;  %v374_v38 = vld [vmem:[%s5594_s1 + $0xa8] sm:$0xff]  ;;  %v373_v39 = vld [vmem:[%s5594_s1 + $0xa0] sm:$0xff] }
  0x9a   :  { %v1301_v47 = vsel %vm819_vm2, %v1300_v37, %v1296_v42  ;;  %v898_v42 = vadd.s32 4294967184, %v3806_v58 }
  0x9b   :  { %v1315_v51 = vrot.slane %v294_v43, %v3863_v30  ;;  %v1306_v52 = vsel %vm826_vm3, %v1305_v35, %v1301_v47  ;;  %v1310_v53 = vrot.slane %v293_v44, %v3866_v31  ;;  %457 = vadd.xlane.f32.xlu1 %v456_v40  ;;  %454 = vadd.xlane.f32.xlu0 %v453_v41 }
  0x9c   :  { %v120_v55 = vpop.xlane.xlu1 %119  ;;  %v117_v56 = vpop.xlane.xlu0 %116  ;;  %v3946_v41 = vsub.s32 %v884_v24, %v3820_v0 }
  0x9d   :  { %v1311_v60 = vsel %vm833_vm4, %v1310_v53, %v1306_v52  ;;  %v296_v61 = vmul.f32 0.015625, %v120_v55  ;;  %v295_v62 = vmul.f32 0.015625, %v117_v56  ;;  %v477_v52 = vsel %vm5602_vm0, %v373_v39, 0.0  ;;  %v376_v56 = vld [vmem:[%s5594_s1 + $0xb8] sm:$0xff] }
  0x9e   :  { %v1316_v2 = vsel %vm840_vm5, %v1315_v51, %v1311_v60  ;;  %v480_v51 = vsel %vm5602_vm0, %v374_v38, 0.0 }
  0x9f   :  { %v1325_v5 = vrot.slane %v296_v61, %v3885_v48  ;;  %v1320_v6 = vrot.slane %v295_v62, %v3888_v49  ;;  %463 = vadd.xlane.f32.xlu1 %v462_v57  ;;  %460 = vadd.xlane.f32.xlu0 %v459_v59  ;;  %v375_v57 = vld [vmem:[%s5594_s1 + $0xb0] sm:$0xff]  ;;  %v3966_v59 = vsub.s32 %v898_v42, %v3820_v0  ;;  %v382_v42 = vld [vmem:[%s5594_s1 + $0xe8] sm:$0xff] }
  0xa0   :  { %v126_v9 = vpop.xlane.xlu1 %125  ;;  %v123_v10 = vpop.xlane.xlu0 %122  ;;  %v3971_v62 = vsub.s32 %v905_v46, %v3820_v0  ;;  %v483_v4 = vsel %vm5602_vm0, %v375_v57, 0.0  ;;  %v383_v57 = vld [vmem:[%s5594_s1 + $0xf0] sm:$0xff] }
  0xa1   :  { %v1321_v13 = vsel %vm847_vm6, %v1320_v6, %v1316_v2  ;;  %v298_v14 = vmul.f32 0.015625, %v126_v9  ;;  %v297_v15 = vmul.f32 0.015625, %v123_v10  ;;  %v486_v2 = vsel %vm5602_vm0, %v376_v56, 0.0  ;;  %v378_v9 = vld [vmem:[%s5594_s1 + $0xc8] sm:$0xff]  ;;  %v377_v10 = vld [vmem:[%s5594_s1 + $0xc0] sm:$0xff]  ;;  %v384_v56 = vld [vmem:[%s5594_s1 + $0xf8] sm:$0xff] }
  0xa2   :  { %v1326_v22 = vsel %vm854_vm7, %v1325_v5, %v1321_v13  ;;  %v492_v17 = vsel %vm5602_vm0, %v378_v9, 0.0  ;;  %v489_v21 = vsel %vm5602_vm0, %v377_v10, 0.0  ;;  %v386_v9 = vld [vmem:[%s5594_s1 + $0x108] sm:$0xff]  ;;  %v385_v10 = vld [vmem:[%s5594_s1 + $0x100] sm:$0xff] }
  0xa3   :  { %v1335_v25 = vrot.slane %v298_v14, %v3906_v3  ;;  %v1330_v26 = vrot.slane %v297_v15, %v3912_v7  ;;  %469 = vadd.xlane.f32.xlu1 %v468_v11  ;;  %466 = vadd.xlane.f32.xlu0 %v465_v12 }
  0xa4   :  { %v132_v29 = vpop.xlane.xlu1 %131  ;;  %v129_v32 = vpop.xlane.xlu0 %128 }
  0xa5   :  { %v1331_v35 = vsel %vm861_vm8, %v1330_v26, %v1326_v22  ;;  %v300_v36 = vmul.f32 0.015625, %v132_v29  ;;  %v299_v37 = vmul.f32 0.015625, %v129_v32  ;;  %v379_v26 = vld [vmem:[%s5594_s1 + $0xd0] sm:$0xff] }
  0xa6   :  { %v1336_v40 = vsel %vm868_vm9, %v1335_v25, %v1331_v35  ;;  %v380_v25 = vld [vmem:[%s5594_s1 + $0xd8] sm:$0xff] }
  0xa7   :  { %v1345_v43 = vrot.slane %v300_v36, %v3932_v27  ;;  %v1340_v44 = vrot.slane %v299_v37, %v3926_v23  ;;  %475 = vadd.xlane.f32.xlu1 %v474_v33  ;;  %472 = vadd.xlane.f32.xlu0 %v471_v34  ;;  %v498_v36 = vsel %vm5602_vm0, %v380_v25, 0.0  ;;  %v495_v37 = vsel %vm5602_vm0, %v379_v26, 0.0  ;;  %v388_v26 = vld [vmem:[%s5594_s1 + $0x118] sm:$0xff] }
  0xa8   :  { %v138_v47 = vpop.xlane.xlu1 %137  ;;  %v135_v50 = vpop.xlane.xlu0 %134 }
  0xa9   :  { %v1341_v53 = vsel %vm875_vm10, %v1340_v44, %v1336_v40  ;;  %v302_v54 = vmul.f32 0.015625, %v138_v47  ;;  %v301_v55 = vmul.f32 0.015625, %v135_v50 }
  0xaa   :  { %v1346_v58 = vsel %vm882_vm11, %v1345_v43, %v1341_v53  ;;  %v381_v43 = vld [vmem:[%s5594_s1 + $0xe0] sm:$0xff] }
  0xab   :  { %v1355_v60 = vrot.slane %v302_v54, %v3952_v45  ;;  %v1350_v61 = vrot.slane %v301_v55, %v3946_v41  ;;  %481 = vadd.xlane.f32.xlu1 %v480_v51  ;;  %478 = vadd.xlane.f32.xlu0 %v477_v52  ;;  %v504_v51 = vsel %vm5602_vm0, %v382_v42, 0.0  ;;  %v501_v52 = vsel %vm5602_vm0, %v381_v43, 0.0  ;;  %v390_v43 = vld [vmem:[%s5594_s1 + $0x128] sm:$0xff] }
  0xac   :  { %v144_v63 = vpop.xlane.xlu1 %143  ;;  %v141_v1 = vpop.xlane.xlu0 %140 }
  0xad   :  { %v1351_v5 = vsel %vm889_vm12, %v1350_v61, %v1346_v58  ;;  %v304_v6 = vmul.f32 0.015625, %v144_v63  ;;  %v303_v8 = vmul.f32 0.015625, %v141_v1 }
  0xae   :  { %v1356_v11 = vsel %vm896_vm13, %v1355_v60, %v1351_v5 }
  0xaf   :  { %v1365_v12 = vrot.slane %v304_v6, %v3971_v62  ;;  %v1360_v13 = vrot.slane %v303_v8, %v3966_v59  ;;  %487 = vadd.xlane.f32.xlu1 %v486_v2  ;;  %484 = vadd.xlane.f32.xlu0 %v483_v4  ;;  %v510_v2 = vsel %vm5602_vm0, %v384_v56, 0.0  ;;  %v507_v4 = vsel %vm5602_vm0, %v383_v57, 0.0 }
  0xb0   :  { %v150_v14 = vpop.xlane.xlu1 %149  ;;  %v147_v15 = vpop.xlane.xlu0 %146 }
  0xb1   :  { %v306_v22 = vmul.f32 0.015625, %v150_v14  ;;  %v305_v24 = vmul.f32 0.015625, %v147_v15  ;;  %v1361_v28 = vsel %vm903_vm14, %v1360_v13, %v1356_v11 }
  0xb2   :  { %v3995_v29 = vsel %vm910_vm15, %v1365_v12, %v1361_v28  ;;  %v387_v28 = vld [vmem:[%s5594_s1 + $0x110] sm:$0xff] }
  0xb3   :  { %v1374_v32 = vrot.slane %v306_v22, %v3849_v19  ;;  %v1370_v33 = vrot.slane %v305_v24, %v3843_v16  ;;  %493 = vadd.xlane.f32.xlu1 %v492_v17  ;;  %490 = vadd.xlane.f32.xlu0 %v489_v21  ;;  %v516_v17 = vsel %vm5602_vm0, %v386_v9, 0.0  ;;  %v513_v21 = vsel %vm5602_vm0, %v385_v10, 0.0 }
  0xb4   :  { %v156_v34 = vpop.xlane.xlu1 %155  ;;  %v153_v35 = vpop.xlane.xlu0 %152 }
  0xb5   :  { %v1375_v38 = vsel %vm812_vm1, %v1374_v32, %v1370_v33  ;;  %v308_v39 = vmul.f32 0.015625, %v156_v34  ;;  %v307_v40 = vmul.f32 0.015625, %v153_v35 }
  0xb7   :  { %v1384_v44 = vrot.slane %v308_v39, %v3846_v18  ;;  %v1379_v46 = vrot.slane %v307_v40, %v3852_v20  ;;  %499 = vadd.xlane.f32.xlu1 %v498_v36  ;;  %496 = vadd.xlane.f32.xlu0 %v495_v37  ;;  %v522_v37 = vsel %vm5602_vm0, %v388_v26, 0.0  ;;  %v395_v26 = vld [vmem:[%s5594_s1 + $0x150] sm:$0xff] }
  0xb8   :  { %v162_v47 = vpop.xlane.xlu1 %161  ;;  %v159_v50 = vpop.xlane.xlu0 %158 }
  0xb9   :  { %v1380_v53 = vsel %vm819_vm2, %v1379_v46, %v1375_v38  ;;  %v310_v54 = vmul.f32 0.015625, %v162_v47  ;;  %v309_v55 = vmul.f32 0.015625, %v159_v50  ;;  %v519_v38 = vsel %vm5602_vm0, %v387_v28, 0.0 }
  0xba   :  { %v1385_v58 = vsel %vm826_vm3, %v1384_v44, %v1380_v53  ;;  %v389_v44 = vld [vmem:[%s5594_s1 + $0x120] sm:$0xff]  ;;  %v528_v53 = vsel %vm5602_vm0, %v390_v43, 0.0 }
  0xbb   :  { %v1394_v60 = vrot.slane %v310_v54, %v3863_v30  ;;  %v1389_v61 = vrot.slane %v309_v55, %v3866_v31  ;;  %505 = vadd.xlane.f32.xlu1 %v504_v51  ;;  %502 = vadd.xlane.f32.xlu0 %v501_v52  ;;  %v525_v54 = vsel %vm5602_vm0, %v389_v44, 0.0  ;;  %v400_v44 = vld [vmem:[%s5594_s1 + $0x178] sm:$0xff] }
  0xbc   :  { %v168_v63 = vpop.xlane.xlu1 %167  ;;  %v165_v1 = vpop.xlane.xlu0 %164 }
  0xbd   :  { %v1390_v5 = vsel %vm833_vm4, %v1389_v61, %v1385_v58  ;;  %v312_v6 = vmul.f32 0.015625, %v168_v63  ;;  %v311_v8 = vmul.f32 0.015625, %v165_v1  ;;  %v392_v58 = vld [vmem:[%s5594_s1 + $0x138] sm:$0xff] }
  0xbe   :  { %v1395_v11 = vsel %vm840_vm5, %v1394_v60, %v1390_v5  ;;  %v391_v60 = vld [vmem:[%s5594_s1 + $0x130] sm:$0xff]  ;;  %v534_v5 = vsel %vm5602_vm0, %v392_v58, 0.0 }
  0xbf   :  { %v1404_v12 = vrot.slane %v312_v6, %v3885_v48  ;;  %v1399_v13 = vrot.slane %v311_v8, %v3888_v49  ;;  %511 = vadd.xlane.f32.xlu1 %v510_v2  ;;  %508 = vadd.xlane.f32.xlu0 %v507_v4  ;;  %v531_v6 = vsel %vm5602_vm0, %v391_v60, 0.0  ;;  %v403_v60 = vld [vmem:[%s5594_s1 + $0x190] sm:$0xff] }
  0xc0   :  { %v174_v14 = vpop.xlane.xlu1 %173  ;;  %v171_v15 = vpop.xlane.xlu0 %170 }
  0xc1   :  { %v1400_v22 = vsel %vm847_vm6, %v1399_v13, %v1395_v11  ;;  %v314_v24 = vmul.f32 0.015625, %v174_v14  ;;  %v313_v25 = vmul.f32 0.015625, %v171_v15  ;;  %v394_v11 = vld [vmem:[%s5594_s1 + $0x148] sm:$0xff] }
  0xc2   :  { %v1405_v32 = vsel %vm854_vm7, %v1404_v12, %v1400_v22  ;;  %v393_v12 = vld [vmem:[%s5594_s1 + $0x140] sm:$0xff]  ;;  %v540_v22 = vsel %vm5602_vm0, %v394_v11, 0.0 }
  0xc3   :  { %v1414_v33 = vrot.slane %v314_v24, %v3906_v3  ;;  %v1409_v34 = vrot.slane %v313_v25, %v3912_v7  ;;  %517 = vadd.xlane.f32.xlu1 %v516_v17  ;;  %514 = vadd.xlane.f32.xlu0 %v513_v21  ;;  %v537_v24 = vsel %vm5602_vm0, %v393_v12, 0.0  ;;  %v396_v25 = vld [vmem:[%s5594_s1 + $0x158] sm:$0xff] }
  0xc4   :  { %v180_v35 = vpop.xlane.xlu1 %179  ;;  %v177_v36 = vpop.xlane.xlu0 %176 }
  0xc5   :  { %v1410_v39 = vsel %vm861_vm8, %v1409_v34, %v1405_v32  ;;  %v316_v40 = vmul.f32 0.015625, %v180_v35  ;;  %v315_v42 = vmul.f32 0.015625, %v177_v36  ;;  %v546_v35 = vsel %vm5602_vm0, %v396_v25, 0.0 }
  0xc6   :  { %v1415_v46 = vsel %vm868_vm9, %v1414_v33, %v1410_v39  ;;  %v543_v36 = vsel %vm5602_vm0, %v395_v26, 0.0 }
  0xc7   :  { %v1424_v47 = vrot.slane %v316_v40, %v3932_v27  ;;  %v1419_v50 = vrot.slane %v315_v42, %v3926_v23  ;;  %523 = vadd.xlane.f32.xlu1 %v522_v37  ;;  %520 = vadd.xlane.f32.xlu0 %v519_v38  ;;  %v398_v37 = vld [vmem:[%s5594_s1 + $0x168] sm:$0xff]  ;;  %v397_v38 = vld [vmem:[%s5594_s1 + $0x160] sm:$0xff] }
  0xc8   :  { %v186_v51 = vpop.xlane.xlu1 %185  ;;  %v183_v52 = vpop.xlane.xlu0 %182  ;;  %v552_v42 = vsel %vm5602_vm0, %v398_v37, 0.0  ;;  %v549_v43 = vsel %vm5602_vm0, %v397_v38, 0.0  ;;  %v409_v37 = vld [vmem:[%s5594_s1 + $0x1c0] sm:$0xff] }
  0xc9   :  { %v1420_v55 = vsel %vm875_vm10, %v1419_v50, %v1415_v46  ;;  %v318_v56 = vmul.f32 0.015625, %v186_v51  ;;  %v317_v57 = vmul.f32 0.015625, %v183_v52  ;;  %v399_v46 = vld [vmem:[%s5594_s1 + $0x170] sm:$0xff]  ;;  %v558_v51 = vsel %vm5602_vm0, %v400_v44, 0.0 }
  0xca   :  { %v1425_v61 = vsel %vm882_vm11, %v1424_v47, %v1420_v55  ;;  %v555_v52 = vsel %vm5602_vm0, %v399_v46, 0.0 }
  0xcb   :  { %v1434_v63 = vrot.slane %v318_v56, %v3952_v45  ;;  %v1429_v1 = vrot.slane %v317_v57, %v3946_v41  ;;  %529 = vadd.xlane.f32.xlu1 %v528_v53  ;;  %526 = vadd.xlane.f32.xlu0 %v525_v54  ;;  %v402_v53 = vld [vmem:[%s5594_s1 + $0x188] sm:$0xff]  ;;  %v401_v54 = vld [vmem:[%s5594_s1 + $0x180] sm:$0xff] }
  0xcc   :  { %v192_v2 = vpop.xlane.xlu1 %191  ;;  %v189_v4 = vpop.xlane.xlu0 %188  ;;  %v564_v57 = vsel %vm5602_vm0, %v402_v53, 0.0  ;;  %v561_v58 = vsel %vm5602_vm0, %v401_v54, 0.0  ;;  %v411_v53 = vld [vmem:[%s5594_s1 + $0x1d0] sm:$0xff]  ;;  %v412_v54 = vld [vmem:[%s5594_s1 + $0x1d8] sm:$0xff] }
  0xcd   :  { %v1430_v8 = vsel %vm889_vm12, %v1429_v1, %v1425_v61  ;;  %v320_v9 = vmul.f32 0.015625, %v192_v2  ;;  %v319_v10 = vmul.f32 0.015625, %v189_v4  ;;  %v404_v61 = vld [vmem:[%s5594_s1 + $0x198] sm:$0xff]  ;;  %v567_v2 = vsel %vm5602_vm0, %v403_v60, 0.0 }
  0xce   :  { %v1435_v13 = vsel %vm896_vm13, %v1434_v63, %v1430_v8  ;;  %v570_v4 = vsel %vm5602_vm0, %v404_v61, 0.0  ;;  %v721_v61 = vld [vmem:[%s5595_s3 + $0x80] sm:$0xff] }
  0xcf   :  { %v1444_v14 = vrot.slane %v320_v9, %v3971_v62  ;;  %v1439_v15 = vrot.slane %v319_v10, %v3966_v59  ;;  %535 = vadd.xlane.f32.xlu1 %v534_v5  ;;  %532 = vadd.xlane.f32.xlu0 %v531_v6  ;;  %v405_v5 = vld [vmem:[%s5594_s1 + $0x1a0] sm:$0xff]  ;;  %v406_v6 = vld [vmem:[%s5594_s1 + $0x1a8] sm:$0xff] }
  0xd0   :  { %v198_v17 = vpop.xlane.xlu1 %197  ;;  %v195_v21 = vpop.xlane.xlu0 %194 }
  0xd1   :  { %v1440_v28 = vsel %vm903_vm14, %v1439_v15, %v1435_v13  ;;  %v322_v8 = vmul.f32 0.015625, %v198_v17  ;;  %v321_v9 = vmul.f32 0.015625, %v195_v21  ;;  %v573_v13 = vsel %vm5602_vm0, %v405_v5, 0.0  ;;  %v407_v15 = vld [vmem:[%s5594_s1 + $0x1b0] sm:$0xff]  ;;  %v408_v17 = vld [vmem:[%s5594_s1 + $0x1b8] sm:$0xff] }
  0xd2   :  { %v4092_v32 = vsel %vm910_vm15, %v1444_v14, %v1440_v28  ;;  %v576_v14 = vsel %vm5602_vm0, %v406_v6, 0.0  ;;  %v591_v6 = vsel %vm5602_vm0, %v411_v53, 0.0 }
  0xd3   :  { %541 = vadd.xlane.f32.xlu1 %v540_v22  ;;  %538 = vadd.xlane.f32.xlu0 %v537_v24  ;;  %v1453_v21 = vrot.slane %v322_v8, %v3849_v19  ;;  %v1449_v22 = vrot.slane %v321_v9, %v3843_v16  ;;  %v594_v8 = vsel %vm5602_vm0, %v412_v54, 0.0  ;;  %v706_v9 = vld [vmem:[%s5595_s3 + $0x8] sm:$0xff] }
  0xd4   :  { %v204_v33 = vpop.xlane.xlu1 %203  ;;  %v201_v34 = vpop.xlane.xlu0 %200 }
  0xd5   :  { %v323_v10 = vmul.f32 0.015625, %v201_v34  ;;  %v324_v24 = vmul.f32 0.015625, %v204_v33  ;;  %v579_v34 = vsel %vm5602_vm0, %v407_v15, 0.0  ;;  %v410_v33 = vld [vmem:[%s5594_s1 + $0x1c8] sm:$0xff]  ;;  %v1454_v38 = vsel %vm812_vm1, %v1453_v21, %v1449_v22 }
  0xd6   :  { %v414_v21 = vld [vmem:[%s5594_s1 + $0x1e8] sm:$0xff] }
  0xd7   :  { %547 = vadd.xlane.f32.xlu1 %v546_v35  ;;  %544 = vadd.xlane.f32.xlu0 %v543_v36  ;;  %v1458_v25 = vrot.slane %v323_v10, %v3852_v20  ;;  %v582_v35 = vsel %vm5602_vm0, %v408_v17, 0.0  ;;  %v413_v17 = vld [vmem:[%s5594_s1 + $0x1e0] sm:$0xff] }
  0xd8   :  { %v210_v39 = vpop.xlane.xlu1 %209  ;;  %v207_v40 = vpop.xlane.xlu0 %206 }
  0xd9   :  { %v325_v36 = vmul.f32 0.015625, %v207_v40  ;;  %v1459_v44 = vsel %vm819_vm2, %v1458_v25, %v1454_v38  ;;  %v585_v40 = vsel %vm5602_vm0, %v409_v37, 0.0  ;;  %v723_v38 = vld [vmem:[%s5595_s3 + $0x90] sm:$0xff] }
  0xdb   :  { %553 = vadd.xlane.f32.xlu1 %v552_v42  ;;  %550 = vadd.xlane.f32.xlu0 %v549_v43  ;;  %v1463_v42 = vrot.slane %v324_v24, %v3846_v18  ;;  %v326_v43 = vmul.f32 0.015625, %v210_v39  ;;  %v1468_v39 = vrot.slane %v325_v36, %v3866_v31 }
  0xdc   :  { %v4110_v47 = vpop.xlane.xlu1 %215  ;;  %v213_v50 = vpop.xlane.xlu0 %212 }
  0xdd   :  { %v327_v60 = vmul.f32 0.015625, %v213_v50  ;;  %v1464_v5 = vsel %vm826_vm3, %v1463_v42, %v1459_v44  ;;  %v705_v50 = vld [vmem:[%s5595_s3] sm:$0xff]  ;;  %v724_v42 = vld [vmem:[%s5595_s3 + $0x98] sm:$0xff]  ;;  %v600_v44 = vsel %vm5602_vm0, %v414_v21, 0.0  ;;  %v710_v21 = vld [vmem:[%s5595_s3 + $0x28] sm:$0xff] }
  0xde   :  { %v3203_v24 = vpack.c.bf16 %v706_v9, %v705_v50  ;;  %v1469_v25 = vsel %vm833_vm4, %v1468_v39, %v1464_v5  ;;  %v725_v9 = vld [vmem:[%s5595_s3 + $0xa0] sm:$0xff] }
  0xdf   :  { %559 = vadd.xlane.f32.xlu1 %v558_v51  ;;  %556 = vadd.xlane.f32.xlu0 %v555_v52  ;;  %v588_v52 = vsel %vm5602_vm0, %v410_v33, 0.0  ;;  %v1478_v37 = vrot.slane %v327_v60, %v3888_v49 }
  0xe0   :  { %v4120_v55 = vpop.xlane.xlu1 %221  ;;  %v4122_v56 = vpop.xlane.xlu0 %218 }
  0xe1   :  { %v329_v33 = vmul.f32 0.015625, %v4122_v56  ;;  %v707_v56 = vld [vmem:[%s5595_s3 + $0x10] sm:$0xff] }
  0xe3   :  { %565 = vadd.xlane.f32.xlu1 %v564_v57  ;;  %562 = vadd.xlane.f32.xlu0 %v561_v58  ;;  %v1488_v50 = vrot.slane %v329_v33, %v3912_v7 }
  0xe4   :  { %v4132_v63 = vpop.xlane.xlu1 %227  ;;  %v4134_v1 = vpop.xlane.xlu0 %224 }
  0xe7   :  { %568 = vadd.xlane.f32.xlu0 %v567_v2  ;;  %571 = vadd.xlane.f32.xlu1 %v570_v4  ;;  %v722_v2 = vld [vmem:[%s5595_s3 + $0x88] sm:$0xff]  ;;  %v1473_v4 = vrot.slane %v326_v43, %v3863_v30 }
  0xe8   :  { %v4144_v11 = vpop.xlane.xlu1 %233  ;;  %v4146_v12 = vpop.xlane.xlu0 %230  ;;  %v3201_v22 = vpack.c.bf16 %v722_v2, %v721_v61 }
  0xea   :  { %3202 = vmatprep.subr.bf16.mxu0 %v3201_v22 }
  0xeb   :  { %574 = vadd.xlane.f32.xlu0 %v573_v13  ;;  %577 = vadd.xlane.f32.xlu1 %v576_v14 }
  0xec   :  { %v4159_v26 = vpop.xlane.xlu1 %239  ;;  %v4161_v28 = vpop.xlane.xlu0 %236  ;;  %3204 = vmatpush3.bf16.msra.mxu0 %v3203_v24 }
  0xef   :  { %580 = vadd.xlane.f32.xlu0 %v579_v34  ;;  %583 = vadd.xlane.f32.xlu1 %v582_v35  ;;  %v328_v34 = vmul.f32 0.015625, %v4110_v47  ;;  %v597_v47 = vsel %vm5602_vm0, %v413_v17, 0.0 }
  0xf0   :  { %v246_v46 = vpop.xlane.xlu1 %245  ;;  %v243_v51 = vpop.xlane.xlu0 %242 }
  0xf1   :  { %v338_v57 = vmul.f32 0.015625, %v246_v46  ;;  %v337_v58 = vmul.f32 0.015625, %v243_v51  ;;  %v3205_v46 = vpack.c.bf16 %v724_v42, %v723_v38  ;;  %v708_v51 = vld [vmem:[%s5595_s3 + $0x18] sm:$0xff]  ;;  %v1483_v60 = vrot.slane %v328_v34, %v3885_v48 }
  0xf3   :  { %586 = vadd.xlane.f32.xlu0 %v585_v40  ;;  %589 = vadd.xlane.f32.xlu1 %v588_v52  ;;  %v1532_v10 = vrot.slane %v338_v57, %v3849_v19  ;;  %v1528_v13 = vrot.slane %v337_v58, %v3843_v16  ;;  %v1474_v40 = vsel %vm840_vm5, %v1473_v4, %v1469_v25  ;;  %v415_v57 = vld [vmem:[%s5594_s1 + $0x1f0] sm:$0xff]  ;;  %v416_v4 = vld [vmem:[%s5594_s1 + $0x1f8] sm:$0xff] }
  0xf4   :  { %v252_v14 = vpop.xlane.xlu1 %251  ;;  %v249_v15 = vpop.xlane.xlu0 %248  ;;  %v3207_v58 = vpack.c.bf16 %v708_v51, %v707_v56  ;;  %3206 = vmatprep.subr.bf16.mxu0 %v3205_v46  ;;  %v606_v34 = vsel %vm5602_vm0, %v416_v4, 0.0  ;;  %v728_v46 = vld [vmem:[%s5595_s3 + $0xb8] sm:$0xff] }
  0xf5   :  { %v340_v35 = vmul.f32 0.015625, %v252_v14  ;;  %v339_v36 = vmul.f32 0.015625, %v249_v15  ;;  %v1533_v52 = vsel %vm812_vm1, %v1532_v10, %v1528_v13  ;;  %v726_v10 = vld [vmem:[%s5595_s3 + $0xa8] sm:$0xff]  ;;  %v331_v13 = vmul.f32 0.015625, %v4134_v1 }
  0xf6   :  { %v603_v15 = vsel %vm5602_vm0, %v415_v57, 0.0  ;;  %v3209_v17 = vpack.c.bf16 %v726_v10, %v725_v9  ;;  %3208 = vmatpush3.bf16.msra.mxu0 %v3207_v58  ;;  %v334_v9 = vmul.f32 0.015625, %v4144_v11  ;;  %vm1149_vm0 = vcmask 1041409  }
  0xf7   :  { %v1537_v43 = vrot.slane %v339_v36, %v3852_v20  ;;  %592 = vadd.xlane.f32.xlu0 %v591_v6  ;;  %595 = vadd.xlane.f32.xlu1 %v594_v8  ;;  %v1542_v53 = vrot.slane %v340_v35, %v3846_v18  ;;  %v1479_v6 = vsel %vm847_vm6, %v1478_v37, %v1474_v40  ;;  %v330_v8 = vmul.f32 0.015625, %v4120_v55  ;;  %v709_v55 = vld [vmem:[%s5595_s3 + $0x20] sm:$0xff] }
  0xf8   :  { %v258_v54 = vpop.xlane.xlu1 %257  ;;  %v255_v39 = vpop.xlane.xlu0 %254  ;;  %v3211_v35 = vpack.c.bf16 %v710_v21, %v709_v55  ;;  %v1484_v36 = vsel %vm854_vm7, %v1483_v60, %v1479_v6  ;;  %3210 = vmatprep.subr.bf16.mxu0 %v3209_v17  ;;  %v1498_v56 = vrot.slane %v331_v13, %v3926_v23 }
  0xf9   :  { %v1538_v61 = vsel %vm819_vm2, %v1537_v43, %v1533_v52  ;;  %v342_v2 = vmul.f32 0.015625, %v258_v54  ;;  %v341_v5 = vmul.f32 0.015625, %v255_v39  ;;  %v1493_v42 = vrot.slane %v330_v8, %v3906_v3  ;;  %v711_v52 = vld [vmem:[%s5595_s3 + $0x30] sm:$0xff]  ;;  %v730_v8 = vld [vmem:[%s5595_s3 + $0xc8] sm:$0xff] }
  0xfa   :  { %v1543_v24 = vsel %vm826_vm3, %v1542_v53, %v1538_v61  ;;  %v1489_v43 = vsel %vm861_vm8, %v1488_v50, %v1484_v36  ;;  %v333_v53 = vmul.f32 0.015625, %v4146_v12  ;;  %3212 = vmatpush3.bf16.msra.mxu0 %v3211_v35  ;;  %v729_v12 = vld [vmem:[%s5595_s3 + $0xc0] sm:$0xff]  ;;  %v335_v35 = vmul.f32 0.015625, %v4161_v28  ;;  %v731_v36 = vld [vmem:[%s5595_s3 + $0xd0] sm:$0xff]  ;;  %v716_v28 = vld [vmem:[%s5595_s3 + $0x58] sm:$0xff] }
  0xfb   :  { %v1547_v14 = vrot.slane %v341_v5, %v3866_v31  ;;  %598 = vadd.xlane.f32.xlu0 %v597_v47  ;;  %601 = vadd.xlane.f32.xlu1 %v600_v44  ;;  %v1552_v22 = vrot.slane %v342_v2, %v3863_v30  ;;  %v332_v47 = vmul.f32 0.015625, %v4132_v63  ;;  %v727_v44 = vld [vmem:[%s5595_s3 + $0xb0] sm:$0xff]  ;;  %v712_v63 = vld [vmem:[%s5595_s3 + $0x38] sm:$0xff]  ;;  %v1494_v6 = vsel %vm868_vm9, %v1493_v42, %v1489_v43 }
  0xfc   :  { %v264_v1 = vpop.xlane.xlu1 %263  ;;  %v261_v25 = vpop.xlane.xlu0 %260  ;;  %v3213_v40 = vpack.c.bf16 %v728_v46, %v727_v44  ;;  %v3215_v60 = vpack.c.bf16 %v712_v63, %v711_v52  ;;  %v1499_v50 = vsel %vm875_vm10, %v1498_v56, %v1494_v6  ;;  %v3217_v13 = vpack.c.bf16 %v730_v8, %v729_v12 }
  0xfd   :  { %v1548_v37 = vsel %vm833_vm4, %v1547_v14, %v1543_v24  ;;  %v344_v33 = vmul.f32 0.015625, %v264_v1  ;;  %v343_v38 = vmul.f32 0.015625, %v261_v25  ;;  %v1503_v4 = vrot.slane %v332_v47, %v3932_v27  ;;  %v713_v14 = vld [vmem:[%s5595_s3 + $0x40] sm:$0xff]  ;;  %v715_v47 = vld [vmem:[%s5595_s3 + $0x50] sm:$0xff] }
  0xfe   :  { %v1553_v39 = vsel %vm840_vm5, %v1552_v22, %v1548_v37  ;;  %3214 = vmatprep.subr.bf16.mxu0 %v3213_v40  ;;  %v1508_v17 = vrot.slane %v333_v53, %v3946_v41  ;;  %v732_v37 = vld [vmem:[%s5595_s3 + $0xd8] sm:$0xff]  ;;  %v3223_v52 = vpack.c.bf16 %v716_v28, %v715_v47  ;;  %v336_v63 = vmul.f32 0.015625, %v4159_v26  ;;  %v717_v26 = vld [vmem:[%s5595_s3 + $0x60] sm:$0xff] }
  0xff   :  { %v1557_v51 = vrot.slane %v343_v38, %v3888_v49  ;;  %604 = vadd.xlane.f32.xlu0 %v603_v15  ;;  %607 = vadd.xlane.f32.xlu1 %v606_v34  ;;  %v1562_v54 = vrot.slane %v344_v33, %v3885_v48  ;;  %v714_v15 = vld [vmem:[%s5595_s3 + $0x48] sm:$0xff]  ;;  %v1513_v33 = vrot.slane %v334_v9, %v3952_v45 }
 0x100   :  { %v270_v57 = vpop.xlane.xlu1 %269  ;;  %v267_v58 = vpop.xlane.xlu0 %266  ;;  %3216 = vmatpush3.bf16.msra.mxu0 %v3215_v60  ;;  %v3219_v11 = vpack.c.bf16 %v714_v15, %v713_v14  ;;  %v1504_v38 = vsel %vm882_vm11, %v1503_v4, %v1499_v50  ;;  %v3221_v43 = vpack.c.bf16 %v732_v37, %v731_v36  ;;  %v734_v60 = vld [vmem:[%s5595_s3 + $0xe8] sm:$0xff] }
 0x101   :  { %v1558_v61 = vsel %vm847_vm6, %v1557_v51, %v1553_v39  ;;  %v346_v2 = vmul.f32 0.015625, %v270_v57  ;;  %v345_v5 = vmul.f32 0.015625, %v267_v58  ;;  %3218 = vmatprep.subr.bf16.mxu0 %v3217_v13  ;;  %v1509_v44 = vsel %vm889_vm12, %v1508_v17, %v1504_v38  ;;  %v733_v58 = vld [vmem:[%s5595_s3 + $0xe0] sm:$0xff] }
 0x102   :  { %v1563_v21 = vsel %vm854_vm7, %v1562_v54, %v1558_v61  ;;  %v1518_v57 = vrot.slane %v335_v35, %v3966_v59  ;;  %v1514_v50 = vsel %vm896_vm13, %v1513_v33, %v1509_v44 }
 0x103   :  { %v1567_v10 = vrot.slane %v345_v5, %v3912_v7  ;;  %v1572_v55 = vrot.slane %v346_v2, %v3906_v3  ;;  %v3225_v2 = vpack.c.bf16 %v734_v60, %v733_v58  ;;  %v718_v5 = vld [vmem:[%s5595_s3 + $0x68] sm:$0xff] }
 0x104   :  { %v276_v22 = vpop.xlane.xlu1 %275  ;;  %v273_v24 = vpop.xlane.xlu0 %272  ;;  %3220 = vmatpush3.bf16.msra.mxu0 %v3219_v11  ;;  %v3227_v9 = vpack.c.bf16 %v718_v5, %v717_v26  ;;  %v1519_v17 = vsel %vm903_vm14, %v1518_v57, %v1514_v50 }
 0x105   :  { %v1568_v1 = vsel %vm861_vm8, %v1567_v10, %v1563_v21  ;;  %v348_v25 = vmul.f32 0.015625, %v276_v22  ;;  %v347_v34 = vmul.f32 0.015625, %v273_v24  ;;  %3222 = vmatprep.subr.bf16.mxu0 %v3221_v43  ;;  %v1523_v10 = vrot.slane %v336_v63, %v3971_v62  ;;  %v736_v21 = vld [vmem:[%s5595_s3 + $0xf8] sm:$0xff] }
 0x106   :  { %v1573_v56 = vsel %vm868_vm9, %v1572_v55, %v1568_v1  ;;  %v735_v55 = vld [vmem:[%s5595_s3 + $0xf0] sm:$0xff] }
 0x107   :  { %v1577_v42 = vrot.slane %v347_v34, %v3926_v23  ;;  %v1582_v46 = vrot.slane %v348_v25, %v3932_v27  ;;  %v3229_v11 = vpack.c.bf16 %v736_v21, %v735_v55  ;;  %v719_v1 = vld [vmem:[%s5595_s3 + $0x70] sm:$0xff]  ;;  %v720_v25 = vld [vmem:[%s5595_s3 + $0x78] sm:$0xff]  ;;  %v1524_v43 = vsel %vm910_vm15, %v1523_v10, %v1519_v17 }
 0x108   :  { %v282_v51 = vpop.xlane.xlu1 %281  ;;  %v279_v40 = vpop.xlane.xlu0 %278  ;;  %3224 = vmatpush3.bf16.msra.mxu0 %v3223_v52  ;;  %v3231_v37 = vpack.c.bf16 %v720_v25, %v719_v1 }
 0x109   :  { %v1578_v53 = vsel %vm875_vm10, %v1577_v42, %v1573_v56  ;;  %v350_v54 = vmul.f32 0.015625, %v282_v51  ;;  %v349_v39 = vmul.f32 0.015625, %v279_v40  ;;  %3226 = vmatprep.subr.bf16.mxu0 %v3225_v2  ;;  %v1604_v40 = vsel %vm1149_vm0, %v1524_v43, %v3995_v29 }
 0x10a   :  { %v1583_v4 = vsel %vm882_vm11, %v1582_v46, %v1578_v53 }
 0x10b   :  { %v1587_v61 = vrot.slane %v349_v39, %v3946_v41  ;;  %v1592_v6 = vrot.slane %v350_v54, %v3952_v45 }
 0x10c   :  { %v288_v12 = vpop.xlane.xlu1 %287  ;;  %v285_v8 = vpop.xlane.xlu0 %284  ;;  %3228 = vmatpush3.bf16.msra.mxu0 %v3227_v9 }
 0x10d   :  { %v1588_v13 = vsel %vm889_vm12, %v1587_v61, %v1583_v4  ;;  %v352_v14 = vmul.f32 0.015625, %v288_v12  ;;  %v351_v15 = vmul.f32 0.015625, %v285_v8  ;;  %3230 = vmatprep.subr.bf16.mxu0 %v3229_v11 }
 0x10e   :  { %v1593_v36 = vsel %vm896_vm13, %v1592_v6, %v1588_v13 }
 0x10f   :  { %v1602_v22 = vrot.slane %v352_v14, %v3971_v62  ;;  %v1597_v24 = vrot.slane %v351_v15, %v3966_v59 }
 0x110   :  { %v422_v34 = vpop.xlane.xlu1 %421  ;;  %v419_v35 = vpop.xlane.xlu0 %418  ;;  %3232 = vmatpush3.bf16.msra.mxu0 %v3231_v37 }
 0x111   :  { %v610_v33 = vmul.f32 0.015625, %v422_v34  ;;  %v609_v38 = vmul.f32 0.015625, %v419_v35  ;;  %v1598_v42 = vsel %vm903_vm14, %v1597_v24, %v1593_v36 }
 0x112   :  { %v1603_v47 = vsel %vm910_vm15, %v1602_v22, %v1598_v42 }
 0x113   :  { %v811_v28 = vrot.slane %v610_v33, %v3849_v19  ;;  %v806_v44 = vrot.slane %v609_v38, %v3843_v16  ;;  %v1605_v46 = vsel %vm1149_vm0, %v1603_v47, %v4092_v32 }
 0x114   :  { %v428_v56 = vpop.xlane.xlu1 %427  ;;  %1672 = vmatprep.mubr.f32.mxu1 %v1605_v46  ;;  %v425_v51 = vpop.xlane.xlu0 %424 }
 0x115   :  { %v813_v52 = vsel %vm812_vm1, %v811_v28, %v806_v44  ;;  %v612_v63 = vmul.f32 0.015625, %v428_v56  ;;  %v611_v53 = vmul.f32 0.015625, %v425_v51  ;;  %1673 = vmatmul.mubr.f32.vlgmr.msra.gmra.mrb[0].mxu1 %v1604_v40 }
 0x117   :  { %v825_v54 = vrot.slane %v612_v63, %v3846_v18  ;;  %v818_v39 = vrot.slane %v611_v53, %v3852_v20 }
 0x118   :  { %v434_v57 = vpop.xlane.xlu1 %433  ;;  %v431_v58 = vpop.xlane.xlu0 %430 }
 0x119   :  { %v820_v32 = vsel %vm819_vm2, %v818_v39, %v813_v52  ;;  %v614_v60 = vmul.f32 0.015625, %v434_v57  ;;  %v613_v61 = vmul.f32 0.015625, %v431_v58 }
 0x11a   :  { %v827_v2 = vsel %vm826_vm3, %v825_v54, %v820_v32 }
 0x11b   :  { %v839_v29 = vrot.slane %v614_v60, %v3863_v30  ;;  %v832_v26 = vrot.slane %v613_v61, %v3866_v31 }
 0x11c   :  { %v440_v5 = vpop.xlane.xlu1 %439  ;;  %v437_v4 = vpop.xlane.xlu0 %436 }
 0x11d   :  { %v834_v6 = vsel %vm833_vm4, %v832_v26, %v827_v2  ;;  %v616_v12 = vmul.f32 0.015625, %v440_v5  ;;  %v615_v8 = vmul.f32 0.015625, %v437_v4 }
 0x11e   :  { %v841_v50 = vsel %vm840_vm5, %v839_v29, %v834_v6 }
 0x11f   :  { %v853_v9 = vrot.slane %v616_v12, %v3885_v48  ;;  %v846_v10 = vrot.slane %v615_v8, %v3888_v49 }
 0x120   :  { %v446_v13 = vpop.xlane.xlu1 %445  ;;  %v443_v14 = vpop.xlane.xlu0 %442 }
 0x121   :  { %v848_v15 = vsel %vm847_vm6, %v846_v10, %v841_v50  ;;  %v618_v17 = vmul.f32 0.015625, %v446_v13  ;;  %v617_v55 = vmul.f32 0.015625, %v443_v14 }
 0x122   :  { %v855_v21 = vsel %vm854_vm7, %v853_v9, %v848_v15 }
 0x123   :  { %v867_v22 = vrot.slane %v618_v17, %v3906_v3  ;;  %v860_v24 = vrot.slane %v617_v55, %v3912_v7 }
 0x124   :  { %v452_v11 = vpop.xlane.xlu1 %451  ;;  %v449_v1 = vpop.xlane.xlu0 %448 }
 0x125   :  { %v862_v25 = vsel %vm861_vm8, %v860_v24, %v855_v21  ;;  %v620_v34 = vmul.f32 0.015625, %v452_v11  ;;  %v619_v35 = vmul.f32 0.015625, %v449_v1 }
 0x126   :  { %v869_v36 = vsel %vm868_vm9, %v867_v22, %v862_v25 }
 0x127   :  { %v881_v37 = vrot.slane %v620_v34, %v3932_v27  ;;  %v874_v33 = vrot.slane %v619_v35, %v3926_v23 }
 0x128   :  { %v458_v38 = vpop.xlane.xlu1 %457  ;;  %v455_v42 = vpop.xlane.xlu0 %454 }
 0x129   :  { %v876_v43 = vsel %vm875_vm10, %v874_v33, %v869_v36  ;;  %v622_v47 = vmul.f32 0.015625, %v458_v38  ;;  %v621_v28 = vmul.f32 0.015625, %v455_v42 }
 0x12a   :  { %v883_v44 = vsel %vm882_vm11, %v881_v37, %v876_v43 }
 0x12b   :  { %v895_v46 = vrot.slane %v622_v47, %v3952_v45  ;;  %v888_v56 = vrot.slane %v621_v28, %v3946_v41 }
 0x12c   :  { %v464_v51 = vpop.xlane.xlu1 %463  ;;  %v461_v40 = vpop.xlane.xlu0 %460 }
 0x12d   :  { %v890_v52 = vsel %vm889_vm12, %v888_v56, %v883_v44  ;;  %v624_v63 = vmul.f32 0.015625, %v464_v51  ;;  %v623_v53 = vmul.f32 0.015625, %v461_v40 }
 0x12e   :  { %v897_v54 = vsel %vm896_vm13, %v895_v46, %v890_v52 }
 0x12f   :  { %v909_v39 = vrot.slane %v624_v63, %v3971_v62  ;;  %v902_v57 = vrot.slane %v623_v53, %v3966_v59 }
 0x130   :  { %v470_v58 = vpop.xlane.xlu1 %469  ;;  %v467_v32 = vpop.xlane.xlu0 %466 }
 0x131   :  { %v626_v60 = vmul.f32 0.015625, %v470_v58  ;;  %v625_v61 = vmul.f32 0.015625, %v467_v32  ;;  %v904_v2 = vsel %vm903_vm14, %v902_v57, %v897_v54 }
 0x132   :  { %v4396_v29 = vsel %vm910_vm15, %v909_v39, %v904_v2 }
 0x133   :  { %v919_v26 = vrot.slane %v626_v60, %v3849_v19  ;;  %v915_v5 = vrot.slane %v625_v61, %v3843_v16 }
 0x134   :  { %v476_v4 = vpop.xlane.xlu1 %475  ;;  %v473_v6 = vpop.xlane.xlu0 %472 }
 0x135   :  { %v920_v12 = vsel %vm812_vm1, %v919_v26, %v915_v5  ;;  %v628_v8 = vmul.f32 0.015625, %v476_v4  ;;  %v627_v50 = vmul.f32 0.015625, %v473_v6 }
 0x137   :  { %v929_v9 = vrot.slane %v628_v8, %v3846_v18  ;;  %v924_v10 = vrot.slane %v627_v50, %v3852_v20 }
 0x138   :  { %v482_v13 = vpop.xlane.xlu1 %481  ;;  %v479_v14 = vpop.xlane.xlu0 %478 }
 0x139   :  { %v925_v15 = vsel %vm819_vm2, %v924_v10, %v920_v12  ;;  %v630_v17 = vmul.f32 0.015625, %v482_v13  ;;  %v629_v55 = vmul.f32 0.015625, %v479_v14 }
 0x13a   :  { %v930_v21 = vsel %vm826_vm3, %v929_v9, %v925_v15 }
 0x13b   :  { %v939_v22 = vrot.slane %v630_v17, %v3863_v30  ;;  %v934_v24 = vrot.slane %v629_v55, %v3866_v31 }
 0x13c   :  { %v488_v11 = vpop.xlane.xlu1 %487  ;;  %v485_v1 = vpop.xlane.xlu0 %484 }
 0x13d   :  { %v935_v25 = vsel %vm833_vm4, %v934_v24, %v930_v21  ;;  %v632_v34 = vmul.f32 0.015625, %v488_v11  ;;  %v631_v35 = vmul.f32 0.015625, %v485_v1  ;;  %v1688_v1 = vld [vmem:[%s5596_s5 + $0x8] sm:$0xff] }
 0x13e   :  { %v940_v36 = vsel %vm840_vm5, %v939_v22, %v935_v25  ;;  %v1690_v25 = vld [vmem:[%s5596_s5 + $0x18] sm:$0xff] }
 0x13f   :  { %v949_v37 = vrot.slane %v632_v34, %v3885_v48  ;;  %v944_v33 = vrot.slane %v631_v35, %v3888_v49  ;;  %v1803_v34 = vld [vmem:[%s5597_s6 + $0x8] sm:$0xff] }
 0x140   :  { %v494_v38 = vpop.xlane.xlu1 %493  ;;  %v491_v42 = vpop.xlane.xlu0 %490 }
 0x141   :  { %v945_v43 = vsel %vm847_vm6, %v944_v33, %v940_v36  ;;  %v634_v47 = vmul.f32 0.015625, %v494_v38  ;;  %v633_v28 = vmul.f32 0.015625, %v491_v42  ;;  %v1805_v33 = vld [vmem:[%s5597_s6 + $0x18] sm:$0xff]  ;;  %v1802_v42 = vld [vmem:[%s5597_s6] sm:$0xff] }
 0x142   :  { %v950_v44 = vsel %vm854_vm7, %v949_v37, %v945_v43  ;;  %v3265_v37 = vpack.c.bf16 %v1690_v25, %v1688_v1  ;;  %v3297_v38 = vpack.c.bf16 %v1805_v33, %v1803_v34  ;;  %v1804_v43 = vld [vmem:[%s5597_s6 + $0x10] sm:$0xff]  ;;  %v1810_v1 = vld [vmem:[%s5597_s6 + $0x40] sm:$0xff] }
 0x143   :  { %v959_v46 = vrot.slane %v634_v47, %v3906_v3  ;;  %v954_v56 = vrot.slane %v633_v28, %v3912_v7  ;;  %v1812_v25 = vld [vmem:[%s5597_s6 + $0x50] sm:$0xff] }
 0x144   :  { %v500_v51 = vpop.xlane.xlu1 %499  ;;  %v497_v40 = vpop.xlane.xlu0 %496  ;;  %3266 = vmatprep.subr.bf16.mxu0 %v3265_v37  ;;  %3298 = vmatprep.subr.bf16.mxu1 %v3297_v38  ;;  %v1815_v38 = vld [vmem:[%s5597_s6 + $0x68] sm:$0xff] }
 0x145   :  { %v955_v52 = vsel %vm861_vm8, %v954_v56, %v950_v44  ;;  %v636_v63 = vmul.f32 0.015625, %v500_v51  ;;  %v635_v53 = vmul.f32 0.015625, %v497_v40  ;;  %v1807_v56 = vld [vmem:[%s5597_s6 + $0x28] sm:$0xff]  ;;  %v1809_v51 = vld [vmem:[%s5597_s6 + $0x38] sm:$0xff] }
 0x146   :  { %v960_v54 = vsel %vm868_vm9, %v959_v46, %v955_v52  ;;  %v3299_v46 = vpack.c.bf16 %v1804_v43, %v1802_v42 }
 0x147   :  { %v969_v39 = vrot.slane %v636_v63, %v3932_v27  ;;  %v964_v57 = vrot.slane %v635_v53, %v3926_v23  ;;  %v3301_v63 = vpack.c.bf16 %v1809_v51, %v1807_v56  ;;  %v1806_v53 = vld [vmem:[%s5597_s6 + $0x20] sm:$0xff] }
 0x148   :  { %v4419_v58 = vpop.xlane.xlu1 %505  ;;  %v4421_v32 = vpop.xlane.xlu0 %502  ;;  %3300 = vmatpush1.bf16.msra.mxu1 %v3299_v46  ;;  %v1814_v51 = vld [vmem:[%s5597_s6 + $0x60] sm:$0xff] }
 0x149   :  { %v965_v60 = vsel %vm875_vm10, %v964_v57, %v960_v54  ;;  %v1808_v57 = vld [vmem:[%s5597_s6 + $0x30] sm:$0xff]  ;;  %3302 = vmatprep.subr.bf16.mxu1 %v3301_v63  ;;  %v1819_v63 = vld [vmem:[%s5597_s6 + $0x88] sm:$0xff] }
 0x14a   :  { %v4425_v61 = vsel %vm882_vm11, %v969_v39, %v965_v60 }
 0x14c   :  { %v4427_v2 = vpop.xlane.xlu1 %511  ;;  %v4429_v26 = vpop.xlane.xlu0 %508 }
 0x150   :  { %v518_v5 = vpop.xlane.xlu1 %517  ;;  %v515_v4 = vpop.xlane.xlu0 %514 }
 0x151   :  { %v642_v22 = vmul.f32 0.015625, %v518_v5  ;;  %v641_v24 = vmul.f32 0.015625, %v515_v4  ;;  %v3303_v4 = vpack.c.bf16 %v1808_v57, %v1806_v53  ;;  %v1821_v53 = vld [vmem:[%s5597_s6 + $0x98] sm:$0xff] }
 0x153   :  { %v998_v47 = vrot.slane %v642_v22, %v3849_v19  ;;  %v994_v28 = vrot.slane %v641_v24, %v3843_v16  ;;  %3304 = vmatpush1.bf16.msra.mxu1 %v3303_v4 }
 0x154   :  { %v524_v6 = vpop.xlane.xlu1 %523  ;;  %v521_v12 = vpop.xlane.xlu0 %520 }
 0x155   :  { %v643_v11 = vmul.f32 0.015625, %v521_v12  ;;  %v644_v44 = vmul.f32 0.015625, %v524_v6  ;;  %v1811_v6 = vld [vmem:[%s5597_s6 + $0x48] sm:$0xff]  ;;  %v1813_v12 = vld [vmem:[%s5597_s6 + $0x58] sm:$0xff] }
 0x157   :  { %v1003_v40 = vrot.slane %v643_v11, %v3852_v20  ;;  %v1008_v22 = vrot.slane %v644_v44, %v3846_v18  ;;  %v3305_v11 = vpack.c.bf16 %v1813_v12, %v1811_v6  ;;  %v1817_v44 = vld [vmem:[%s5597_s6 + $0x78] sm:$0xff] }
 0x158   :  { %v530_v8 = vpop.xlane.xlu1 %529  ;;  %v527_v50 = vpop.xlane.xlu0 %526 }
 0x159   :  { %v645_v52 = vmul.f32 0.015625, %v527_v50  ;;  %v999_v50 = vsel %vm812_vm1, %v998_v47, %v994_v28  ;;  %v646_v24 = vmul.f32 0.015625, %v530_v8  ;;  %v3307_v28 = vpack.c.bf16 %v1812_v25, %v1810_v1  ;;  %3306 = vmatprep.subr.bf16.mxu1 %v3305_v11 }
 0x15a   :  { %v1004_v34 = vsel %vm819_vm2, %v1003_v40, %v999_v50  ;;  %v3313_v11 = vpack.c.bf16 %v1821_v53, %v1819_v63 }
 0x15b   :  { %v1013_v37 = vrot.slane %v645_v52, %v3866_v31  ;;  %v1009_v40 = vsel %vm826_vm3, %v1008_v22, %v1004_v34  ;;  %3308 = vmatpush1.bf16.msra.mxu1 %v3307_v28  ;;  %v1823_v34 = vld [vmem:[%s5597_s6 + $0xa8] sm:$0xff] }
 0x15c   :  { %v4431_v9 = vpop.xlane.xlu1 %535  ;;  %v533_v10 = vpop.xlane.xlu0 %532 }
 0x15d   :  { %v647_v33 = vmul.f32 0.015625, %v533_v10  ;;  %v3309_v10 = vpack.c.bf16 %v1817_v44, %v1815_v38  ;;  %v648_v52 = vmul.f32 0.015625, %v4431_v9 }
 0x15f   :  { %3310 = vmatprep.subr.bf16.mxu1 %v3309_v10 }
 0x160   :  { %v4433_v13 = vpop.xlane.xlu1 %541  ;;  %v4435_v14 = vpop.xlane.xlu0 %538 }
 0x161   :  { %v649_v57 = vmul.f32 0.015625, %v4435_v14  ;;  %v1818_v14 = vld [vmem:[%s5597_s6 + $0x80] sm:$0xff]  ;;  %v650_v25 = vmul.f32 0.015625, %v4433_v13 }
 0x163   :  { %v1033_v38 = vrot.slane %v649_v57, %v3912_v7 }
 0x164   :  { %v4437_v15 = vpop.xlane.xlu1 %547  ;;  %v4439_v17 = vpop.xlane.xlu0 %544 }
 0x168   :  { %v4441_v55 = vpop.xlane.xlu1 %553  ;;  %v4443_v21 = vpop.xlane.xlu0 %550 }
 0x169   :  { %v653_v53 = vmul.f32 0.015625, %v4443_v21 }
 0x16c   :  { %v4454_v35 = vpop.xlane.xlu1 %559  ;;  %v4456_v36 = vpop.xlane.xlu0 %556 }
 0x170   :  { %v566_v54 = vpop.xlane.xlu1 %565  ;;  %v563_v39 = vpop.xlane.xlu0 %562 }
 0x171   :  { %v658_v60 = vmul.f32 0.015625, %v566_v54  ;;  %v657_v5 = vmul.f32 0.015625, %v563_v39  ;;  %v1014_v54 = vsel %vm833_vm4, %v1013_v37, %v1009_v40  ;;  %v1023_v39 = vrot.slane %v647_v33, %v3888_v49  ;;  %v1825_v37 = vld [vmem:[%s5597_s6 + $0xb8] sm:$0xff] }
 0x172   :  { %v652_v40 = vmul.f32 0.015625, %v4437_v15 }
 0x173   :  { %v1077_v8 = vrot.slane %v658_v60, %v3849_v19  ;;  %v1073_v42 = vrot.slane %v657_v5, %v3843_v16  ;;  %v1816_v16 = vld [vmem:[%s5597_s6 + $0x70] sm:$0xff]  ;;  %v1018_v19 = vrot.slane %v646_v24, %v3863_v30 }
 0x174   :  { %v569_v43 = vpop.xlane.xlu0 %568  ;;  %v572_v47 = vpop.xlane.xlu1 %571  ;;  %v3311_v12 = vpack.c.bf16 %v1816_v16, %v1814_v51  ;;  %v3317_v51 = vpack.c.bf16 %v1825_v37, %v1823_v34  ;;  %v655_v34 = vmul.f32 0.015625, %v4456_v36  ;;  %v656_v36 = vmul.f32 0.015625, %v4454_v35 }
 0x175   :  { %v659_v46 = vmul.f32 0.015625, %v569_v43  ;;  %v660_v56 = vmul.f32 0.015625, %v572_v47  ;;  %v1078_v5 = vsel %vm812_vm1, %v1077_v8, %v1073_v42  ;;  %v1019_v1 = vsel %vm840_vm5, %v1018_v19, %v1014_v54 }
 0x176   :  { %v1024_v33 = vsel %vm847_vm6, %v1023_v39, %v1019_v1  ;;  %v651_v8 = vmul.f32 0.015625, %v4439_v17  ;;  %3312 = vmatpush1.bf16.msra.mxu1 %v3311_v12  ;;  %v1822_v17 = vld [vmem:[%s5597_s6 + $0xa0] sm:$0xff]  ;;  %v637_v12 = vmul.f32 0.015625, %v4421_v32 }
 0x177   :  { %v1082_v60 = vrot.slane %v659_v46, %v3852_v20  ;;  %v1087_v9 = vrot.slane %v660_v56, %v3846_v18  ;;  %v1820_v20 = vld [vmem:[%s5597_s6 + $0x90] sm:$0xff]  ;;  %v1028_v18 = vrot.slane %v648_v52, %v3885_v48  ;;  %3314 = vmatprep.subr.bf16.mxu1 %v3313_v11 }
 0x178   :  { %v575_v4 = vpop.xlane.xlu0 %574  ;;  %v578_v6 = vpop.xlane.xlu1 %577  ;;  %v3315_v44 = vpack.c.bf16 %v1820_v20, %v1818_v14  ;;  %v1043_v52 = vrot.slane %v651_v8, %v3926_v23 }
 0x179   :  { %v1083_v50 = vsel %vm819_vm2, %v1082_v60, %v1078_v5  ;;  %v661_v22 = vmul.f32 0.015625, %v575_v4  ;;  %v662_v24 = vmul.f32 0.015625, %v578_v6  ;;  %v1029_v16 = vsel %vm854_vm7, %v1028_v18, %v1024_v33 }
 0x17a   :  { %v1088_v43 = vsel %vm826_vm3, %v1087_v9, %v1083_v50  ;;  %v1034_v19 = vsel %vm861_vm8, %v1033_v38, %v1029_v16  ;;  %3316 = vmatpush1.bf16.msra.mxu1 %v3315_v44  ;;  %v1063_v44 = vrot.slane %v655_v34, %v3966_v59  ;;  %v1704_v34 = vld [vmem:[%s5596_s5 + $0x88] sm:$0xff] }
 0x17b   :  { %v1092_v42 = vrot.slane %v661_v22, %v3866_v31  ;;  %v1097_v13 = vrot.slane %v662_v24, %v3863_v30  ;;  %v1824_v31 = vld [vmem:[%s5597_s6 + $0xb0] sm:$0xff]  ;;  %v1038_v30 = vrot.slane %v650_v25, %v3906_v3  ;;  %3318 = vmatprep.subr.bf16.mxu1 %v3317_v51  ;;  %v1053_v22 = vrot.slane %v653_v53, %v3946_v41  ;;  %v1687_v53 = vld [vmem:[%s5596_s5] sm:$0xff] }
 0x17c   :  { %v581_v47 = vpop.xlane.xlu0 %580  ;;  %v584_v28 = vpop.xlane.xlu1 %583  ;;  %v3319_v5 = vpack.c.bf16 %v1824_v31, %v1822_v17  ;;  %v638_v25 = vmul.f32 0.015625, %v4419_v58 }
 0x17d   :  { %v1093_v46 = vsel %vm833_vm4, %v1092_v42, %v1088_v43  ;;  %v663_v56 = vmul.f32 0.015625, %v581_v47  ;;  %v664_v10 = vmul.f32 0.015625, %v584_v28  ;;  %v1039_v15 = vsel %vm868_vm9, %v1038_v30, %v1034_v19 }
 0x17e   :  { %v1098_v54 = vsel %vm840_vm5, %v1097_v13, %v1093_v46  ;;  %v1044_v21 = vsel %vm875_vm10, %v1043_v52, %v1039_v15  ;;  %3320 = vmatpush1.bf16.msra.mxu1 %v3319_v5  ;;  %v979_v28 = vrot.slane %v638_v25, %v3952_v45  ;;  %v1068_v30 = vrot.slane %v656_v36, %v3971_v62  ;;  %v1701_v25 = vld [vmem:[%s5596_s5 + $0x70] sm:$0xff] }
 0x17f   :  { %v1102_v63 = vrot.slane %v663_v56, %v3888_v49  ;;  %v1107_v39 = vrot.slane %v664_v10, %v3885_v48  ;;  %v1048_v49 = vrot.slane %v652_v40, %v3932_v27  ;;  %v654_v48 = vmul.f32 0.015625, %v4441_v55  ;;  %v1709_v36 = vld [vmem:[%s5596_s5 + $0xb0] sm:$0xff] }
 0x180   :  { %v587_v57 = vpop.xlane.xlu0 %586  ;;  %v590_v60 = vpop.xlane.xlu1 %589  ;;  %v639_v55 = vmul.f32 0.015625, %v4429_v26 }
 0x181   :  { %v1103_v9 = vsel %vm847_vm6, %v1102_v63, %v1098_v54  ;;  %v665_v4 = vmul.f32 0.015625, %v587_v57  ;;  %v666_v6 = vmul.f32 0.015625, %v590_v60  ;;  %v1049_v37 = vsel %vm882_vm11, %v1048_v49, %v1044_v21  ;;  %v1689_v54 = vld [vmem:[%s5596_s5 + $0x10] sm:$0xff]  ;;  %v1692_v57 = vld [vmem:[%s5596_s5 + $0x28] sm:$0xff] }
 0x182   :  { %v1108_v24 = vsel %vm854_vm7, %v1107_v39, %v1103_v9  ;;  %v1054_v38 = vsel %vm889_vm12, %v1053_v22, %v1049_v37  ;;  %v984_v56 = vrot.slane %v639_v55, %v3966_v59  ;;  %v1693_v49 = vld [vmem:[%s5596_s5 + $0x30] sm:$0xff] }
 0x183   :  { %v1112_v50 = vrot.slane %v665_v4, %v3912_v7  ;;  %v1117_v11 = vrot.slane %v666_v6, %v3906_v3  ;;  %v974_v7 = vrot.slane %v637_v12, %v3946_v41  ;;  %v1058_v3 = vrot.slane %v654_v48, %v3952_v45  ;;  %v1691_v12 = vld [vmem:[%s5596_s5 + $0x20] sm:$0xff]  ;;  %v1698_v48 = vld [vmem:[%s5596_s5 + $0x58] sm:$0xff] }
 0x184   :  { %v593_v14 = vpop.xlane.xlu0 %592  ;;  %v596_v20 = vpop.xlane.xlu1 %595  ;;  %v3267_v4 = vpack.c.bf16 %v1689_v54, %v1687_v53  ;;  %v3271_v22 = vpack.c.bf16 %v1693_v49, %v1691_v12  ;;  %v1830_v53 = vld [vmem:[%s5597_s6 + $0xe0] sm:$0xff]  ;;  %v1832_v54 = vld [vmem:[%s5597_s6 + $0xf0] sm:$0xff]  ;;  %v1723_v12 = vsub.s32 0, %v3820_v0 }
 0x185   :  { %v1113_v18 = vsel %vm861_vm8, %v1112_v50, %v1108_v24  ;;  %v667_v32 = vmul.f32 0.015625, %v593_v14  ;;  %v668_v1 = vmul.f32 0.015625, %v596_v20  ;;  %v975_v46 = vsel %vm889_vm12, %v974_v7, %v4425_v61  ;;  %v1696_v50 = vld [vmem:[%s5596_s5 + $0x48] sm:$0xff]  ;;  %v1702_v20 = vld [vmem:[%s5596_s5 + $0x78] sm:$0xff]  ;;  %v1719_v49 = vld [vmem:[%s5599_s7] sm:$0x3] }
 0x186   :  { %v1118_v8 = vsel %vm868_vm9, %v1117_v11, %v1113_v18  ;;  %v1059_v31 = vsel %vm896_vm13, %v1058_v3, %v1054_v38  ;;  %v980_v40 = vsel %vm896_vm13, %v979_v28, %v975_v46  ;;  %v3273_v24 = vpack.c.bf16 %v1698_v48, %v1696_v50  ;;  %v1695_v11 = vld [vmem:[%s5596_s5 + $0x40] sm:$0xff]  ;;  %v1700_v14 = vld [vmem:[%s5596_s5 + $0x68] sm:$0xff]  ;;  %v1706_v7 = vld [vmem:[%s5596_s5 + $0x98] sm:$0xff] }
 0x187   :  { %v1122_v33 = vrot.slane %v667_v32, %v3926_v23  ;;  %v1127_v42 = vrot.slane %v668_v1, %v3932_v27  ;;  %v640_v23 = vmul.f32 0.015625, %v4427_v2  ;;  %v985_v63 = vsel %vm903_vm14, %v984_v56, %v980_v40  ;;  %v1699_v1 = vld [vmem:[%s5596_s5 + $0x60] sm:$0xff]  ;;  %v1705_v3 = vld [vmem:[%s5596_s5 + $0x90] sm:$0xff]  ;;  %v1708_v38 = vld [vmem:[%s5596_s5 + $0xa8] sm:$0xff] }
 0x188   :  { %v599_v43 = vpop.xlane.xlu0 %598  ;;  %v602_v58 = vpop.xlane.xlu1 %601  ;;  %v3277_v32 = vpack.c.bf16 %v1702_v20, %v1700_v14  ;;  %v3279_v55 = vpack.c.bf16 %v1701_v25, %v1699_v1  ;;  %v3281_v37 = vpack.c.bf16 %v1706_v7, %v1704_v34  ;;  %v1827_v28 = vld [vmem:[%s5597_s6 + $0xc8] sm:$0xff]  ;;  %v1829_v46 = vld [vmem:[%s5597_s6 + $0xd8] sm:$0xff]  ;;  %v1711_v56 = vld [vmem:[%s5596_s5 + $0xc0] sm:$0xff]  ;;  %v1727_v50 = vsub.s32 1, %v3820_v0 }
 0x189   :  { %v1123_v13 = vsel %vm875_vm10, %v1122_v33, %v1118_v8  ;;  %v669_v47 = vmul.f32 0.015625, %v599_v43  ;;  %v670_v26 = vmul.f32 0.015625, %v602_v58  ;;  %v989_v61 = vrot.slane %v640_v23, %v3971_v62  ;;  %v1703_v33 = vld [vmem:[%s5596_s5 + $0x80] sm:$0xff]  ;;  %v1710_v8 = vld [vmem:[%s5596_s5 + $0xb8] sm:$0xff] }
 0x18a   :  { %v1128_v10 = vsel %vm882_vm11, %v1127_v42, %v1123_v13  ;;  %v3283_v42 = vpack.c.bf16 %v1705_v3, %v1703_v33  ;;  %v3285_v43 = vpack.c.bf16 %v1710_v8, %v1708_v38  ;;  %v1707_v58 = vld [vmem:[%s5596_s5 + $0xa0] sm:$0xff]  ;;  %v1724_v48 = vrot.slane %v1719_v49, %v1723_v12 }
 0x18b   :  { %v1132_v27 = vrot.slane %v669_v47, %v3946_v41  ;;  %v1137_v35 = vrot.slane %v670_v26, %v3952_v45  ;;  %v1064_v41 = vsel %vm903_vm14, %v1063_v44, %v1059_v31  ;;  %v990_v5 = vsel %vm910_vm15, %v989_v61, %v985_v63  ;;  %v1712_v47 = vld [vmem:[%s5596_s5 + $0xc8] sm:$0xff]  ;;  %v1714_v26 = vld [vmem:[%s5596_s5 + $0xd8] sm:$0xff]  ;;  %v1828_v31 = vld [vmem:[%s5597_s6 + $0xd0] sm:$0xff] }
 0x18c   :  { %v605_v51 = vpop.xlane.xlu0 %604  ;;  %v608_v17 = vpop.xlane.xlu1 %607  ;;  %v1069_v60 = vsel %vm910_vm15, %v1068_v30, %v1064_v41  ;;  %v3287_v13 = vpack.c.bf16 %v1709_v36, %v1707_v58  ;;  %v3289_v44 = vpack.c.bf16 %v1714_v26, %v1712_v47  ;;  %v1831_v61 = vld [vmem:[%s5597_s6 + $0xe8] sm:$0xff]  ;;  %v1833_v41 = vld [vmem:[%s5597_s6 + $0xf8] sm:$0xff]  ;;  %v1717_v63 = vld [vmem:[%s5596_s5 + $0xf0] sm:$0xff] }
 0x18d   :  { %v1133_v2 = vsel %vm889_vm12, %v1132_v27, %v1128_v10  ;;  %v671_v16 = vmul.f32 0.015625, %v605_v51  ;;  %v672_v19 = vmul.f32 0.015625, %v608_v17  ;;  %v1150_v21 = vsel %vm1149_vm0, %v1069_v60, %v4396_v29  ;;  %v1697_v29 = vld [vmem:[%s5596_s5 + $0x50] sm:$0xff]  ;;  %v1826_v17 = vld [vmem:[%s5597_s6 + $0xc0] sm:$0xff] }
 0x18e   :  { %v1138_v39 = vsel %vm896_vm13, %v1137_v35, %v1133_v2  ;;  %v3275_v18 = vpack.c.bf16 %v1697_v29, %v1695_v11  ;;  %v1713_v27 = vld [vmem:[%s5596_s5 + $0xd0] sm:$0xff]  ;;  %v3321_v35 = vpack.c.bf16 %v1829_v46, %v1827_v28  ;;  %v3323_v2 = vpack.c.bf16 %v1828_v31, %v1826_v17 }
 0x18f   :  { %v1142_v52 = vrot.slane %v671_v16, %v3966_v59  ;;  %v1147_v45 = vrot.slane %v672_v19, %v3971_v62  ;;  %v1694_v59 = vld [vmem:[%s5596_s5 + $0x38] sm:$0xff]  ;;  %v3291_v51 = vpack.c.bf16 %v1713_v27, %v1711_v56  ;;  %v1716_v16 = vld [vmem:[%s5596_s5 + $0xe8] sm:$0xff] }
 0x190   :  { %v3269_v15 = vpack.c.bf16 %v1694_v59, %v1692_v57  ;;  %3322 = vmatprep.subr.bf16.mxu1 %v3321_v35  ;;  %v1718_v19 = vld [vmem:[%s5596_s5 + $0xf8] sm:$0xff]  ;;  %v3327_v57 = vpack.c.bf16 %v1832_v54, %v1830_v53  ;;  %v3381_v59 = vmov 0.0   ;;  %v3382_v35 = vmov 1  }
 0x191   :  { %v1143_v62 = vsel %vm903_vm14, %v1142_v52, %v1138_v39  ;;  %3324 = vmatpush1.bf16.msra.mxu1 %v3323_v2  ;;  %v3293_v40 = vpack.c.bf16 %v1718_v19, %v1716_v16  ;;  %v1715_v52 = vld [vmem:[%s5596_s5 + $0xe0] sm:$0xff]  ;;  %1910 = vmatprep.mubr.f32.mxu1 %v3381_v59 }
 0x192   :  { %v1148_v9 = vsel %vm910_vm15, %v1147_v45, %v1143_v62  ;;  %v3325_v45 = vpack.c.bf16 %v1833_v41, %v1831_v61  ;;  %v3295_v39 = vpack.c.bf16 %v1717_v63, %v1715_v52 }
 0x193   :  { %v1151_v6 = vsel %vm1149_vm0, %v1148_v9, %v990_v5  ;;  %v3034_v9 = vld [vmem:[%s5598_s4] ss:$0 sm:$0xff]  ;;  %vm5603_vm0 = vcmask 523264  }
 0x194   :  { %1218 = vmatprep.mubr.f32.mxu0 %v1151_v6  ;;  %3326 = vmatprep.subr.bf16.mxu1 %v3325_v45  ;;  %vm5604_vm1 = vmmov %vm5603_vm0 }
 0x195   :  { %1219 = vmatmul.mubr.f32.vlgmr.msra.gmra.mrb[0].mxu0 %v1150_v21  ;;  %3328 = vmatpush1.bf16.msra.mxu1 %v3327_v57  ;;  %v1834_v21 = vld [vmem:[%s5600_s8] sm:$0x3]  ;;  %vm5605_vm2 = vmmov %vm5603_vm0 }
 0x196   :  { %3268 = vmatpush1.bf16.msra.mxu0 %v3267_v4  ;;  %1795 = vmatprep.mubr.f32.mxu0 %v3381_v59  ;;  %v1843_v11 = vrot.slane %v1834_v21, %v1727_v50  ;;  %vm5606_vm3 = vmmov %vm5603_vm0 }
 0x197   :  { %3270 = vmatprep.subr.bf16.mxu0 %v3269_v15  ;;  %vm5607_vm4 = vmmov %vm5603_vm0 }
 0x198   :  { %vm5608_vm5 = vmmov %vm5603_vm0 }
 0x199   :  { %vm5609_vm6 = vmmov %vm5603_vm0 }
 0x19a   :  { %3272 = vmatpush1.bf16.msra.mxu0 %v3271_v22  ;;  %v1839_v22 = vrot.slane %v1834_v21, %v1723_v12  ;;  %vm5610_vm7 = vmmov %vm5603_vm0 }
 0x19b   :  { %3274 = vmatprep.subr.bf16.mxu0 %v3273_v24  ;;  %v1728_v24 = vrot.slane %v1719_v49, %v1727_v50  ;;  %vm5611_vm8 = vmmov %vm5603_vm0 }
 0x19c   :  { %vm5612_vm9 = vmmov %vm5603_vm0 }
 0x19d   :  { %vm5613_vm10 = vmmov %vm5603_vm0 }
 0x19e   :  { %3276 = vmatpush1.bf16.msra.mxu0 %v3275_v18  ;;  %vm5614_vm11 = vmmov %vm5603_vm0 }
 0x19f   :  { %3278 = vmatprep.subr.bf16.mxu0 %v3277_v32  ;;  %vm5615_vm12 = vmmov %vm5603_vm0 }
 0x1a0   :  { %vm5616_vm13 = vmmov %vm5603_vm0 }
 0x1a1   :  { %vm5617_vm14 = vmmov %vm5603_vm0 }
 0x1a2   :  { %3280 = vmatpush1.bf16.msra.mxu0 %v3279_v55  ;;  %vm5618_vm15 = vmmov %vm5603_vm0 }
 0x1a3   :  { %3282 = vmatprep.subr.bf16.mxu0 %v3281_v37 }
 0x1a6   :  { %3284 = vmatpush1.bf16.msra.mxu0 %v3283_v42 }
 0x1a7   :  { %3286 = vmatprep.subr.bf16.mxu0 %v3285_v43 }
 0x1aa   :  { %3288 = vmatpush1.bf16.msra.mxu0 %v3287_v13 }
 0x1ab   :  { %3290 = vmatprep.subr.bf16.mxu0 %v3289_v44 }
 0x1ae   :  { %3292 = vmatpush1.bf16.msra.mxu0 %v3291_v51  ;;  %v3383_v51 = vmov 0  }
 0x1af   :  { %3294 = vmatprep.subr.bf16.mxu0 %v3293_v40 }
 0x1b2   :  { %3296 = vmatpush1.bf16.msra.mxu0 %v3295_v39 }
 0x1e8   :  { %v3198_v23 = vpop.f32.mrb[0].mxu1 }
 0x1e9   :  { %v3199_v10 = vpop.f32.mrb[1].mxu1 }
 0x1ea   :  { %v3200_v30 = vadd.f32 %v3199_v10, %v3198_v23 }
 0x268   :  { %v3163_v62 = vpop.f32.mrb[0].mxu0 }
 0x269   :  { %v3164_v60 = vpop.f32.mrb[1].mxu0 }
 0x26a   :  { %v3165_v5 = vadd.f32 %v3164_v60, %v3163_v62 }
 0x26c   :  { %v1675_v4 = vadd.f32 %v3200_v30, %v3165_v5 }
 0x26e   :  { %v1685_v6 = vadd.f32 %v3034_v9, %v1675_v4 }
 0x270   :  { %v1686_v15 = vmax.f32 %v1685_v6, 0.0 }
 0x272   :  { %1796 = vmatmul.mubr.f32.vlgmr.msra.gmra.mrb[2].mxu0 %v1686_v15  ;;  %1911 = vmatmul.mubr.f32.vlgmr.msra.gmra.mrb[2].mxu1 %v1686_v15 }
 0x345   :  { %v1797_v29 = vpop.f32.mrb[2].mxu0  ;;  %v1912_v14 = vpop.f32.mrb[2].mxu1 }
 0x346   :  { %v1798_v20 = vadd.f32 %v1797_v29, %v1724_v48  ;;  %v1913_v18 = vadd.f32 %v1912_v14, %v1839_v22  ;;  %v1799_v32 = vpop.f32.mrb[3].mxu0  ;;  %v1914_v1 = vpop.f32.mrb[3].mxu1 }
 0x347   :  { %v1800_v25 = vadd.f32 %v1799_v32, %v1728_v24  ;;  %v1915_v34 = vadd.f32 %v1914_v1, %v1843_v11 }
 0x348   :  { %v1917_v7 = vmax.f32 %v1798_v20, %v1913_v18 }
 0x349   :  { %v1918_v55 = vmax.f32 %v1800_v25, %v1915_v34 }
 0x34a   :  { %v1919_v37 = vsub.f32 %v1798_v20, %v1917_v7  ;;  %v1925_v33 = vsub.f32 %v1913_v18, %v1917_v7 }
 0x34b   :  { %v1920_v3 = vsub.f32 %v1800_v25, %v1918_v55  ;;  %v1926_v38 = vsub.f32 %v1915_v34, %v1918_v55 }
 0x34c   :  { %v1921_v8 = vmul.f32 1.442695, %v1919_v37  ;;  %v1927_v0 = vmul.f32 1.442695, %v1925_v33 }
 0x34d   :  { %v1923_v42 = vmul.f32 1.442695, %v1920_v3  ;;  %v1929_v43 = vmul.f32 1.442695, %v1926_v38 }
 0x34e   :  { %3369 = vpow2.f32 %v1921_v8 }
 0x34f   :  { %3371 = vpow2.f32 %v1927_v0 }
 0x350   :  { %3373 = vpow2.f32 %v1923_v42 }
 0x351   :  { %3375 = vpow2.f32 %v1929_v43 }
 0x358   :  { %v3370_v58 = vpop.eup %3369 }
 0x359   :  { %v3372_v36 = vpop.eup %3371 }
 0x35a   :  { %v3374_v13 = vpop.eup %3373  ;;  %v1931_v47 = vadd.f32 %v3372_v36, %v3370_v58 }
 0x35b   :  { %v3376_v26 = vpop.eup %3375 }
 0x35c   :  { %v1932_v28 = vadd.f32 %v3376_v26, %v3374_v13  ;;  %3377 = vrcp.f32 %v1931_v47 }
 0x35e   :  { %3379 = vrcp.f32 %v1932_v28 }
 0x366   :  { %v3378_v23 = vpop.eup %3377 }
 0x367   :  { %v1935_v44 = vmul.f32 %v3378_v23, %v3370_v58  ;;  %v2001_v46 = vmul.f32 %v3378_v23, %v3372_v36 }
 0x368   :  { %v3380_v56 = vpop.eup %3379 }
 0x369   :  { %1937 = vxpose.xlu0.b32.start.end [1/1] (short) %v1935_v44, 128  ;;  %v1936_v27 = vmul.f32 %v3380_v56, %v3374_v13  ;;  %v2002_v10 = vmul.f32 %v3380_v56, %v3376_v26 }
 0x36b   :  { %1969 = vxpose.xlu1.b32.start.end [1/1] (short) %v1936_v27, 128 }
 0x3a6   :  { %2003 = vxpose.xlu0.b32.start.end [1/1] (short) %v2001_v46, 128 }
 0x3a8   :  { %2035 = vxpose.xlu1.b32.start.end [1/1] (short) %v2002_v10, 128 }
 0x3c6   :  { %3334 = vset.pattern.permute.xlu1 %v3382_v35 }
 0x3cf   :  { %3332 = vset.pattern.permute.xlu0 %v3383_v51 }
 0x3e9   :  { %v1953_v17 = vpop.trf.xlu0 }
 0x3eb   :  { %v1985_v31 = vpop.trf.xlu1 }
 0x3ed   :  { %v1954_v30 = vpop.trf.xlu0 }
 0x3ef   :  { %v1986_v2 = vpop.trf.xlu1 }
 0x3f1   :  { %v1955_v16 = vpop.trf.xlu0 }
 0x3f3   :  { %v4741_v19 = vpop.trf.xlu1 }
 0x3f5   :  { %v4743_v61 = vpop.trf.xlu0 }
 0x3f7   :  { %v4745_v40 = vpop.trf.xlu1 }
 0x3f9   :  { %v4747_v41 = vpop.trf.xlu0 }
 0x3fb   :  { %v4749_v52 = vpop.trf.xlu1 }
 0x3fd   :  { %v4751_v45 = vpop.trf.xlu0 }
 0x3ff   :  { %v4753_v63 = vpop.trf.xlu1 }
 0x401   :  { %v4755_v53 = vpop.trf.xlu0 }
 0x403   :  { %v4757_v54 = vpop.trf.xlu1 }
 0x405   :  { %v4759_v39 = vpop.trf.xlu0 }
 0x407   :  { %v4761_v57 = vpop.trf.xlu1 }
 0x409   :  { %v4763_v59 = vpop.trf.xlu0 }
 0x40b   :  { %2133 = vperm.xlu0 %3332, %v1953_v17   ;;  %v4765_v62 = vpop.trf.xlu1 }
 0x40d   :  { %v4767_v60 = vpop.trf.xlu0 }
 0x40f   :  { %v4769_v5 = vpop.trf.xlu1 }
 0x411   :  { %v4771_v9 = vpop.trf.xlu0 }
 0x413   :  { %v4773_v4 = vpop.trf.xlu1 }
 0x415   :  { %v4775_v6 = vpop.trf.xlu0 }
 0x417   :  { %v4777_v15 = vpop.trf.xlu1 }
 0x419   :  { %v4779_v12 = vpop.trf.xlu0 }
 0x41b   :  { %v4781_v49 = vpop.trf.xlu1 }
 0x41d   :  { %v4783_v21 = vpop.trf.xlu0 }
 0x41f   :  { %v4785_v50 = vpop.trf.xlu1 }
 0x421   :  { %v4787_v48 = vpop.trf.xlu0 }
 0x423   :  { %v4789_v22 = vpop.trf.xlu1 }
 0x425   :  { %v4791_v24 = vpop.trf.xlu0 }
 0x427   :  { %v4793_v29 = vpop.trf.xlu1 }
 0x429   :  { %v2019_v11 = vpop.trf.xlu0 }
 0x42a   :  { %2806 = vperm.xlu1 %3334, %v2019_v11   ;;  %2325 = vperm.xlu0 %3332, %v2019_v11   ;;  %v3051_v11 = vld [vmem:[%s5592_s0 + $0x180] sm:$0xff] }
 0x42b   :  { %v2051_v14 = vpop.trf.xlu1 }
 0x42d   :  { %v2020_v20 = vpop.trf.xlu0 }
 0x42e   :  { %2710 = vperm.xlu1 %3334, %v1985_v31   ;;  %3333 = vset.pattern.permute.xlu0 %v3382_v35 }
 0x42f   :  { %2646 = vperm.xlu0 %3333, %v1953_v17   ;;  %v2052_v18 = vpop.trf.xlu1 }
 0x431   :  { %v2021_v32 = vpop.trf.xlu0 }
 0x432   :  { %2870 = vperm.xlu1 %3334, %v2051_v14  }
 0x433   :  { %3335 = vset.pattern.permute.xlu0 %v3383_v51  ;;  %v2053_v1 = vpop.trf.xlu1 }
 0x434   :  { %2213 = vperm.xlu0 %3335, %v1985_v31  }
 0x435   :  { %v2022_v25 = vpop.trf.xlu0 }
 0x436   :  { %3336 = vset.pattern.permute.xlu1 %v3383_v51 }
 0x437   :  { %2138 = vperm.xlu1 %3336, %v1954_v30   ;;  %v2054_v7 = vpop.trf.xlu1 }
 0x438   :  { %2405 = vperm.xlu0 %3335, %v2051_v14  }
 0x439   :  { %v2023_v34 = vpop.trf.xlu0 }
 0x43b   :  { %2330 = vperm.xlu1 %3336, %v2020_v20   ;;  %v2055_v37 = vpop.trf.xlu1 }
 0x43c   :  { %3338 = vset.pattern.permute.xlu0 %v3382_v35 }
 0x43d   :  { %2810 = vperm.xlu0 %3338, %v2020_v20   ;;  %v2024_v55 = vpop.trf.xlu0  ;;  %v3083_v20 = vld [vmem:[%s5594_s1 + $0x180] sm:$0xff] }
 0x43f   :  { %3337 = vset.pattern.permute.xlu1 %v3382_v35  ;;  %v2056_v33 = vpop.trf.xlu1 }
 0x440   :  { %2650 = vperm.xlu1 %3337, %v1954_v30  }
 0x441   :  { %2714 = vperm.xlu0 %3338, %v1986_v2   ;;  %v2025_v3 = vpop.trf.xlu0 }
 0x443   :  { %v2057_v38 = vpop.trf.xlu1 }
 0x444   :  { %3339 = vset.pattern.permute.xlu1 %v3383_v51 }
 0x445   :  { %2874 = vperm.xlu0 %3338, %v2052_v18   ;;  %2218 = vperm.xlu1 %3339, %v1986_v2   ;;  %v2026_v8 = vpop.trf.xlu0  ;;  %v2067_v2 = vld [vmem:[%s5592_s0] sm:$0xff] }
 0x447   :  { %v4815_v0 = vpop.trf.xlu1 }
 0x449   :  { %3340 = vset.pattern.permute.xlu0 %v3383_v51  ;;  %2410 = vperm.xlu1 %3339, %v2052_v18   ;;  %v4818_v42 = vpop.trf.xlu0 }
 0x44a   :  { %2335 = vperm.xlu0 %3340, %v2021_v32  }
 0x44b   :  { %v4822_v43 = vpop.trf.xlu1 }
 0x44d   :  { %2143 = vperm.xlu1 %3339, %v1955_v16   ;;  %v4824_v58 = vpop.trf.xlu0 }
 0x44e   :  { %2223 = vperm.xlu0 %3340, %v4741_v19  }
 0x44f   :  { %v4827_v36 = vpop.trf.xlu1 }
 0x451   :  { %3341 = vset.pattern.permute.xlu1 %v3382_v35  ;;  %v4829_v13 = vpop.trf.xlu0 }
 0x452   :  { %2654 = vperm.xlu1 %3341, %v1955_v16   ;;  %2415 = vperm.xlu0 %3340, %v2053_v1   ;;  %v2099_v16 = vld [vmem:[%s5594_s1] sm:$0xff] }
 0x453   :  { %v4834_v47 = vpop.trf.xlu1 }
 0x455   :  { %v4836_v26 = vpop.trf.xlu0 }
 0x456   :  { %2814 = vperm.xlu1 %3341, %v2021_v32   ;;  %3343 = vset.pattern.permute.xlu0 %v3382_v35 }
 0x457   :  { %2658 = vperm.xlu0 %3343, %v4743_v61   ;;  %v4840_v28 = vpop.trf.xlu1 }
 0x459   :  { %v4842_v23 = vpop.trf.xlu0 }
 0x45a   :  { %2718 = vperm.xlu1 %3341, %v4741_v19  }
 0x45b   :  { %2818 = vperm.xlu0 %3343, %v2022_v25   ;;  %v4845_v44 = vpop.trf.xlu1 }
 0x45d   :  { %v4848_v46 = vpop.trf.xlu0 }
 0x45e   :  { %2878 = vperm.xlu1 %3341, %v2053_v1  }
 0x45f   :  { %2722 = vperm.xlu0 %3343, %v4745_v40   ;;  %v4852_v56 = vpop.trf.xlu1 }
 0x461   :  { %v4854_v27 = vpop.trf.xlu0 }
 0x462   :  { %3342 = vset.pattern.permute.xlu1 %v3383_v51 }
 0x463   :  { %2148 = vperm.xlu1 %3342, %v4743_v61   ;;  %2882 = vperm.xlu0 %3343, %v2054_v7   ;;  %v4858_v10 = vpop.trf.xlu1 }
 0x465   :  { %v4861_v17 = vpop.trf.xlu0 }
 0x467   :  { %3344 = vset.pattern.permute.xlu0 %v3383_v51  ;;  %2340 = vperm.xlu1 %3342, %v2022_v25   ;;  %v4864_v31 = vpop.trf.xlu1 }
 0x468   :  { %2153 = vperm.xlu0 %3344, %v4747_v41  }
 0x46b   :  { %2228 = vperm.xlu1 %3342, %v4745_v40  }
 0x46c   :  { %2345 = vperm.xlu0 %3344, %v2023_v34  }
 0x46f   :  { %2420 = vperm.xlu1 %3342, %v2054_v7  }
 0x470   :  { %2233 = vperm.xlu0 %3344, %v4749_v52  }
 0x473   :  { %3345 = vset.pattern.permute.xlu1 %v3382_v35 }
 0x474   :  { %2662 = vperm.xlu1 %3345, %v4747_v41   ;;  %2425 = vperm.xlu0 %3344, %v2055_v37  }
 0x478   :  { %2822 = vperm.xlu1 %3345, %v2023_v34   ;;  %3347 = vset.pattern.permute.xlu0 %v3382_v35 }
 0x479   :  { %2666 = vperm.xlu0 %3347, %v4751_v45  }
 0x47c   :  { %2726 = vperm.xlu1 %3345, %v4749_v52   ;;  %v3067_v52 = vld [vmem:[%s5594_s1 + $0x100] sm:$0xff] }
 0x47d   :  { %2826 = vperm.xlu0 %3347, %v2024_v55  }
 0x480   :  { %2886 = vperm.xlu1 %3345, %v2055_v37  }
 0x481   :  { %2730 = vperm.xlu0 %3347, %v4753_v63  }
 0x484   :  { %3346 = vset.pattern.permute.xlu1 %v3383_v51 }
 0x485   :  { %2158 = vperm.xlu1 %3346, %v4751_v45   ;;  %2890 = vperm.xlu0 %3347, %v2056_v33  }
 0x489   :  { %3348 = vset.pattern.permute.xlu0 %v3383_v51  ;;  %2350 = vperm.xlu1 %3346, %v2024_v55   ;;  %v2115_v55 = vld [vmem:[%s5594_s1 + $0x80] sm:$0xff] }
 0x48a   :  { %2163 = vperm.xlu0 %3348, %v4755_v53   ;;  %v2134_v30 = vpop.permute.xlu0 %2133 }
 0x48b   :  { %v2291_v40 = vmul.f32 %v2134_v30, %v2067_v2 }
 0x48d   :  { %2238 = vperm.xlu1 %3346, %v4753_v63   ;;  %v3035_v63 = vld [vmem:[%s5592_s0 + $0x100] sm:$0xff] }
 0x48e   :  { %2355 = vperm.xlu0 %3348, %v2025_v3  }
 0x491   :  { %2430 = vperm.xlu1 %3346, %v2056_v33  }
 0x492   :  { %2243 = vperm.xlu0 %3348, %v4757_v54  }
 0x495   :  { %3349 = vset.pattern.permute.xlu1 %v3382_v35 }
 0x496   :  { %2670 = vperm.xlu1 %3349, %v4755_v53   ;;  %2435 = vperm.xlu0 %3348, %v2057_v38  }
 0x49a   :  { %2830 = vperm.xlu1 %3349, %v2025_v3   ;;  %3351 = vset.pattern.permute.xlu0 %v3382_v35 }
 0x49b   :  { %2674 = vperm.xlu0 %3351, %v4759_v39  }
 0x49e   :  { %2734 = vperm.xlu1 %3349, %v4757_v54  }
 0x49f   :  { %2834 = vperm.xlu0 %3351, %v2026_v8  }
 0x4a2   :  { %2894 = vperm.xlu1 %3349, %v2057_v38   ;;  %v2068_v38 = vld [vmem:[%s5592_s0 + $0x8] sm:$0xff] }
 0x4a3   :  { %2738 = vperm.xlu0 %3351, %v4761_v57  }
 0x4a6   :  { %3350 = vset.pattern.permute.xlu1 %v3383_v51 }
 0x4a7   :  { %2168 = vperm.xlu1 %3350, %v4759_v39   ;;  %2898 = vperm.xlu0 %3351, %v4815_v0  }
 0x4a9   :  { %v2807_v19 = vpop.permute.xlu1 %2806  ;;  %v2326_v61 = vpop.permute.xlu0 %2325 }
 0x4aa   :  { %v2483_v41 = vmul.f32 %v2326_v61, %v2099_v16  ;;  %v2933_v39 = vmul.f32 %v3067_v52, %v2807_v19 }
 0x4ab   :  { %3352 = vset.pattern.permute.xlu0 %v3383_v51  ;;  %2360 = vperm.xlu1 %3350, %v2026_v8  }
 0x4ac   :  { %v2515_v45 = vadd.f32 %v2483_v41, %v2291_v40  ;;  %2173 = vperm.xlu0 %3352, %v4763_v59   ;;  %v3068_v40 = vld [vmem:[%s5594_s1 + $0x108] sm:$0xff] }
 0x4ad   :  { %v2711_v53 = vpop.permute.xlu1 %2710  ;;  %v3036_v41 = vld [vmem:[%s5592_s0 + $0x108] sm:$0xff] }
 0x4ae   :  { %2547 = vst.msk [vmem:[%s5601_s9] sm:$0xff] %vm5603_vm0, %v2515_v45  ;;  %v2647_v54 = vpop.permute.xlu0 %2646  ;;  %v2789_v1 = vmul.f32 %v3051_v11, %v2711_v53 }
 0x4af   :  { %v2773_v14 = vmul.f32 %v3035_v63, %v2647_v54  ;;  %2248 = vperm.xlu1 %3350, %v4761_v57   ;;  %v2083_v57 = vld [vmem:[%s5592_s0 + $0x80] sm:$0xff]  ;;  %v3052_v54 = vld [vmem:[%s5592_s0 + $0x188] sm:$0xff] }
 0x4b0   :  { %2365 = vperm.xlu0 %3352, %v4818_v42  }
 0x4b1   :  { %v2965_v18 = vadd.f32 %v2933_v39, %v2773_v14  ;;  %v2871_v32 = vpop.permute.xlu1 %2870  ;;  %v3084_v39 = vld [vmem:[%s5594_s1 + $0x188] sm:$0xff] }
 0x4b2   :  { %v2949_v25 = vmul.f32 %v3083_v20, %v2871_v32  ;;  %v2116_v32 = vld [vmem:[%s5594_s1 + $0x88] sm:$0xff] }
 0x4b3   :  { %3099 = vst.msk [vmem:[%s5601_s9 + $0x100] sm:$0xff] %vm5604_vm1, %v2965_v18  ;;  %2440 = vperm.xlu1 %3350, %v4815_v0   ;;  %v2214_v34 = vpop.permute.xlu0 %2213  ;;  %v2100_v0 = vld [vmem:[%s5594_s1 + $0x8] sm:$0xff]  ;;  %vm5619_vm1 = vmmov %vm5603_vm0 }
 0x4b4   :  { %v2981_v7 = vadd.f32 %v2949_v25, %v2789_v1  ;;  %2253 = vperm.xlu0 %3352, %v4765_v62   ;;  %v2307_v3 = vmul.f32 %v2214_v34, %v2083_v57  ;;  %v2084_v18 = vld [vmem:[%s5592_s0 + $0x88] sm:$0xff] }
 0x4b6   :  { %3115 = vst.msk [vmem:[%s5601_s9 + $0x180] sm:$0xff] %vm5605_vm2, %v2981_v7  ;;  %v2139_v37 = vpop.permute.xlu1 %2138  ;;  %vm5620_vm2 = vmmov %vm5603_vm0 }
 0x4b7   :  { %3353 = vset.pattern.permute.xlu1 %v3382_v35  ;;  %v2406_v33 = vpop.permute.xlu0 %2405  ;;  %v2292_v16 = vmul.f32 %v2139_v37, %v2068_v38 }
 0x4b8   :  { %v2499_v8 = vmul.f32 %v2406_v33, %v2115_v55  ;;  %2678 = vperm.xlu1 %3353, %v4763_v59   ;;  %2445 = vperm.xlu0 %3352, %v4822_v43   ;;  %v2069_v55 = vld [vmem:[%s5592_s0 + $0x10] sm:$0xff] }
 0x4ba   :  { %v2531_v30 = vadd.f32 %v2499_v8, %v2307_v3  ;;  %v2331_v2 = vpop.permute.xlu1 %2330 }
 0x4bb   :  { %v2484_v19 = vmul.f32 %v2331_v2, %v2100_v0  ;;  %v2085_v0 = vld [vmem:[%s5592_s0 + $0x90] sm:$0xff] }
 0x4bc   :  { %2563 = vst.msk [vmem:[%s5601_s9 + $0x80] sm:$0xff] %vm5606_vm3, %v2531_v30  ;;  %2838 = vperm.xlu1 %3353, %v4818_v42   ;;  %3355 = vset.pattern.permute.xlu0 %v3382_v35  ;;  %v2811_v59 = vpop.permute.xlu0 %2810  ;;  %v2117_v30 = vld [vmem:[%s5594_s1 + $0x90] sm:$0xff]  ;;  %vm5621_vm3 = vmmov %vm5603_vm0 }
 0x4bd   :  { %v2516_v61 = vadd.f32 %v2484_v19, %v2292_v16  ;;  %2682 = vperm.xlu0 %3355, %v4767_v60   ;;  %v2934_v52 = vmul.f32 %v3068_v40, %v2811_v59  ;;  %v3037_v59 = vld [vmem:[%s5592_s0 + $0x110] sm:$0xff] }
 0x4bf   :  { %2548 = vst.msk [vmem:[%s5601_s9 + $0x8] sm:$0xff] %vm5607_vm4, %v2516_v61  ;;  %v2651_v42 = vpop.permute.xlu1 %2650  ;;  %v3069_v61 = vld [vmem:[%s5594_s1 + $0x110] sm:$0xff]  ;;  %vm5622_vm4 = vmmov %vm5603_vm0 }
 0x4c0   :  { %v2774_v45 = vmul.f32 %v3036_v41, %v2651_v42  ;;  %2742 = vperm.xlu1 %3353, %v4765_v62   ;;  %v2715_v63 = vpop.permute.xlu0 %2714 }
 0x4c1   :  { %2842 = vperm.xlu0 %3355, %v4824_v58   ;;  %v2790_v14 = vmul.f32 %v3052_v54, %v2715_v63  ;;  %v3038_v63 = vld [vmem:[%s5592_s0 + $0x118] sm:$0xff] }
 0x4c2   :  { %v2966_v53 = vadd.f32 %v2934_v52, %v2774_v45 }
 0x4c4   :  { %3100 = vst.msk [vmem:[%s5601_s9 + $0x108] sm:$0xff] %vm5608_vm5, %v2966_v53  ;;  %v2219_v11 = vpop.permute.xlu1 %2218  ;;  %2902 = vperm.xlu1 %3353, %v4822_v43   ;;  %v2875_v62 = vpop.permute.xlu0 %2874  ;;  %v2101_v43 = vld [vmem:[%s5594_s1 + $0x10] sm:$0xff]  ;;  %v3070_v53 = vld [vmem:[%s5594_s1 + $0x118] sm:$0xff]  ;;  %vm5623_vm5 = vmmov %vm5603_vm0 }
 0x4c5   :  { %v2950_v20 = vmul.f32 %v3084_v39, %v2875_v62  ;;  %2746 = vperm.xlu0 %3355, %v4769_v5   ;;  %v2308_v34 = vmul.f32 %v2219_v11, %v2084_v18  ;;  %v3053_v11 = vld [vmem:[%s5592_s0 + $0x190] sm:$0xff] }
 0x4c7   :  { %v2982_v1 = vadd.f32 %v2950_v20, %v2790_v14  ;;  %v3085_v14 = vld [vmem:[%s5594_s1 + $0x190] sm:$0xff] }
 0x4c8   :  { %v2411_v25 = vpop.permute.xlu1 %2410  ;;  %3354 = vset.pattern.permute.xlu1 %v3383_v51 }
 0x4c9   :  { %3116 = vst.msk [vmem:[%s5601_s9 + $0x188] sm:$0xff] %vm5609_vm6, %v2982_v1  ;;  %v2500_v7 = vmul.f32 %v2411_v25, %v2116_v32  ;;  %2178 = vperm.xlu1 %3354, %v4767_v60   ;;  %2906 = vperm.xlu0 %3355, %v4827_v36   ;;  %v2336_v57 = vpop.permute.xlu0 %2335  ;;  %vm5624_vm6 = vmmov %vm5603_vm0 }
 0x4ca   :  { %v2485_v33 = vmul.f32 %v2336_v57, %v2101_v43  ;;  %v3054_v43 = vld [vmem:[%s5592_s0 + $0x198] sm:$0xff] }
 0x4cb   :  { %v2532_v37 = vadd.f32 %v2500_v7, %v2308_v34  ;;  %v3086_v34 = vld [vmem:[%s5594_s1 + $0x198] sm:$0xff] }
 0x4cc   :  { %v2144_v3 = vpop.permute.xlu1 %2143 }
 0x4cd   :  { %2564 = vst.msk [vmem:[%s5601_s9 + $0x88] sm:$0xff] %vm5610_vm7, %v2532_v37  ;;  %v2293_v38 = vmul.f32 %v2144_v3, %v2069_v55  ;;  %3356 = vset.pattern.permute.xlu0 %v3383_v51  ;;  %2370 = vperm.xlu1 %3354, %v4824_v58   ;;  %v2224_v60 = vpop.permute.xlu0 %2223  ;;  %v2070_v37 = vld [vmem:[%s5592_s0 + $0x18] sm:$0xff]  ;;  %vm5625_vm7 = vmmov %vm5603_vm0 }
 0x4ce   :  { %2183 = vperm.xlu0 %3356, %v4771_v9   ;;  %v2309_v16 = vmul.f32 %v2224_v60, %v2085_v0 }
 0x4cf   :  { %v2517_v8 = vadd.f32 %v2485_v33, %v2293_v38  ;;  %v2102_v33 = vld [vmem:[%s5594_s1 + $0x18] sm:$0xff] }
 0x4d1   :  { %2549 = vst.msk [vmem:[%s5601_s9 + $0x10] sm:$0xff] %vm5611_vm8, %v2517_v8  ;;  %v2655_v2 = vpop.permute.xlu1 %2654  ;;  %2258 = vperm.xlu1 %3354, %v4769_v5   ;;  %v2416_v58 = vpop.permute.xlu0 %2415  ;;  %vm5626_vm8 = vmmov %vm5603_vm0 }
 0x4d2   :  { %v2501_v19 = vmul.f32 %v2416_v58, %v2117_v30  ;;  %2375 = vperm.xlu0 %3356, %v4829_v13   ;;  %v2775_v42 = vmul.f32 %v3037_v59, %v2655_v2  ;;  %v2071_v30 = vld [vmem:[%s5592_s0 + $0x20] sm:$0xff] }
 0x4d3   :  { %v2103_v2 = vld [vmem:[%s5594_s1 + $0x20] sm:$0xff] }
 0x4d4   :  { %v2533_v40 = vadd.f32 %v2501_v19, %v2309_v16  ;;  %v2086_v19 = vld [vmem:[%s5592_s0 + $0x98] sm:$0xff] }
 0x4d5   :  { %v2815_v41 = vpop.permute.xlu1 %2814  ;;  %2450 = vperm.xlu1 %3354, %v4827_v36  }
 0x4d6   :  { %2565 = vst.msk [vmem:[%s5601_s9 + $0x90] sm:$0xff] %vm5612_vm9, %v2533_v40  ;;  %v2935_v5 = vmul.f32 %v3069_v61, %v2815_v41  ;;  %2263 = vperm.xlu0 %3356, %v4773_v4   ;;  %v2659_v52 = vpop.permute.xlu0 %2658  ;;  %v2118_v61 = vld [vmem:[%s5594_s1 + $0x98] sm:$0xff]  ;;  %vm5627_vm9 = vmmov %vm5603_vm0 }
 0x4d7   :  { %v2776_v39 = vmul.f32 %v3038_v63, %v2659_v52  ;;  %v2119_v63 = vld [vmem:[%s5594_s1 + $0xa0] sm:$0xff] }
 0x4d8   :  { %v2967_v45 = vadd.f32 %v2935_v5, %v2775_v42 }
 0x4d9   :  { %v2719_v36 = vpop.permute.xlu1 %2718  ;;  %3357 = vset.pattern.permute.xlu1 %v3382_v35 }
 0x4da   :  { %3101 = vst.msk [vmem:[%s5601_s9 + $0x110] sm:$0xff] %vm5613_vm10, %v2967_v45  ;;  %2686 = vperm.xlu1 %3357, %v4771_v9   ;;  %2455 = vperm.xlu0 %3356, %v4834_v47   ;;  %v2819_v54 = vpop.permute.xlu0 %2818  ;;  %v2791_v32 = vmul.f32 %v3053_v11, %v2719_v36  ;;  %v2087_v45 = vld [vmem:[%s5592_s0 + $0xa0] sm:$0xff]  ;;  %vm5628_vm10 = vmmov %vm5603_vm0 }
 0x4db   :  { %v2936_v62 = vmul.f32 %v3070_v53, %v2819_v54  ;;  %v3071_v11 = vld [vmem:[%s5594_s1 + $0x120] sm:$0xff] }
 0x4dd   :  { %v2968_v20 = vadd.f32 %v2936_v62, %v2776_v39  ;;  %v2879_v18 = vpop.permute.xlu1 %2878  ;;  %v3039_v39 = vld [vmem:[%s5592_s0 + $0x120] sm:$0xff] }
 0x4de   :  { %v2951_v1 = vmul.f32 %v3085_v14, %v2879_v18  ;;  %2846 = vperm.xlu1 %3357, %v4829_v13   ;;  %3359 = vset.pattern.permute.xlu0 %v3382_v35  ;;  %v2723_v9 = vpop.permute.xlu0 %2722 }
 0x4df   :  { %3102 = vst.msk [vmem:[%s5601_s9 + $0x118] sm:$0xff] %vm5614_vm11, %v2968_v20  ;;  %2690 = vperm.xlu0 %3359, %v4775_v6   ;;  %v2792_v57 = vmul.f32 %v3054_v43, %v2723_v9  ;;  %v3072_v9 = vld [vmem:[%s5594_s1 + $0x128] sm:$0xff]  ;;  %vm5629_vm11 = vmmov %vm5603_vm0 }
 0x4e0   :  { %v2983_v25 = vadd.f32 %v2951_v1, %v2791_v32  ;;  %v3040_v1 = vld [vmem:[%s5592_s0 + $0x128] sm:$0xff] }
 0x4e2   :  { %3117 = vst.msk [vmem:[%s5601_s9 + $0x190] sm:$0xff] %vm5615_vm12, %v2983_v25  ;;  %v2149_v13 = vpop.permute.xlu1 %2148  ;;  %2750 = vperm.xlu1 %3357, %v4773_v4   ;;  %v2883_v7 = vpop.permute.xlu0 %2882  ;;  %vm5630_vm12 = vmmov %vm5603_vm0 }
 0x4e3   :  { %v2952_v55 = vmul.f32 %v3086_v34, %v2883_v7  ;;  %2850 = vperm.xlu0 %3359, %v4836_v26   ;;  %v2294_v60 = vmul.f32 %v2149_v13, %v2070_v37  ;;  %v3055_v34 = vld [vmem:[%s5592_s0 + $0x1a0] sm:$0xff] }
 0x4e4   :  { %v3087_v7 = vld [vmem:[%s5594_s1 + $0x1a0] sm:$0xff] }
 0x4e5   :  { %v2984_v3 = vadd.f32 %v2952_v55, %v2792_v57 }
 0x4e6   :  { %v2341_v38 = vpop.permute.xlu1 %2340  ;;  %2910 = vperm.xlu1 %3357, %v4834_v47  }
 0x4e7   :  { %3118 = vst.msk [vmem:[%s5601_s9 + $0x198] sm:$0xff] %vm5616_vm13, %v2984_v3  ;;  %v2486_v4 = vmul.f32 %v2341_v38, %v2102_v33  ;;  %2754 = vperm.xlu0 %3359, %v4777_v15   ;;  %v2154_v8 = vpop.permute.xlu0 %2153  ;;  %v3056_v38 = vld [vmem:[%s5592_s0 + $0x1a8] sm:$0xff]  ;;  %vm5631_vm13 = vmmov %vm5603_vm0 }
 0x4e8   :  { %v2295_v16 = vmul.f32 %v2154_v8, %v2071_v30  ;;  %v2072_v30 = vld [vmem:[%s5592_s0 + $0x28] sm:$0xff] }
 0x4e9   :  { %v2518_v0 = vadd.f32 %v2486_v4, %v2294_v60  ;;  %v3088_v60 = vld [vmem:[%s5594_s1 + $0x1a8] sm:$0xff] }
 0x4ea   :  { %v2229_v47 = vpop.permute.xlu1 %2228  ;;  %3358 = vset.pattern.permute.xlu1 %v3383_v51 }
 0x4eb   :  { %2550 = vst.msk [vmem:[%s5601_s9 + $0x18] sm:$0xff] %vm5617_vm14, %v2518_v0  ;;  %2188 = vperm.xlu1 %3358, %v4775_v6   ;;  %2914 = vperm.xlu0 %3359, %v4840_v28   ;;  %v2346_v58 = vpop.permute.xlu0 %2345  ;;  %v2310_v42 = vmul.f32 %v2229_v47, %v2086_v19  ;;  %vm5632_vm14 = vmmov %vm5603_vm0 }
 0x4ec   :  { %v2487_v59 = vmul.f32 %v2346_v58, %v2103_v2  ;;  %v2104_v2 = vld [vmem:[%s5594_s1 + $0x28] sm:$0xff] }
 0x4ee   :  { %v2519_v40 = vadd.f32 %v2487_v59, %v2295_v16  ;;  %v2421_v41 = vpop.permute.xlu1 %2420 }
 0x4ef   :  { %v2502_v5 = vmul.f32 %v2421_v41, %v2118_v61  ;;  %2380 = vperm.xlu1 %3358, %v4836_v26   ;;  %3360 = vset.pattern.permute.xlu0 %v3383_v51  ;;  %v2234_v6 = vpop.permute.xlu0 %2233  ;;  %v2073_v61 = vld [vmem:[%s5592_s0 + $0x30] sm:$0xff] }
 0x4f0   :  { %2551 = vst.msk [vmem:[%s5601_s9 + $0x20] sm:$0xff] %vm5618_vm15, %v2519_v40  ;;  %2193 = vperm.xlu0 %3360, %v4779_v12   ;;  %v2311_v36 = vmul.f32 %v2234_v6, %v2087_v45  ;;  %v2105_v40 = vld [vmem:[%s5594_s1 + $0x30] sm:$0xff]  ;;  %vm5633_vm15 = vmmov %vm5603_vm0 }
 0x4f1   :  { %v2534_v52 = vadd.f32 %v2502_v5, %v2310_v42  ;;  %v2088_v5 = vld [vmem:[%s5592_s0 + $0xa8] sm:$0xff] }
 0x4f3   :  { %2566 = vst.msk [vmem:[%s5601_s9 + $0x98] sm:$0xff] %vm5603_vm0, %v2534_v52  ;;  %v2663_v26 = vpop.permute.xlu1 %2662  ;;  %2268 = vperm.xlu1 %3358, %v4777_v15   ;;  %v2426_v53 = vpop.permute.xlu0 %2425  ;;  %v2120_v52 = vld [vmem:[%s5594_s1 + $0xa8] sm:$0xff] }
 0x4f4   :  { %v2503_v54 = vmul.f32 %v2426_v53, %v2119_v63  ;;  %2385 = vperm.xlu0 %3360, %v4842_v23   ;;  %v2777_v20 = vmul.f32 %v3039_v39, %v2663_v26  ;;  %v2121_v39 = vld [vmem:[%s5594_s1 + $0xb0] sm:$0xff] }
 0x4f6   :  { %v2535_v62 = vadd.f32 %v2503_v54, %v2311_v36  ;;  %v2089_v54 = vld [vmem:[%s5592_s0 + $0xb0] sm:$0xff] }
 0x4f7   :  { %v2823_v14 = vpop.permute.xlu1 %2822  ;;  %2460 = vperm.xlu1 %3358, %v4840_v28  }
 0x4f8   :  { %2567 = vst.msk [vmem:[%s5601_s9 + $0xa0] sm:$0xff] %vm5619_vm1, %v2535_v62  ;;  %v2937_v15 = vmul.f32 %v3071_v11, %v2823_v14  ;;  %2273 = vperm.xlu0 %3360, %v4781_v49   ;;  %v2667_v18 = vpop.permute.xlu0 %2666  ;;  %vm5634_vm1 = vmmov %vm5603_vm0 }
 0x4f9   :  { %v2778_v43 = vmul.f32 %v3040_v1, %v2667_v18 }
 0x4fa   :  { %v2969_v32 = vadd.f32 %v2937_v15, %v2777_v20  ;;  %v3041_v20 = vld [vmem:[%s5592_s0 + $0x130] sm:$0xff] }
 0x4fb   :  { %v2727_v28 = vpop.permute.xlu1 %2726  ;;  %3361 = vset.pattern.permute.xlu1 %v3382_v35  ;;  %v3073_v15 = vld [vmem:[%s5594_s1 + $0x130] sm:$0xff] }
 0x4fc   :  { %3103 = vst.msk [vmem:[%s5601_s9 + $0x120] sm:$0xff] %vm5620_vm2, %v2969_v32  ;;  %2694 = vperm.xlu1 %3361, %v4779_v12   ;;  %2465 = vperm.xlu0 %3360, %v4845_v44   ;;  %v2827_v25 = vpop.permute.xlu0 %2826  ;;  %v2793_v37 = vmul.f32 %v3055_v34, %v2727_v28  ;;  %vm5635_vm2 = vmmov %vm5603_vm0 }
 0x4fd   :  { %v2938_v13 = vmul.f32 %v3072_v9, %v2827_v25  ;;  %v3042_v25 = vld [vmem:[%s5592_s0 + $0x138] sm:$0xff] }
 0x4ff   :  { %v2970_v57 = vadd.f32 %v2938_v13, %v2778_v43  ;;  %v2887_v55 = vpop.permute.xlu1 %2886  ;;  %v3074_v43 = vld [vmem:[%s5594_s1 + $0x138] sm:$0xff] }
 0x500   :  { %v2953_v33 = vmul.f32 %v3087_v7, %v2887_v55  ;;  %2854 = vperm.xlu1 %3361, %v4842_v23   ;;  %3363 = vset.pattern.permute.xlu0 %v3382_v35  ;;  %v2731_v12 = vpop.permute.xlu0 %2730  ;;  %v3057_v7 = vld [vmem:[%s5592_s0 + $0x1b0] sm:$0xff] }
 0x501   :  { %3104 = vst.msk [vmem:[%s5601_s9 + $0x128] sm:$0xff] %vm5621_vm3, %v2970_v57  ;;  %2698 = vperm.xlu0 %3363, %v4783_v21   ;;  %v2794_v8 = vmul.f32 %v3056_v38, %v2731_v12  ;;  %v3089_v55 = vld [vmem:[%s5594_s1 + $0x1b0] sm:$0xff]  ;;  %vm5636_vm3 = vmmov %vm5603_vm0 }
 0x502   :  { %v2985_v3 = vadd.f32 %v2953_v33, %v2793_v37 }
 0x504   :  { %3119 = vst.msk [vmem:[%s5601_s9 + $0x1a0] sm:$0xff] %vm5622_vm4, %v2985_v3  ;;  %v2159_v23 = vpop.permute.xlu1 %2158  ;;  %2758 = vperm.xlu1 %3361, %v4781_v49   ;;  %v2891_v4 = vpop.permute.xlu0 %2890  ;;  %vm5637_vm4 = vmmov %vm5603_vm0 }
 0x505   :  { %v2954_v0 = vmul.f32 %v3088_v60, %v2891_v4  ;;  %2858 = vperm.xlu0 %3363, %v4848_v46   ;;  %v2296_v16 = vmul.f32 %v2159_v23, %v2072_v30  ;;  %v3058_v60 = vld [vmem:[%s5592_s0 + $0x1b8] sm:$0xff] }
 0x506   :  { %v3090_v23 = vld [vmem:[%s5594_s1 + $0x1b8] sm:$0xff] }
 0x507   :  { %v2986_v47 = vadd.f32 %v2954_v0, %v2794_v8  ;;  %v2074_v30 = vld [vmem:[%s5592_s0 + $0x38] sm:$0xff] }
 0x508   :  { %v2351_v58 = vpop.permute.xlu1 %2350  ;;  %2918 = vperm.xlu1 %3361, %v4845_v44  }
 0x509   :  { %3120 = vst.msk [vmem:[%s5601_s9 + $0x1a8] sm:$0xff] %vm5623_vm5, %v2986_v47  ;;  %v2488_v49 = vmul.f32 %v2351_v58, %v2104_v2  ;;  %2762 = vperm.xlu0 %3363, %v4785_v50   ;;  %v2164_v19 = vpop.permute.xlu0 %2163  ;;  %v2106_v2 = vld [vmem:[%s5594_s1 + $0x38] sm:$0xff]  ;;  %vm5638_vm5 = vmmov %vm5603_vm0 }
 0x50a   :  { %v2297_v42 = vmul.f32 %v2164_v19, %v2073_v61 }
 0x50b   :  { %v2520_v59 = vadd.f32 %v2488_v49, %v2296_v16 }
 0x50c   :  { %v2239_v44 = vpop.permute.xlu1 %2238  ;;  %3362 = vset.pattern.permute.xlu1 %v3383_v51 }
 0x50d   :  { %2552 = vst.msk [vmem:[%s5601_s9 + $0x28] sm:$0xff] %vm5624_vm6, %v2520_v59  ;;  %2198 = vperm.xlu1 %3362, %v4783_v21   ;;  %2922 = vperm.xlu0 %3363, %v4852_v56   ;;  %v2356_v41 = vpop.permute.xlu0 %2355  ;;  %v2312_v26 = vmul.f32 %v2239_v44, %v2088_v5  ;;  %v2075_v59 = vld [vmem:[%s5592_s0 + $0x40] sm:$0xff]  ;;  %v2090_v44 = vld [vmem:[%s5592_s0 + $0xb8] sm:$0xff]  ;;  %vm5639_vm6 = vmmov %vm5603_vm0 }
 0x50e   :  { %v2489_v6 = vmul.f32 %v2356_v41, %v2105_v40 }
 0x510   :  { %v2521_v45 = vadd.f32 %v2489_v6, %v2297_v42  ;;  %v2431_v63 = vpop.permute.xlu1 %2430  ;;  %v2122_v42 = vld [vmem:[%s5594_s1 + $0xb8] sm:$0xff] }
 0x511   :  { %v2504_v53 = vmul.f32 %v2431_v63, %v2120_v52  ;;  %2390 = vperm.xlu1 %3362, %v4848_v46   ;;  %3364 = vset.pattern.permute.xlu0 %v3383_v51  ;;  %v2244_v21 = vpop.permute.xlu0 %2243 }
 0x512   :  { %2553 = vst.msk [vmem:[%s5601_s9 + $0x30] sm:$0xff] %vm5625_vm7, %v2521_v45  ;;  %2203 = vperm.xlu0 %3364, %v4787_v48   ;;  %v2313_v62 = vmul.f32 %v2244_v21, %v2089_v54  ;;  %vm5640_vm7 = vmmov %vm5603_vm0 }
 0x513   :  { %v2536_v36 = vadd.f32 %v2504_v53, %v2312_v26  ;;  %v2091_v26 = vld [vmem:[%s5592_s0 + $0xc0] sm:$0xff] }
 0x514   :  { %v2123_v53 = vld [vmem:[%s5594_s1 + $0xc0] sm:$0xff] }
 0x515   :  { %2568 = vst.msk [vmem:[%s5601_s9 + $0xa8] sm:$0xff] %vm5626_vm8, %v2536_v36  ;;  %v2671_v46 = vpop.permute.xlu1 %2670  ;;  %2278 = vperm.xlu1 %3362, %v4785_v50   ;;  %v2436_v11 = vpop.permute.xlu0 %2435  ;;  %vm5641_vm8 = vmmov %vm5603_vm0 }
 0x516   :  { %v2505_v14 = vmul.f32 %v2436_v11, %v2121_v39  ;;  %2395 = vperm.xlu0 %3364, %v4854_v27   ;;  %v2779_v1 = vmul.f32 %v3041_v20, %v2671_v46  ;;  %v3043_v39 = vld [vmem:[%s5592_s0 + $0x140] sm:$0xff] }
 0x517   :  { %v3075_v46 = vld [vmem:[%s5594_s1 + $0x140] sm:$0xff] }
 0x518   :  { %v2537_v18 = vadd.f32 %v2505_v14, %v2313_v62 }
 0x519   :  { %v2831_v32 = vpop.permute.xlu1 %2830  ;;  %2470 = vperm.xlu1 %3362, %v4852_v56  }
 0x51a   :  { %2569 = vst.msk [vmem:[%s5601_s9 + $0xb0] sm:$0xff] %vm5627_vm9, %v2537_v18  ;;  %v2939_v50 = vmul.f32 %v3073_v15, %v2831_v32  ;;  %2283 = vperm.xlu0 %3364, %v4789_v22   ;;  %v2675_v9 = vpop.permute.xlu0 %2674  ;;  %v3044_v18 = vld [vmem:[%s5592_s0 + $0x148] sm:$0xff]  ;;  %vm5642_vm9 = vmmov %vm5603_vm0 }
 0x51b   :  { %v2780_v13 = vmul.f32 %v3042_v25, %v2675_v9  ;;  %v3076_v32 = vld [vmem:[%s5594_s1 + $0x148] sm:$0xff] }
 0x51c   :  { %v2971_v28 = vadd.f32 %v2939_v50, %v2779_v1 }
 0x51d   :  { %v2735_v56 = vpop.permute.xlu1 %2734  ;;  %3365 = vset.pattern.permute.xlu1 %v3382_v35 }
 0x51e   :  { %3105 = vst.msk [vmem:[%s5601_s9 + $0x130] sm:$0xff] %vm5628_vm10, %v2971_v28  ;;  %2702 = vperm.xlu1 %3365, %v4787_v48   ;;  %2475 = vperm.xlu0 %3364, %v4858_v10   ;;  %v2835_v34 = vpop.permute.xlu0 %2834  ;;  %v2795_v12 = vmul.f32 %v3057_v7, %v2735_v56  ;;  %v3091_v28 = vld [vmem:[%s5594_s1 + $0x1c0] sm:$0xff]  ;;  %vm5643_vm10 = vmmov %vm5603_vm0 }
 0x51f   :  { %v2940_v57 = vmul.f32 %v3074_v43, %v2835_v34 }
 0x521   :  { %v2972_v37 = vadd.f32 %v2940_v57, %v2780_v13  ;;  %v2895_v33 = vpop.permute.xlu1 %2894  ;;  %v3060_v57 = vld [vmem:[%s5592_s0 + $0x1c8] sm:$0xff] }
 0x522   :  { %v2955_v3 = vmul.f32 %v3089_v55, %v2895_v33  ;;  %2862 = vperm.xlu1 %3365, %v4854_v27   ;;  %3367 = vset.pattern.permute.xlu0 %v3382_v35  ;;  %v2739_v48 = vpop.permute.xlu0 %2738  ;;  %v3092_v55 = vld [vmem:[%s5594_s1 + $0x1c8] sm:$0xff] }
 0x523   :  { %3106 = vst.msk [vmem:[%s5601_s9 + $0x138] sm:$0xff] %vm5629_vm11, %v2972_v37  ;;  %2706 = vperm.xlu0 %3367, %v4791_v24   ;;  %v2796_v8 = vmul.f32 %v3058_v60, %v2739_v48  ;;  %v2076_v48 = vld [vmem:[%s5592_s0 + $0x48] sm:$0xff]  ;;  %vm5644_vm11 = vmmov %vm5603_vm0 }
 0x524   :  { %v2987_v38 = vadd.f32 %v2955_v3, %v2795_v12 }
 0x526   :  { %3121 = vst.msk [vmem:[%s5601_s9 + $0x1b0] sm:$0xff] %vm5630_vm12, %v2987_v38  ;;  %v2169_v27 = vpop.permute.xlu1 %2168  ;;  %2766 = vperm.xlu1 %3365, %v4789_v22   ;;  %v2899_v4 = vpop.permute.xlu0 %2898  ;;  %v2108_v38 = vld [vmem:[%s5594_s1 + $0x48] sm:$0xff]  ;;  %vm5645_vm12 = vmmov %vm5603_vm0 }
 0x527   :  { %v2956_v0 = vmul.f32 %v3090_v23, %v2899_v4  ;;  %2866 = vperm.xlu0 %3367, %v4861_v17   ;;  %v2298_v16 = vmul.f32 %v2169_v27, %v2074_v30  ;;  %v2077_v30 = vld [vmem:[%s5592_s0 + $0x50] sm:$0xff] }
 0x529   :  { %v2988_v47 = vadd.f32 %v2956_v0, %v2796_v8 }
 0x52a   :  { %v2361_v58 = vpop.permute.xlu1 %2360  ;;  %3366 = vset.pattern.permute.xlu1 %v3383_v51  ;;  %v2107_v51 = vld [vmem:[%s5594_s1 + $0x40] sm:$0xff] }
 0x52b   :  { %3122 = vst.msk [vmem:[%s5601_s9 + $0x1b8] sm:$0xff] %vm5631_vm13, %v2988_v47  ;;  %v2490_v22 = vmul.f32 %v2361_v58, %v2106_v2  ;;  %2208 = vperm.xlu1 %3366, %v4791_v24   ;;  %2770 = vperm.xlu0 %3367, %v4793_v29   ;;  %v2174_v49 = vpop.permute.xlu0 %2173  ;;  %v2109_v2 = vld [vmem:[%s5594_s1 + $0x50] sm:$0xff]  ;;  %vm5646_vm13 = vmmov %vm5603_vm0 }
 0x52c   :  { %v2299_v40 = vmul.f32 %v2174_v49, %v2075_v59 }
 0x52d   :  { %v2522_v19 = vadd.f32 %v2490_v22, %v2298_v16  ;;  %v2092_v22 = vld [vmem:[%s5592_s0 + $0xc8] sm:$0xff] }
 0x52e   :  { %v2249_v61 = vpop.permute.xlu1 %2248 }
 0x52f   :  { %2554 = vst.msk [vmem:[%s5601_s9 + $0x38] sm:$0xff] %vm5632_vm14, %v2522_v19  ;;  %2400 = vperm.xlu1 %3366, %v4861_v17   ;;  %2930 = vperm.xlu0 %3367, %v4864_v31   ;;  %v2366_v24 = vpop.permute.xlu0 %2365  ;;  %v2314_v52 = vmul.f32 %v2249_v61, %v2090_v44  ;;  %v2124_v19 = vld [vmem:[%s5594_s1 + $0xc8] sm:$0xff]  ;;  %vm5647_vm14 = vmmov %vm5603_vm0 }
 0x530   :  { %v2491_v41 = vmul.f32 %v2366_v24, %v2107_v51 }
 0x532   :  { %v2523_v5 = vadd.f32 %v2491_v41, %v2299_v40  ;;  %v2441_v6 = vpop.permute.xlu1 %2440  ;;  %v2093_v41 = vld [vmem:[%s5592_s0 + $0xd0] sm:$0xff] }
 0x533   :  { %v2506_v45 = vmul.f32 %v2441_v6, %v2122_v42  ;;  %2288 = vperm.xlu1 %3366, %v4793_v29   ;;  %v2254_v17 = vpop.permute.xlu0 %2253  ;;  %v2125_v42 = vld [vmem:[%s5594_s1 + $0xd0] sm:$0xff] }
 0x534   :  { %2555 = vst.msk [vmem:[%s5601_s9 + $0x40] sm:$0xff] %vm5633_vm15, %v2523_v5  ;;  %v2315_v36 = vmul.f32 %v2254_v17, %v2091_v26  ;;  %v3045_v17 = vld [vmem:[%s5592_s0 + $0x150] sm:$0xff]  ;;  %vm5648_vm15 = vmmov %vm5603_vm0 }
 0x535   :  { %v2538_v63 = vadd.f32 %v2506_v45, %v2314_v52 }
 0x537   :  { %2570 = vst.msk [vmem:[%s5601_s9 + $0xb8] sm:$0xff] %vm5603_vm0, %v2538_v63  ;;  %v2679_v29 = vpop.permute.xlu1 %2678  ;;  %2480 = vperm.xlu1 %3366, %v4864_v31   ;;  %v2446_v21 = vpop.permute.xlu0 %2445  ;;  %v3077_v63 = vld [vmem:[%s5594_s1 + $0x150] sm:$0xff] }
 0x538   :  { %v2507_v54 = vmul.f32 %v2446_v21, %v2123_v53  ;;  %v2781_v14 = vmul.f32 %v3043_v39, %v2679_v29  ;;  %v3046_v39 = vld [vmem:[%s5592_s0 + $0x158] sm:$0xff] }
 0x53a   :  { %v2539_v11 = vadd.f32 %v2507_v54, %v2315_v36 }
 0x53b   :  { %v2839_v62 = vpop.permute.xlu1 %2838  ;;  %3368 = vset.pattern.permute.xlu1 %v3382_v35 }
 0x53c   :  { %2571 = vst.msk [vmem:[%s5601_s9 + $0xc0] sm:$0xff] %vm5634_vm1, %v2539_v11  ;;  %v2941_v31 = vmul.f32 %v3075_v46, %v2839_v62  ;;  %2926 = vperm.xlu1 %3368, %v4858_v10   ;;  %v2683_v20 = vpop.permute.xlu0 %2682  ;;  %v3059_v10 = vld [vmem:[%s5592_s0 + $0x1c0] sm:$0xff]  ;;  %v3078_v46 = vld [vmem:[%s5594_s1 + $0x158] sm:$0xff]  ;;  %vm5649_vm1 = vmmov %vm5603_vm0 }
 0x53d   :  { %v2782_v50 = vmul.f32 %v3044_v18, %v2683_v20 }
 0x53e   :  { %v2973_v15 = vadd.f32 %v2941_v31, %v2781_v14  ;;  %v3061_v31 = vld [vmem:[%s5592_s0 + $0x1d0] sm:$0xff] }
 0x53f   :  { %v2743_v35 = vpop.permute.xlu1 %2742 }
 0x540   :  { %3107 = vst.msk [vmem:[%s5601_s9 + $0x140] sm:$0xff] %vm5635_vm2, %v2973_v15  ;;  %v2843_v1 = vpop.permute.xlu0 %2842  ;;  %v2797_v56 = vmul.f32 %v3059_v10, %v2743_v35  ;;  %v3093_v15 = vld [vmem:[%s5594_s1 + $0x1d0] sm:$0xff]  ;;  %vm5650_vm2 = vmmov %vm5603_vm0 }
 0x541   :  { %v2942_v9 = vmul.f32 %v3076_v32, %v2843_v1 }
 0x543   :  { %v2974_v25 = vadd.f32 %v2942_v9, %v2782_v50  ;;  %v2903_v43 = vpop.permute.xlu1 %2902  ;;  %v3062_v9 = vld [vmem:[%s5592_s0 + $0x1d8] sm:$0xff] }
 0x544   :  { %v2957_v34 = vmul.f32 %v3091_v28, %v2903_v43  ;;  %v2747_v13 = vpop.permute.xlu0 %2746  ;;  %v3094_v28 = vld [vmem:[%s5594_s1 + $0x1d8] sm:$0xff] }
 0x545   :  { %3108 = vst.msk [vmem:[%s5601_s9 + $0x148] sm:$0xff] %vm5636_vm3, %v2974_v25  ;;  %v2798_v12 = vmul.f32 %v3060_v57, %v2747_v13  ;;  %v2078_v13 = vld [vmem:[%s5592_s0 + $0x58] sm:$0xff]  ;;  %vm5651_vm3 = vmmov %vm5603_vm0 }
 0x546   :  { %v2989_v7 = vadd.f32 %v2957_v34, %v2797_v56 }
 0x548   :  { %3123 = vst.msk [vmem:[%s5601_s9 + $0x1c0] sm:$0xff] %vm5637_vm4, %v2989_v7  ;;  %v2179_v37 = vpop.permute.xlu1 %2178  ;;  %v2907_v33 = vpop.permute.xlu0 %2906  ;;  %v2110_v7 = vld [vmem:[%s5594_s1 + $0x58] sm:$0xff]  ;;  %vm5652_vm4 = vmmov %vm5603_vm0 }
 0x549   :  { %v2958_v3 = vmul.f32 %v3092_v55, %v2907_v33  ;;  %v2300_v27 = vmul.f32 %v2179_v37, %v2076_v48  ;;  %v2079_v48 = vld [vmem:[%s5592_s0 + $0x60] sm:$0xff] }
 0x54b   :  { %v2990_v60 = vadd.f32 %v2958_v3, %v2798_v12 }
 0x54c   :  { %v2371_v23 = vpop.permute.xlu1 %2370 }
 0x54d   :  { %3124 = vst.msk [vmem:[%s5601_s9 + $0x1c8] sm:$0xff] %vm5638_vm5, %v2990_v60  ;;  %v2492_v4 = vmul.f32 %v2371_v23, %v2108_v38  ;;  %v2184_v8 = vpop.permute.xlu0 %2183  ;;  %v2111_v38 = vld [vmem:[%s5594_s1 + $0x60] sm:$0xff]  ;;  %vm5653_vm5 = vmmov %vm5603_vm0 }
 0x54e   :  { %v2301_v16 = vmul.f32 %v2184_v8, %v2077_v30 }
 0x54f   :  { %v2524_v0 = vadd.f32 %v2492_v4, %v2300_v27  ;;  %v2094_v4 = vld [vmem:[%s5592_s0 + $0xd8] sm:$0xff] }
 0x550   :  { %v2259_v47 = vpop.permute.xlu1 %2258 }
 0x551   :  { %2556 = vst.msk [vmem:[%s5601_s9 + $0x48] sm:$0xff] %vm5639_vm6, %v2524_v0  ;;  %v2376_v58 = vpop.permute.xlu0 %2375  ;;  %v2316_v61 = vmul.f32 %v2259_v47, %v2092_v22  ;;  %v2126_v0 = vld [vmem:[%s5594_s1 + $0xd8] sm:$0xff]  ;;  %vm5654_vm6 = vmmov %vm5603_vm0 }
 0x552   :  { %v2493_v49 = vmul.f32 %v2376_v58, %v2109_v2 }
 0x554   :  { %v2525_v59 = vadd.f32 %v2493_v49, %v2301_v16  ;;  %v2451_v51 = vpop.permute.xlu1 %2450  ;;  %v2095_v49 = vld [vmem:[%s5592_s0 + $0xe0] sm:$0xff] }
 0x555   :  { %v2508_v24 = vmul.f32 %v2451_v51, %v2124_v19  ;;  %v2264_v40 = vpop.permute.xlu0 %2263  ;;  %v2127_v19 = vld [vmem:[%s5594_s1 + $0xe0] sm:$0xff] }
 0x556   :  { %2557 = vst.msk [vmem:[%s5601_s9 + $0x50] sm:$0xff] %vm5640_vm7, %v2525_v59  ;;  %v2317_v52 = vmul.f32 %v2264_v40, %v2093_v41  ;;  %v3047_v40 = vld [vmem:[%s5592_s0 + $0x160] sm:$0xff]  ;;  %vm5655_vm7 = vmmov %vm5603_vm0 }
 0x557   :  { %v2540_v44 = vadd.f32 %v2508_v24, %v2316_v61 }
 0x559   :  { %2572 = vst.msk [vmem:[%s5601_s9 + $0xc8] sm:$0xff] %vm5641_vm8, %v2540_v44  ;;  %v2687_v5 = vpop.permute.xlu1 %2686  ;;  %v2456_v6 = vpop.permute.xlu0 %2455  ;;  %v3079_v44 = vld [vmem:[%s5594_s1 + $0x160] sm:$0xff]  ;;  %vm5656_vm8 = vmmov %vm5603_vm0 }
 0x55a   :  { %v2509_v45 = vmul.f32 %v2456_v6, %v2125_v42  ;;  %v2783_v29 = vmul.f32 %v3045_v17, %v2687_v5  ;;  %v3048_v17 = vld [vmem:[%s5592_s0 + $0x168] sm:$0xff] }
 0x55c   :  { %v2541_v26 = vadd.f32 %v2509_v45, %v2317_v52 }
 0x55d   :  { %v2847_v53 = vpop.permute.xlu1 %2846 }
 0x55e   :  { %2573 = vst.msk [vmem:[%s5601_s9 + $0xd0] sm:$0xff] %vm5642_vm9, %v2541_v26  ;;  %v2943_v21 = vmul.f32 %v3077_v63, %v2847_v53  ;;  %v2691_v36 = vpop.permute.xlu0 %2690  ;;  %v3080_v63 = vld [vmem:[%s5594_s1 + $0x168] sm:$0xff]  ;;  %vm5657_vm9 = vmmov %vm5603_vm0 }
 0x55f   :  { %v2784_v14 = vmul.f32 %v3046_v39, %v2691_v36 }
 0x560   :  { %v2975_v54 = vadd.f32 %v2943_v21, %v2783_v29  ;;  %v3063_v21 = vld [vmem:[%s5592_s0 + $0x1e0] sm:$0xff] }
 0x561   :  { %v2751_v11 = vpop.permute.xlu1 %2750 }
 0x562   :  { %3109 = vst.msk [vmem:[%s5601_s9 + $0x150] sm:$0xff] %vm5643_vm10, %v2975_v54  ;;  %v2851_v62 = vpop.permute.xlu0 %2850  ;;  %v2799_v35 = vmul.f32 %v3061_v31, %v2751_v11  ;;  %v3095_v54 = vld [vmem:[%s5594_s1 + $0x1e0] sm:$0xff]  ;;  %vm5658_vm10 = vmmov %vm5603_vm0 }
 0x563   :  { %v2944_v20 = vmul.f32 %v3078_v46, %v2851_v62 }
 0x565   :  { %v2976_v18 = vadd.f32 %v2944_v20, %v2784_v14  ;;  %v2911_v32 = vpop.permute.xlu1 %2910  ;;  %v3064_v20 = vld [vmem:[%s5592_s0 + $0x1e8] sm:$0xff] }
 0x566   :  { %v2959_v1 = vmul.f32 %v3093_v15, %v2911_v32  ;;  %v2755_v50 = vpop.permute.xlu0 %2754  ;;  %v3096_v15 = vld [vmem:[%s5594_s1 + $0x1e8] sm:$0xff] }
 0x567   :  { %3110 = vst.msk [vmem:[%s5601_s9 + $0x158] sm:$0xff] %vm5644_vm11, %v2976_v18  ;;  %v2800_v56 = vmul.f32 %v3062_v9, %v2755_v50  ;;  %v2080_v50 = vld [vmem:[%s5592_s0 + $0x68] sm:$0xff]  ;;  %vm5659_vm11 = vmmov %vm5603_vm0 }
 0x568   :  { %v2991_v10 = vadd.f32 %v2959_v1, %v2799_v35 }
 0x56a   :  { %3125 = vst.msk [vmem:[%s5601_s9 + $0x1d0] sm:$0xff] %vm5645_vm12, %v2991_v10  ;;  %v2189_v25 = vpop.permute.xlu1 %2188  ;;  %v2915_v43 = vpop.permute.xlu0 %2914  ;;  %v2112_v10 = vld [vmem:[%s5594_s1 + $0x68] sm:$0xff]  ;;  %vm5660_vm12 = vmmov %vm5603_vm0 }
 0x56b   :  { %v2960_v34 = vmul.f32 %v3094_v28, %v2915_v43  ;;  %v2302_v37 = vmul.f32 %v2189_v25, %v2078_v13  ;;  %v2081_v13 = vld [vmem:[%s5592_s0 + $0x70] sm:$0xff] }
 0x56d   :  { %v2992_v57 = vadd.f32 %v2960_v34, %v2800_v56 }
 0x56e   :  { %v2381_v55 = vpop.permute.xlu1 %2380 }
 0x56f   :  { %3126 = vst.msk [vmem:[%s5601_s9 + $0x1d8] sm:$0xff] %vm5646_vm13, %v2992_v57  ;;  %v2494_v33 = vmul.f32 %v2381_v55, %v2110_v7  ;;  %v2194_v12 = vpop.permute.xlu0 %2193  ;;  %v2113_v7 = vld [vmem:[%s5594_s1 + $0x70] sm:$0xff]  ;;  %vm5661_vm13 = vmmov %vm5603_vm0 }
 0x570   :  { %v2303_v27 = vmul.f32 %v2194_v12, %v2079_v48 }
 0x571   :  { %v2526_v3 = vadd.f32 %v2494_v33, %v2302_v37  ;;  %v2096_v33 = vld [vmem:[%s5592_s0 + $0xe8] sm:$0xff] }
 0x572   :  { %v2269_v60 = vpop.permute.xlu1 %2268 }
 0x573   :  { %2558 = vst.msk [vmem:[%s5601_s9 + $0x58] sm:$0xff] %vm5647_vm14, %v2526_v3  ;;  %v2386_v23 = vpop.permute.xlu0 %2385  ;;  %v2318_v47 = vmul.f32 %v2269_v60, %v2094_v4  ;;  %v2128_v3 = vld [vmem:[%s5594_s1 + $0xe8] sm:$0xff]  ;;  %vm5662_vm14 = vmmov %vm5603_vm0 }
 0x574   :  { %v2495_v8 = vmul.f32 %v2386_v23, %v2111_v38 }
 0x576   :  { %v2527_v30 = vadd.f32 %v2495_v8, %v2303_v27  ;;  %v2461_v2 = vpop.permute.xlu1 %2460  ;;  %v2097_v8 = vld [vmem:[%s5592_s0 + $0xf0] sm:$0xff] }
 0x577   :  { %v2510_v58 = vmul.f32 %v2461_v2, %v2126_v0  ;;  %v2274_v16 = vpop.permute.xlu0 %2273  ;;  %v2129_v0 = vld [vmem:[%s5594_s1 + $0xf0] sm:$0xff] }
 0x578   :  { %2559 = vst.msk [vmem:[%s5601_s9 + $0x60] sm:$0xff] %vm5648_vm15, %v2527_v30  ;;  %v2319_v61 = vmul.f32 %v2274_v16, %v2095_v49  ;;  %v3049_v16 = vld [vmem:[%s5592_s0 + $0x170] sm:$0xff]  ;;  %vm5663_vm15 = vmmov %vm5603_vm0 }
 0x579   :  { %v2542_v22 = vadd.f32 %v2510_v58, %v2318_v47 }
 0x57b   :  { %2574 = vst.msk [vmem:[%s5601_s9 + $0xd8] sm:$0xff] %vm5603_vm0, %v2542_v22  ;;  %v2695_v59 = vpop.permute.xlu1 %2694  ;;  %v2466_v51 = vpop.permute.xlu0 %2465  ;;  %v3081_v22 = vld [vmem:[%s5594_s1 + $0x170] sm:$0xff] }
 0x57c   :  { %v2511_v24 = vmul.f32 %v2466_v51, %v2127_v19  ;;  %v2785_v5 = vmul.f32 %v3047_v40, %v2695_v59  ;;  %v3050_v40 = vld [vmem:[%s5592_s0 + $0x178] sm:$0xff] }
 0x57e   :  { %v2543_v41 = vadd.f32 %v2511_v24, %v2319_v61 }
 0x57f   :  { %v2855_v42 = vpop.permute.xlu1 %2854 }
 0x580   :  { %2575 = vst.msk [vmem:[%s5601_s9 + $0xe0] sm:$0xff] %vm5649_vm1, %v2543_v41  ;;  %v2945_v6 = vmul.f32 %v3079_v44, %v2855_v42  ;;  %v2699_v52 = vpop.permute.xlu0 %2698  ;;  %v3082_v44 = vld [vmem:[%s5594_s1 + $0x178] sm:$0xff] }
 0x581   :  { %v2786_v29 = vmul.f32 %v3048_v17, %v2699_v52 }
 0x582   :  { %v2977_v45 = vadd.f32 %v2945_v6, %v2785_v5 }
 0x583   :  { %v2759_v26 = vpop.permute.xlu1 %2758 }
 0x584   :  { %3111 = vst.msk [vmem:[%s5601_s9 + $0x160] sm:$0xff] %vm5650_vm2, %v2977_v45  ;;  %v2859_v53 = vpop.permute.xlu0 %2858  ;;  %v2801_v11 = vmul.f32 %v3063_v21, %v2759_v26  ;;  %v3066_v26 = vld [vmem:[%s5592_s0 + $0x1f8] sm:$0xff] }
 0x585   :  { %v2946_v36 = vmul.f32 %v3080_v63, %v2859_v53  ;;  %v2082_v63 = vld [vmem:[%s5592_s0 + $0x78] sm:$0xff] }
 0x586   :  { %v2114_v53 = vld [vmem:[%s5594_s1 + $0x78] sm:$0xff] }
 0x587   :  { %v2978_v39 = vadd.f32 %v2946_v36, %v2786_v29  ;;  %v2919_v46 = vpop.permute.xlu1 %2918  ;;  %v3098_v29 = vld [vmem:[%s5594_s1 + $0x1f8] sm:$0xff] }
 0x588   :  { %v2961_v62 = vmul.f32 %v3095_v54, %v2919_v46  ;;  %v2763_v14 = vpop.permute.xlu0 %2762 }
 0x589   :  { %3112 = vst.msk [vmem:[%s5601_s9 + $0x168] sm:$0xff] %vm5651_vm3, %v2978_v39  ;;  %v2802_v35 = vmul.f32 %v3064_v20, %v2763_v14  ;;  %v2098_v20 = vld [vmem:[%s5592_s0 + $0xf8] sm:$0xff] }
 0x58a   :  { %v2993_v31 = vadd.f32 %v2961_v62, %v2801_v11 }
 0x58c   :  { %3127 = vst.msk [vmem:[%s5601_s9 + $0x1e0] sm:$0xff] %vm5652_vm4, %v2993_v31  ;;  %v2199_v18 = vpop.permute.xlu1 %2198  ;;  %v2923_v32 = vpop.permute.xlu0 %2922 }
 0x58d   :  { %v2962_v1 = vmul.f32 %v3096_v15, %v2923_v32  ;;  %v2304_v25 = vmul.f32 %v2199_v18, %v2080_v50  ;;  %v2130_v15 = vld [vmem:[%s5594_s1 + $0xf8] sm:$0xff] }
 0x58f   :  { %v2994_v9 = vadd.f32 %v2962_v1, %v2802_v35  ;;  %v3065_v1 = vld [vmem:[%s5592_s0 + $0x1f0] sm:$0xff] }
 0x590   :  { %v2391_v28 = vpop.permute.xlu1 %2390 }
 0x591   :  { %3128 = vst.msk [vmem:[%s5601_s9 + $0x1e8] sm:$0xff] %vm5653_vm5, %v2994_v9  ;;  %v2496_v43 = vmul.f32 %v2391_v28, %v2112_v10  ;;  %v2204_v56 = vpop.permute.xlu0 %2203  ;;  %v3097_v10 = vld [vmem:[%s5594_s1 + $0x1f0] sm:$0xff] }
 0x592   :  { %v2305_v37 = vmul.f32 %v2204_v56, %v2081_v13 }
 0x593   :  { %v2528_v34 = vadd.f32 %v2496_v43, %v2304_v25 }
 0x594   :  { %v2279_v57 = vpop.permute.xlu1 %2278 }
 0x595   :  { %2560 = vst.msk [vmem:[%s5601_s9 + $0x68] sm:$0xff] %vm5654_vm6, %v2528_v34  ;;  %v2396_v55 = vpop.permute.xlu0 %2395  ;;  %v2320_v60 = vmul.f32 %v2279_v57, %v2096_v33 }
 0x596   :  { %v2497_v12 = vmul.f32 %v2396_v55, %v2113_v7 }
 0x598   :  { %v2529_v48 = vadd.f32 %v2497_v12, %v2305_v37  ;;  %v2471_v38 = vpop.permute.xlu1 %2470 }
 0x599   :  { %v2512_v23 = vmul.f32 %v2471_v38, %v2128_v3  ;;  %v2284_v27 = vpop.permute.xlu0 %2283 }
 0x59a   :  { %2561 = vst.msk [vmem:[%s5601_s9 + $0x70] sm:$0xff] %vm5655_vm7, %v2529_v48  ;;  %v2321_v47 = vmul.f32 %v2284_v27, %v2097_v8 }
 0x59b   :  { %v2544_v4 = vadd.f32 %v2512_v23, %v2320_v60 }
 0x59d   :  { %2576 = vst.msk [vmem:[%s5601_s9 + $0xe8] sm:$0xff] %vm5656_vm8, %v2544_v4  ;;  %v2703_v30 = vpop.permute.xlu1 %2702  ;;  %v2476_v2 = vpop.permute.xlu0 %2475 }
 0x59e   :  { %v2513_v58 = vmul.f32 %v2476_v2, %v2129_v0  ;;  %v2787_v59 = vmul.f32 %v3049_v16, %v2703_v30 }
 0x5a0   :  { %v2545_v49 = vadd.f32 %v2513_v58, %v2321_v47 }
 0x5a1   :  { %v2863_v19 = vpop.permute.xlu1 %2862 }
 0x5a2   :  { %2577 = vst.msk [vmem:[%s5601_s9 + $0xf0] sm:$0xff] %vm5657_vm9, %v2545_v49  ;;  %v2947_v51 = vmul.f32 %v3081_v22, %v2863_v19  ;;  %v2707_v61 = vpop.permute.xlu0 %2706 }
 0x5a3   :  { %v2788_v5 = vmul.f32 %v3050_v40, %v2707_v61 }
 0x5a4   :  { %v2979_v24 = vadd.f32 %v2947_v51, %v2787_v59 }
 0x5a5   :  { %v2767_v41 = vpop.permute.xlu1 %2766 }
 0x5a6   :  { %3113 = vst.msk [vmem:[%s5601_s9 + $0x170] sm:$0xff] %vm5658_vm10, %v2979_v24  ;;  %v2867_v42 = vpop.permute.xlu0 %2866  ;;  %v2803_v28 = vmul.f32 %v3065_v1, %v2767_v41 }
 0x5a7   :  { %v2948_v6 = vmul.f32 %v3082_v44, %v2867_v42 }
 0x5a9   :  { %v2980_v52 = vadd.f32 %v2948_v6, %v2788_v5 }
 0x5aa   :  { %v2209_v45 = vpop.permute.xlu1 %2208  ;;  %v2771_v17 = vpop.permute.xlu0 %2770 }
 0x5ab   :  { %3114 = vst.msk [vmem:[%s5601_s9 + $0x178] sm:$0xff] %vm5659_vm11, %v2980_v52  ;;  %v2306_v54 = vmul.f32 %v2209_v45, %v2082_v63  ;;  %v2804_v39 = vmul.f32 %v3066_v26, %v2771_v17 }
 0x5ae   :  { %v2401_v21 = vpop.permute.xlu1 %2400  ;;  %v2931_v36 = vpop.permute.xlu0 %2930 }
 0x5af   :  { %v2498_v46 = vmul.f32 %v2401_v21, %v2114_v53  ;;  %v2964_v11 = vmul.f32 %v3098_v29, %v2931_v36 }
 0x5b1   :  { %v2530_v62 = vadd.f32 %v2498_v46, %v2306_v54  ;;  %v2996_v14 = vadd.f32 %v2964_v11, %v2804_v39 }
 0x5b2   :  { %v2289_v31 = vpop.permute.xlu1 %2288 }
 0x5b3   :  { %2562 = vst.msk [vmem:[%s5601_s9 + $0x78] sm:$0xff] %vm5660_vm12, %v2530_v62  ;;  %v2322_v32 = vmul.f32 %v2289_v31, %v2098_v20 }
 0x5b4   :  { %3130 = vst.msk [vmem:[%s5601_s9 + $0x1f8] sm:$0xff] %vm5661_vm13, %v2996_v14 }
 0x5b6   :  { %v2481_v18 = vpop.permute.xlu1 %2480 }
 0x5b7   :  { %v2514_v35 = vmul.f32 %v2481_v18, %v2130_v15 }
 0x5b9   :  { %v2546_v50 = vadd.f32 %v2514_v35, %v2322_v32 }
 0x5bb   :  { %2578 = vst.msk [vmem:[%s5601_s9 + $0xf8] sm:$0xff] %vm5662_vm14, %v2546_v50  ;;  %v2927_v9 = vpop.permute.xlu1 %2926 }
 0x5bc   :  { %v2963_v25 = vmul.f32 %v3097_v10, %v2927_v9 }
 0x5be   :  { %v2995_v43 = vadd.f32 %v2963_v25, %v2803_v28 }
 0x5c0   :  { %3129 = vst.msk [vmem:[%s5601_s9 + $0x1f0] sm:$0xff] %vm5663_vm15, %v2995_v43 }

</bundles_post_ra>
